<compile_context>
chip_gen: v6e
topology: v6e:2x2x1
jax: 0.10.0
libtpu: 0.0.40
codegen_flags: <defaults>
</compile_context>

<pallas_src>
import jax
import jax.numpy as jnp
from jax.experimental import pallas as pl
from jax.experimental.pallas import tpu as pltpu

FEAT_DIM = 2048          # ResNet-50 style feature width (Linear in_features)
LABEL_LEN = 10           # synthetic stand-in for len(glob.glob('../train/*'))
LANE = 128
HW_CHUNK = 16            # spatial rows per grid step (bf16 sublane tile)


def _round_up(x, m):
    return ((x + m - 1) // m) * m


def _pool_linear_kernel(x_ref, w_ref, b_ref, o_ref, acc_ref):
    # x_ref:   (TB, HW_CHUNK, C)  feature chunk (bf16 or f32)
    # w_ref:   (C, Lp)            Linear weight^T, pre-scaled by 1/HW (bf16)
    # b_ref:   (1, Lp)            Linear bias (f32), label dim lane-padded
    # o_ref:   (TB, Lp)           logits (f32) -- written only at the last hw step
    # acc_ref: (TB, C)            f32 pool-sum accumulator (VMEM scratch)
    hw = pl.program_id(1)

    @pl.when(hw == 0)
    def _():
        acc_ref[...] = jnp.zeros_like(acc_ref)

    # Accumulate the global-average-pool sum in f32, 8 sublane-rows at a time,
    # so no large f32 upcast of the whole chunk is ever materialized.
    hw_chunk = x_ref.shape[1]
    acc = acc_ref[...]
    for s in range(0, hw_chunk, 8):
        acc = acc + jnp.sum(x_ref[:, s:s + 8, :].astype(jnp.float32), axis=1)
    acc_ref[...] = acc

    @pl.when(hw == pl.num_programs(1) - 1)
    def _():
        # MXU matmul with bf16 operands, f32 accumulation.  The 1/HW pool
        # scale is already folded into w_ref by the wrapper.
        o_ref[...] = (
            jnp.dot(acc_ref[...].astype(w_ref.dtype), w_ref[...],
                    preferred_element_type=jnp.float32)
            + b_ref[...]
        )


def net_forward(feat_nhwc, weight, bias, *, tb=None, hw_chunk=HW_CHUNK):
    """feat_nhwc: (B, H, W, C) backbone features, channels-last (bf16 or f32).
       weight:    (label_len, C) PyTorch nn.Linear weight.
       bias:      (label_len,)   PyTorch nn.Linear bias.
       returns:   (B, label_len) float32 logits of avgpool -> flatten -> linear."""
    B, H, W, C = feat_nhwc.shape
    L = weight.shape[0]
    HW = H * W
    assert C % LANE == 0, "feature dim must be lane-aligned (multiple of 128)"
    assert hw_chunk % 8 == 0

    # Batch tile: largest multiple of 8 (<= 64) dividing round_up(B, 8), so the
    # only batch padding is up to the 8-sublane boundary (no wasted HBM reads
    # for whole padded tiles), and the per-step x tile stays small enough that
    # double-buffering fits under every generation's scoped VMEM.
    Bp = _round_up(B, 8)
    if tb is None:
        tb = 8
        for cand in range(min(64, Bp), 7, -8):
            if Bp % cand == 0:
                tb = cand
                break
    assert tb % 8 == 0, "tb must be a multiple of 8 (sublane alignment)"
    assert Bp % tb == 0, "tb must divide the (8-padded) batch"

    HWp = _round_up(HW, hw_chunk)      # sublane-dense chunks (e.g. 49 -> 64)
    Lp = _round_up(L, LANE)            # lane-dense output stores

    x = feat_nhwc.reshape(B, HW, C)    # free reshape (no transpose; NHWC in)
    if (Bp != B) or (HWp != HW):
        # Zero padding is exact: padded rows add nothing to the pool sum and
        # the 1/HW scale below uses the *real* HW.
        x = jnp.pad(x, ((0, Bp - B), (0, HWp - HW), (0, 0)))

    # (C, Lp) weight with the 1/(H*W) pool scale folded in; zero-pad label dim;
    # bf16 operand for the MXU (v5e MXU is bf16-only), f32 accumulation in-kernel.
    w = jnp.transpose(weight, (1, 0)).astype(jnp.float32) / float(HW)
    w = jnp.pad(w, ((0, 0), (0, Lp - L))).astype(jnp.bfloat16)
    b = jnp.pad(bias.astype(jnp.float32).reshape(1, L), ((0, 0), (0, Lp - L)))

    xbytes = jnp.dtype(x.dtype).itemsize
    cost = pl.CostEstimate(
        flops=2 * Bp * C * Lp + Bp * HWp * C,
        transcendentals=0,
        bytes_accessed=Bp * HWp * C * xbytes + C * Lp * 2 + Lp * 4 + Bp * Lp * 4,
    )

    out = pl.pallas_call(
        _pool_linear_kernel,
        out_shape=jax.ShapeDtypeStruct((Bp, Lp), jnp.float32),
        grid=(Bp // tb, HWp // hw_chunk),
        in_specs=[
            # batch- and spatial-tiled, double-buffer pipelined feature chunks
            pl.BlockSpec((tb, hw_chunk, C), lambda i, h: (i, h, 0)),
            # weight / bias: constant index_map -> fetched once, resident in VMEM
            pl.BlockSpec((C, Lp), lambda i, h: (0, 0)),
            pl.BlockSpec((1, Lp), lambda i, h: (0, 0)),
        ],
        out_specs=pl.BlockSpec((tb, Lp), lambda i, h: (i, 0)),
        scratch_shapes=[pltpu.VMEM((tb, C), jnp.float32)],   # f32 pool accumulator
        compiler_params=pltpu.CompilerParams(
            # batch tiles shard across TensorCores (v7x); hw is the reduction axis
            dimension_semantics=("parallel", "arbitrary"),
            vmem_limit_bytes=32 * 1024 * 1024,
        ),
        cost_estimate=cost,
    )(x, w, b)

    return out[:B, :L]


if __name__ == "__main__":
    key = jax.random.PRNGKey(0)
    k_x, k_w, k_b = jax.random.split(key, 3)

    # Small shapes consistent with the forward: ResNet feature map before the
    # final avgpool is (B, 7, 7, 2048); use spatial 4x4 and batch 2 here.
    B, H, W, C = 2, 4, 4, FEAT_DIM
    # Features fed channels-last and in bf16 (halves the dominant HBM read);
    # the kernel accumulates the pool sum in f32.
    feats = jax.random.normal(k_x, (B, H, W, C), dtype=jnp.float32).astype(jnp.bfloat16)

    # Deterministic nn.Linear(2048, label_len) init: U(-1/sqrt(fan_in), 1/sqrt(fan_in))
    bound = 1.0 / (FEAT_DIM ** 0.5)
    weight = jax.random.uniform(k_w, (LABEL_LEN, FEAT_DIM), jnp.float32, -bound, bound)
    bias = jax.random.uniform(k_b, (LABEL_LEN,), jnp.float32, -bound, bound)

    out = net_forward(feats, weight, bias)
    out = jax.block_until_ready(out)

    # Pure-JAX reference of the same forward tail (avgpool -> flatten -> linear),
    # pool accumulated in f32 like the kernel.  Tolerance reflects the kernel's
    # bf16 MXU operands (f32 accumulation); errors are ~1e-3 on ~0.25-magnitude logits.
    ref = jnp.mean(feats.astype(jnp.float32), axis=(1, 2)) @ weight.T + bias
    assert out.shape == (B, LABEL_LEN)
    assert jnp.allclose(out, ref, atol=1e-2, rtol=1e-2), "mismatch vs reference"

    print("KERNEL_OK")
</pallas_src>

<mosaic_0001>
module attributes {stable_mosaic.version = 11 : i64} {
  func.func @_pool_linear_kernel(%arg0: i32, %arg1: i32, %arg2: memref<8x16x2048xbf16, #tpu.memory_space<vmem>>, %arg3: memref<2048x128xbf16, #tpu.memory_space<vmem>>, %arg4: memref<1x128xf32, #tpu.memory_space<vmem>>, %arg5: memref<8x128xf32, #tpu.memory_space<vmem>>, %arg6: memref<8x2048xf32, #tpu.memory_space<vmem>>) attributes {dimension_semantics = [#tpu.dimension_semantics<parallel>, #tpu.dimension_semantics<arbitrary>], iteration_bounds = array<i64: 1, 1>, scalar_prefetch = 0 : i64, scratch_operands = 1 : i64, tpu.core_type = #tpu.core_type<tc>, window_params = [{transform_indices = @transform_0, window_bounds = array<i64: 8, 16, 2048>}, {pipeline_mode = #tpu.pipeline_mode<synchronous>, transform_indices = @transform_1, window_bounds = array<i64: 2048, 128>}, {pipeline_mode = #tpu.pipeline_mode<synchronous>, transform_indices = @transform_2, window_bounds = array<i64: 1, 128>}, {transform_indices = @transform_3, window_bounds = array<i64: 8, 128>}]} {
    %c0_i32 = arith.constant 0 : i32
    %0 = arith.cmpi eq, %arg1, %c0_i32 : i32
    %1 = arith.extui %0 : i1 to i32
    %c0_i32_0 = arith.constant 0 : i32
    %2 = arith.cmpi ne, %1, %c0_i32_0 : i32
    scf.if %2 {
      %cst_12 = arith.constant 0.000000e+00 : f32
      %16 = vector.broadcast %cst_12 : f32 to vector<8x2048xf32>
      %c0_13 = arith.constant 0 : index
      %c0_14 = arith.constant 0 : index
      %17 = vector.load %arg6[%c0_13, %c0_14] : memref<8x2048xf32, #tpu.memory_space<vmem>>, vector<8x2048xf32>
      tpu.vector_store %arg6[%c0_13, %c0_14], %16 {strides = array<i32>} : memref<8x2048xf32, #tpu.memory_space<vmem>>, vector<8x2048xf32>,
    } else {
    }
    %c0 = arith.constant 0 : index
    %c0_1 = arith.constant 0 : index
    %3 = vector.load %arg6[%c0, %c0_1] : memref<8x2048xf32, #tpu.memory_space<vmem>>, vector<8x2048xf32>
    %c0_2 = arith.constant 0 : index
    %c0_3 = arith.constant 0 : index
    %c0_4 = arith.constant 0 : index
    %4 = vector.load %arg2[%c0_2, %c0_3, %c0_4] : memref<8x16x2048xbf16, #tpu.memory_space<vmem>>, vector<8x8x2048xbf16>
    %5 = arith.extf %4 : vector<8x8x2048xbf16> to vector<8x8x2048xf32>
    %cst = arith.constant dense<0.000000e+00> : vector<8x2048xf32>
    %6 = vector.multi_reduction <add>, %5, %cst [1] : vector<8x8x2048xf32> to vector<8x2048xf32>
    %7 = arith.addf %3, %6 : vector<8x2048xf32>
    %c0_5 = arith.constant 0 : index
    %c8 = arith.constant 8 : index
    %c0_6 = arith.constant 0 : index
    %8 = vector.load %arg2[%c0_5, %c8, %c0_6] : memref<8x16x2048xbf16, #tpu.memory_space<vmem>>, vector<8x8x2048xbf16>
    %9 = arith.extf %8 : vector<8x8x2048xbf16> to vector<8x8x2048xf32>
    %cst_7 = arith.constant dense<0.000000e+00> : vector<8x2048xf32>
    %10 = vector.multi_reduction <add>, %9, %cst_7 [1] : vector<8x8x2048xf32> to vector<8x2048xf32>
    %11 = arith.addf %7, %10 : vector<8x2048xf32>
    %c0_8 = arith.constant 0 : index
    %c0_9 = arith.constant 0 : index
    %12 = vector.load %arg6[%c0_8, %c0_9] : memref<8x2048xf32, #tpu.memory_space<vmem>>, vector<8x2048xf32>
    tpu.vector_store %arg6[%c0_8, %c0_9], %11 {strides = array<i32>} : memref<8x2048xf32, #tpu.memory_space<vmem>>, vector<8x2048xf32>,
    %c0_i32_10 = arith.constant 0 : i32
    %13 = arith.cmpi eq, %arg1, %c0_i32_10 : i32
    %14 = arith.extui %13 : i1 to i32
    %c0_i32_11 = arith.constant 0 : i32
    %15 = arith.cmpi ne, %14, %c0_i32_11 : i32
    scf.if %15 {
      %c0_12 = arith.constant 0 : index
      %c0_13 = arith.constant 0 : index
      %16 = vector.load %arg6[%c0_12, %c0_13] : memref<8x2048xf32, #tpu.memory_space<vmem>>, vector<8x2048xf32>
      %17 = arith.truncf %16 : vector<8x2048xf32> to vector<8x2048xbf16>
      %c0_14 = arith.constant 0 : index
      %c0_15 = arith.constant 0 : index
      %18 = vector.load %arg3[%c0_14, %c0_15] : memref<2048x128xbf16, #tpu.memory_space<vmem>>, vector<2048x128xbf16>
      %cst_16 = arith.constant dense<0.000000e+00> : vector<8x128xf32>
      %19 = tpu.matmul %17, %18, %cst_16 {dimension_numbers = #tpu.dot_dimension_numbers<[1], [0], [0], [1], [0, 0, 1, 1], [], []>} : vector<8x2048xbf16>, vector<2048x128xbf16>, vector<8x128xf32> -> vector<8x128xf32>
      %c0_17 = arith.constant 0 : index
      %c0_18 = arith.constant 0 : index
      %20 = vector.load %arg4[%c0_17, %c0_18] : memref<1x128xf32, #tpu.memory_space<vmem>>, vector<1x128xf32>
      %21 = vector.broadcast %20 : vector<1x128xf32> to vector<8x128xf32>
      %22 = arith.addf %19, %21 : vector<8x128xf32>
      %c0_19 = arith.constant 0 : index
      %c0_20 = arith.constant 0 : index
      %23 = vector.load %arg5[%c0_19, %c0_20] : memref<8x128xf32, #tpu.memory_space<vmem>>, vector<8x128xf32>
      tpu.vector_store %arg5[%c0_19, %c0_20], %22 {strides = array<i32>} : memref<8x128xf32, #tpu.memory_space<vmem>>, vector<8x128xf32>,
    } else {
    }
    return
  }
  func.func @transform_0(%arg0: i32, %arg1: i32) -> (i32, i32, i32) {
    %c0_i32 = arith.constant 0 : i32
    %c0_i32_0 = arith.constant 0 : i32
    return %arg0, %arg1, %c0_i32 : i32, i32, i32
  }
  func.func @transform_1(%arg0: i32, %arg1: i32) -> (i32, i32) {
    %c0_i32 = arith.constant 0 : i32
    %c0_i32_0 = arith.constant 0 : i32
    %c0_i32_1 = arith.constant 0 : i32
    return %c0_i32, %c0_i32_0 : i32, i32
  }
  func.func @transform_2(%arg0: i32, %arg1: i32) -> (i32, i32) {
    %c0_i32 = arith.constant 0 : i32
    %c0_i32_0 = arith.constant 0 : i32
    %c0_i32_1 = arith.constant 0 : i32
    return %c0_i32, %c0_i32_0 : i32, i32
  }
  func.func @transform_3(%arg0: i32, %arg1: i32) -> (i32, i32) {
    %c0_i32 = arith.constant 0 : i32
    %c0_i32_0 = arith.constant 0 : i32
    return %arg0, %c0_i32 : i32, i32
  }
}

</mosaic_0001>

<bundles_post_ra>
// kernel: tpu_custom_call.1
= control target key start
LH: loop header
LB: loop body
LE: loop exit
PB: predicated region body
PF: predicated region fallthrough
CT: control target
= control target key end

     0   :  { %8 = vsyncpa [#allocation4], 0  ;;  %s5772_s0 = inlined_call_operand.hbm [shape: bf16[8,16,2048], index: 0, kind: input, shape index: {}]   ;;  %s5773_s1 = inlined_call_operand.hbm [shape: bf16[2048,128], index: 1, kind: input, shape index: {}]   ;;  %s5774_s2 = inlined_call_operand.vmem [shape: f32[1,128], index: 2, kind: input, shape index: {}]   ;;  %s5775_s3 = inlined_call_operand.hbm [shape: f32[8,128], index: 3, kind: output, shape index: {}]  }
   0x1   :  { %9 = vsyncpa [#allocation7], 0 }
   0x2   :  { %10 = vsyncpa [#allocation5], 0  ;;  %s4475_s12 = smov [#allocation3]  }
   0x3   :  { %s16_s13 = sshll.u32 %s4475_s12, 4  ;;  %s17_s13 = int_to_ptr.vmem [resolvable:$true] %s16_s13 }
   0x4   :  { %s4417_s14 = scalar_lea.vmem %s17_s13, 16384  ;;  %p4422_p1 = scmp.lt.s32.totalorder %s17_s13, %s17_s13 }
   0x5   :  { %p4418_p0 = scmp.ne.s32.totalorder %s17_s13, %s4417_s14  ;;  %p4423_p2 = scmp.lt.s32.totalorder %s4417_s14, %s4417_s14 }
   0x7   :  { %p4424_p3 = por %p4423_p2, %p4422_p1 }
   0x9   :  { %p4425_p4 = pnand %p4424_p3, %p4418_p0 }
   0xb   :  { %4428 = shalt.err (!%p4425_p4)
}
   0xc   :  { %s4476_s15 = smov 1024   ;;  %s4477_s16 = smov 64  }
   0xd   :  { %22 = dma.hbm_to_vmem [thread:$0]  %s5772_s0, 16384, %s17_s13, [#allocation4], %s4476_s15, %s4476_s15, %s4477_s16  }
   0xe   :  { %s4478_s19 = smov [#allocation6]  }
   0xf   :  { %s28_s20 = sshll.u32 %s4478_s19, 4  ;;  %s29_s20 = int_to_ptr.vmem [resolvable:$true] %s28_s20 }
  0x10   :  { %s4437_s21 = scalar_lea.vmem %s29_s20, 16384  ;;  %p4442_p6 = scmp.lt.s32.totalorder %s29_s20, %s29_s20 }
  0x11   :  { %p4438_p5 = scmp.ne.s32.totalorder %s29_s20, %s4437_s21  ;;  %p4443_p7 = scmp.lt.s32.totalorder %s4437_s21, %s4437_s21 }
  0x13   :  { %p4444_p8 = por %p4443_p7, %p4442_p6 }
  0x15   :  { %p4445_p9 = pnand %p4444_p8, %p4438_p5 }
  0x17   :  { %4448 = shalt.err (!%p4445_p9)
}
  0x18   :  { %s4479_s22 = smov 4  }
  0x19   :  { %34 = dma.hbm_to_vmem [thread:$0]  %s5773_s1, 16384, %s29_s20, [#allocation7], %s4477_s16, %s4477_s16, %s4479_s22  }
  0x1a   :  { %4469 = dma.done.wait [#allocation4], 16384  }
  0x1b   :  { %4470 = vsyncadd [#allocation4], 4294950912 }
  0x1c   :  { %4471 = dma.done.wait [#allocation7], 16384  }
  0x1d   :  { %4472 = vsyncadd [#allocation7], 4294950912  ;;  %v4281_v0 = vld [vmem:[#allocation6 + $0x78] sm:$0xff]   ;;  %v4285_v4 = vld [vmem:[#allocation6 + $0x70] sm:$0xff]   ;;  %vm1168_vm0 = vcmask 1041409   ;;  %vm1170_vm1 = vcmask 1042434  }
  0x1e   :  { %v4282_v1 = vld [vmem:[#allocation6 + $0xf8] sm:$0xff]   ;;  %4099 = vmatprep.subr.bf16.mxu0 %v4281_v0  ;;  %v4286_v5 = vld [vmem:[#allocation6 + $0xf0] sm:$0xff]   ;;  %v4289_v8 = vld [vmem:[#allocation6 + $0x68] sm:$0xff]   ;;  %vm1172_vm2 = vcmask 1043459   ;;  %vm1174_vm3 = vcmask 1044484   ;;  %vm1176_vm4 = vcmask 1045509  }
  0x1f   :  { %v4283_v2 = vld [vmem:[#allocation6 + $0x38] sm:$0xff]   ;;  %4121 = vmatprep.subr.bf16.mxu1 %v4282_v1  ;;  %v4287_v6 = vld [vmem:[#allocation6 + $0x30] sm:$0xff]   ;;  %v4290_v9 = vld [vmem:[#allocation6 + $0xe8] sm:$0xff]   ;;  %vm1178_vm5 = vcmask 1046534   ;;  %vm1180_vm6 = vcmask 1047559  }
  0x20   :  { %v4284_v3 = vld [vmem:[#allocation6 + $0xb8] sm:$0xff]   ;;  %4100 = vmatpush3.bf16.msra.mxu0 %v4283_v2  ;;  %v4288_v7 = vld [vmem:[#allocation6 + $0xb0] sm:$0xff]   ;;  %v4291_v10 = vld [vmem:[#allocation6 + $0x28] sm:$0xff]  }
  0x21   :  { %4122 = vmatpush3.bf16.msra.mxu1 %v4284_v3  ;;  %4101 = vmatprep.subr.bf16.mxu0 %v4285_v4  ;;  %v4292_v11 = vld [vmem:[#allocation6 + $0xa8] sm:$0xff]   ;;  %v4293_v12 = vld [vmem:[#allocation6 + $0x60] sm:$0xff]   ;;  %v4297_v16 = vld [vmem:[#allocation6 + $0x58] sm:$0xff]  }
  0x22   :  { %4123 = vmatprep.subr.bf16.mxu1 %v4286_v5  ;;  %v4294_v13 = vld [vmem:[#allocation6 + $0xe0] sm:$0xff]   ;;  %v4298_v17 = vld [vmem:[#allocation6 + $0xd8] sm:$0xff]   ;;  %v4301_v20 = vld [vmem:[#allocation6 + $0x50] sm:$0xff]  }
  0x23   :  { %v4295_v14 = vld [vmem:[#allocation6 + $0x20] sm:$0xff]   ;;  %v4299_v18 = vld [vmem:[#allocation6 + $0x18] sm:$0xff]   ;;  %v4302_v21 = vld [vmem:[#allocation6 + $0xd0] sm:$0xff]  }
  0x24   :  { %4102 = vmatpush3.bf16.msra.mxu0 %v4287_v6  ;;  %v4296_v15 = vld [vmem:[#allocation6 + $0xa0] sm:$0xff]   ;;  %v4300_v19 = vld [vmem:[#allocation6 + $0x98] sm:$0xff]   ;;  %v4303_v22 = vld [vmem:[#allocation6 + $0x10] sm:$0xff]  }
  0x25   :  { %4124 = vmatpush3.bf16.msra.mxu1 %v4288_v7  ;;  %4103 = vmatprep.subr.bf16.mxu0 %v4289_v8  ;;  %v4304_v23 = vld [vmem:[#allocation6 + $0x90] sm:$0xff]   ;;  %v4305_v24 = vld [vmem:[#allocation6 + $0x48] sm:$0xff]   ;;  %v4309_v28 = vld [vmem:[#allocation6 + $0x40] sm:$0xff]  }
  0x26   :  { %4125 = vmatprep.subr.bf16.mxu1 %v4290_v9  ;;  %v4306_v25 = vld [vmem:[#allocation6 + $0xc8] sm:$0xff]   ;;  %v4310_v29 = vld [vmem:[#allocation6 + $0xc0] sm:$0xff]  }
  0x27   :  { %v4307_v26 = vld [vmem:[#allocation6 + $0x8] sm:$0xff]   ;;  %v4311_v30 = vld [vmem:[#allocation6] sm:$0xff]  }
  0x28   :  { %4104 = vmatpush3.bf16.msra.mxu0 %v4291_v10  ;;  %v4308_v27 = vld [vmem:[#allocation6 + $0x88] sm:$0xff]   ;;  %v4312_v31 = vld [vmem:[#allocation6 + $0x80] sm:$0xff]  }
  0x29   :  { %4126 = vmatpush3.bf16.msra.mxu1 %v4292_v11  ;;  %4105 = vmatprep.subr.bf16.mxu0 %v4293_v12  ;;  %v4507_v32 = vld [vmem:[#allocation3] sm:$0xff] }
  0x2a   :  { %4127 = vmatprep.subr.bf16.mxu1 %v4294_v13  ;;  %v4509_v33 = vld [vmem:[#allocation3 + $0x80] sm:$0xff]  ;;  %v145_v39 = vunpack.c.h.bf16 %v4507_v32 }
  0x2b   :  { %v4511_v34 = vld [vmem:[#allocation3 + $0x100] sm:$0xff]  ;;  %v161_v40 = vunpack.c.h.bf16 %v4509_v33 }
  0x2c   :  { %4106 = vmatpush3.bf16.msra.mxu0 %v4295_v14  ;;  %v4513_v35 = vld [vmem:[#allocation3 + $0x180] sm:$0xff]  ;;  %v177_v45 = vunpack.c.h.bf16 %v4511_v34  ;;  %v278_v55 = vrot.slane %v145_v39, 4 }
  0x2d   :  { %4128 = vmatpush3.bf16.msra.mxu1 %v4296_v15  ;;  %4107 = vmatprep.subr.bf16.mxu0 %v4297_v16  ;;  %v4515_v36 = vld [vmem:[#allocation3 + $0x200] sm:$0xff]  ;;  %v193_v46 = vunpack.c.h.bf16 %v4513_v35  ;;  %v374_v56 = vrot.slane %v161_v40, 4 }
  0x2e   :  { %4129 = vmatprep.subr.bf16.mxu1 %v4298_v17  ;;  %v4517_v37 = vld [vmem:[#allocation3 + $0x280] sm:$0xff]  ;;  %v209_v49 = vunpack.c.h.bf16 %v4515_v36  ;;  %v470_v57 = vrot.slane %v177_v45, 4  ;;  %v279_v63 = vadd.f32 %v278_v55, %v145_v39  ;;  %v4314_v55 = vld [vmem:[#allocation6 + $0x1f8] sm:$0xff]  }
  0x2f   :  { %v4522_v41 = vld [vmem:[#allocation3 + $0x300] sm:$0xff]  ;;  %v225_v50 = vunpack.c.h.bf16 %v4517_v37  ;;  %v566_v58 = vrot.slane %v193_v46, 4  ;;  %v375_v0 = vadd.f32 %v374_v56, %v161_v40 }
  0x30   :  { %4108 = vmatpush3.bf16.msra.mxu0 %v4299_v18  ;;  %v4524_v42 = vld [vmem:[#allocation3 + $0x380] sm:$0xff]  ;;  %v241_v53 = vunpack.c.h.bf16 %v4522_v41  ;;  %v662_v59 = vrot.slane %v209_v49, 4  ;;  %v471_v1 = vadd.f32 %v470_v57, %v177_v45  ;;  %v280_v7 = vrot.slane %v279_v63, 2 }
  0x31   :  { %4130 = vmatpush3.bf16.msra.mxu1 %v4300_v19  ;;  %4109 = vmatprep.subr.bf16.mxu0 %v4301_v20  ;;  %v257_v54 = vunpack.c.h.bf16 %v4524_v42  ;;  %v758_v60 = vrot.slane %v225_v50, 4  ;;  %v567_v2 = vadd.f32 %v566_v58, %v193_v46  ;;  %v376_v8 = vrot.slane %v375_v0, 2  ;;  %v4544_v46 = vld [vmem:[#allocation3 + $0x1c0] sm:$0xff] }
  0x32   :  { %4131 = vmatprep.subr.bf16.mxu1 %v4302_v21  ;;  %v854_v61 = vrot.slane %v241_v53, 4  ;;  %v663_v3 = vadd.f32 %v662_v59, %v209_v49  ;;  %v472_v9 = vrot.slane %v471_v1, 2  ;;  %v281_v15 = vadd.f32 %v280_v7, %v279_v63  ;;  %v4552_v63 = vld [vmem:[#allocation3 + $0x2c0] sm:$0xff] }
  0x33   :  { %v950_v62 = vrot.slane %v257_v54, 4  ;;  %v759_v4 = vadd.f32 %v758_v60, %v225_v50  ;;  %v568_v10 = vrot.slane %v567_v2, 2  ;;  %v377_v16 = vadd.f32 %v376_v8, %v375_v0  ;;  %v4547_v60 = vld [vmem:[#allocation3 + $0x240] sm:$0xff] }
  0x34   :  { %4110 = vmatpush3.bf16.msra.mxu0 %v4303_v22  ;;  %v855_v5 = vadd.f32 %v854_v61, %v241_v53  ;;  %v664_v11 = vrot.slane %v663_v3, 2  ;;  %v473_v17 = vadd.f32 %v472_v9, %v471_v1  ;;  %v4563_v8 = vld [vmem:[#allocation3 + $0x3c0] sm:$0xff] }
  0x35   :  { %4132 = vmatpush3.bf16.msra.mxu1 %v4304_v23  ;;  %4111 = vmatprep.subr.bf16.mxu0 %v4305_v24  ;;  %v951_v6 = vadd.f32 %v950_v62, %v257_v54  ;;  %v760_v12 = vrot.slane %v759_v4, 2  ;;  %v569_v18 = vadd.f32 %v568_v10, %v567_v2  ;;  %v4538_v23 = vld [vmem:[#allocation3 + $0x40] sm:$0xff]  ;;  %v4313_v24 = vld [vmem:[#allocation6 + $0x178] sm:$0xff]  }
  0x36   :  { %4133 = vmatprep.subr.bf16.mxu1 %v4306_v25  ;;  %v856_v13 = vrot.slane %v855_v5, 2  ;;  %v665_v19 = vadd.f32 %v664_v11, %v663_v3  ;;  %v282_v25 = vrot.slane %v281_v15, 1  ;;  %v1384_v1 = vunpack.c.h.bf16 %v4538_v23  ;;  %v4557_v3 = vld [vmem:[#allocation3 + $0x340] sm:$0xff] }
  0x37   :  { %v952_v14 = vrot.slane %v951_v6, 2  ;;  %v761_v20 = vadd.f32 %v760_v12, %v759_v4  ;;  %v1432_v11 = vunpack.c.h.bf16 %v4544_v46 }
  0x38   :  { %4112 = vmatpush3.bf16.msra.mxu0 %v4307_v26  ;;  %v857_v21 = vadd.f32 %v856_v13, %v855_v5  ;;  %v378_v26 = vrot.slane %v377_v16, 1  ;;  %v283_v49 = vadd.f32 %v282_v25, %v281_v15  ;;  %v1464_v15 = vunpack.c.h.bf16 %v4552_v63 }
  0x39   :  { %4134 = vmatpush3.bf16.msra.mxu1 %v4308_v27  ;;  %4113 = vmatprep.subr.bf16.mxu0 %v4309_v28  ;;  %v953_v22 = vadd.f32 %v952_v14, %v951_v6  ;;  %v474_v27 = vrot.slane %v473_v17, 1  ;;  %v570_v28 = vrot.slane %v569_v18, 1  ;;  %v762_v39 = vrot.slane %v761_v20, 1 }
  0x3a   :  { %4135 = vmatprep.subr.bf16.mxu1 %v4310_v29  ;;  %v4540_v29 = vld [vmem:[#allocation3 + $0xc0] sm:$0xff]  ;;  %v858_v40 = vrot.slane %v857_v21, 1  ;;  %v379_v50 = vadd.f32 %v378_v26, %v377_v16  ;;  %v1448_v14 = vunpack.c.h.bf16 %v4547_v60 }
  0x3b   :  { %v954_v45 = vrot.slane %v953_v22, 1  ;;  %v475_v53 = vadd.f32 %v474_v27, %v473_v17  ;;  %v571_v54 = vadd.f32 %v570_v28, %v569_v18  ;;  %v763_v58 = vadd.f32 %v762_v39, %v761_v20 }
  0x3c   :  { %4114 = vmatpush3.bf16.msra.mxu0 %v4311_v30  ;;  %v4542_v30 = vld [vmem:[#allocation3 + $0x140] sm:$0xff]  ;;  %v859_v59 = vadd.f32 %v858_v40, %v857_v21  ;;  %v1182_v62 = vsel %vm1168_vm0, %v379_v50, %v283_v49  ;;  %v1400_v5 = vunpack.c.h.bf16 %v4540_v29  ;;  %v1496_v21 = vunpack.c.h.bf16 %v4563_v8 }
  0x3d   :  { %4136 = vmatpush3.bf16.msra.mxu1 %v4312_v31  ;;  %v666_v31 = vrot.slane %v665_v19, 1  ;;  %4143 = vmatprep.subr.bf16.mxu0 %v4313_v24  ;;  %v4549_v61 = vadd.f32 %v954_v45, %v953_v22  ;;  %v1183_v2 = vsel %vm1170_vm1, %v475_v53, %v1182_v62  ;;  %v1416_v9 = vunpack.c.h.bf16 %v4542_v30 }
  0x3e   :  { %4165 = vmatprep.subr.bf16.mxu1 %v4314_v55  ;;  %v1184_v7 = vsel %vm1172_vm2, %v571_v54, %v1183_v2  ;;  %v1517_v22 = vrot.slane %v1384_v1, 4  ;;  %v1613_v24 = vrot.slane %v1400_v5, 4  ;;  %v1805_v27 = vrot.slane %v1432_v11, 4 }
  0x3f   :  { %v667_v57 = vadd.f32 %v666_v31, %v665_v19  ;;  %v1480_v19 = vunpack.c.h.bf16 %v4557_v3  ;;  %v1709_v26 = vrot.slane %v1416_v9, 4  ;;  %v1901_v28 = vrot.slane %v1448_v14, 4 }
  0x40   :  { %v1518_v31 = vadd.f32 %v1517_v22, %v1384_v1  ;;  %v1614_v39 = vadd.f32 %v1613_v24, %v1400_v5  ;;  %v1997_v40 = vrot.slane %v1464_v15, 4  ;;  %v1806_v50 = vadd.f32 %v1805_v27, %v1432_v11  ;;  %v4579_v27 = vld [vmem:[#allocation3 + $0x8] sm:$0xff] }
  0x41   :  { %v1185_v12 = vsel %vm1174_vm3, %v667_v57, %v1184_v7  ;;  %v2093_v45 = vrot.slane %v1480_v19, 4  ;;  %v1710_v49 = vadd.f32 %v1709_v26, %v1416_v9  ;;  %v1902_v53 = vadd.f32 %v1901_v28, %v1448_v14 }
  0x42   :  { %v1186_v16 = vsel %vm1176_vm4, %v763_v58, %v1185_v12  ;;  %v2189_v54 = vrot.slane %v1496_v21, 4  ;;  %v1519_v55 = vrot.slane %v1518_v31, 2  ;;  %v1615_v57 = vrot.slane %v1614_v39, 2 }
  0x43   :  { %v1187_v25 = vsel %vm1178_vm5, %v859_v59, %v1186_v16  ;;  %v1998_v58 = vadd.f32 %v1997_v40, %v1464_v15  ;;  %v2094_v62 = vadd.f32 %v2093_v45, %v1480_v19  ;;  %v1711_v2 = vrot.slane %v1710_v49, 2  ;;  %v4581_v45 = vld [vmem:[#allocation3 + $0x88] sm:$0xff] }
  0x44   :  { %v1807_v7 = vrot.slane %v1806_v50, 2  ;;  %v1903_v12 = vrot.slane %v1902_v53, 2  ;;  %v2190_v20 = vadd.f32 %v2189_v54, %v1496_v21  ;;  %v1520_v59 = vadd.f32 %v1519_v55, %v1518_v31  ;;  %v4583_v21 = vld [vmem:[#allocation3 + $0x108] sm:$0xff] }
  0x45   :  { %v1616_v16 = vadd.f32 %v1615_v57, %v1614_v39  ;;  %v1999_v18 = vrot.slane %v1998_v58, 2  ;;  %v2095_v17 = vrot.slane %v2094_v62, 2  ;;  %v1712_v1 = vadd.f32 %v1711_v2, %v1710_v49  ;;  %v4590_v2 = vld [vmem:[#allocation3 + $0x208] sm:$0xff] }
  0x46   :  { %v1808_v5 = vadd.f32 %v1807_v7, %v1806_v50  ;;  %v1904_v22 = vadd.f32 %v1903_v12, %v1902_v53  ;;  %v2191_v24 = vrot.slane %v2190_v20, 2  ;;  %v1521_v9 = vrot.slane %v1520_v59, 1 }
  0x47   :  { %v1617_v11 = vrot.slane %v1616_v16, 1  ;;  %v2000_v14 = vadd.f32 %v1999_v18, %v1998_v58  ;;  %v2096_v26 = vadd.f32 %v2095_v17, %v2094_v62  ;;  %v1713_v15 = vrot.slane %v1712_v1, 1  ;;  %v4585_v18 = vld [vmem:[#allocation3 + $0x188] sm:$0xff] }
  0x48   :  { %v1809_v19 = vrot.slane %v1808_v5, 1  ;;  %v1905_v28 = vrot.slane %v1904_v22, 1  ;;  %v2192_v40 = vadd.f32 %v2191_v24, %v2190_v20  ;;  %v1522_v31 = vadd.f32 %v1521_v9, %v1520_v59  ;;  %v4593_v59 = vld [vmem:[#allocation3 + $0x288] sm:$0xff] }
  0x49   :  { %v1618_v39 = vadd.f32 %v1617_v11, %v1616_v16  ;;  %v2001_v49 = vrot.slane %v2000_v14, 1  ;;  %v2097_v50 = vrot.slane %v2096_v26, 1  ;;  %v1714_v53 = vadd.f32 %v1713_v15, %v1712_v1  ;;  %v4604_v11 = vld [vmem:[#allocation3 + $0x388] sm:$0xff] }
  0x4a   :  { %v1810_v54 = vadd.f32 %v1809_v19, %v1808_v5  ;;  %v1906_v55 = vadd.f32 %v1905_v28, %v1904_v22  ;;  %v2193_v57 = vrot.slane %v2192_v40, 1  ;;  %v1188_v17 = vsel %vm1180_vm6, %v4549_v61, %v1187_v25  ;;  %v4598_v22 = vld [vmem:[#allocation3 + $0x308] sm:$0xff] }
  0x4b   :  { %v2002_v58 = vadd.f32 %v2001_v49, %v2000_v14  ;;  %v2098_v62 = vadd.f32 %v2097_v50, %v2096_v26  ;;  %v2414_v20 = vsel %vm1168_vm0, %v1618_v39, %v1522_v31  ;;  %v147_v1 = vunpack.c.h.bf16 %v4579_v27 }
  0x4c   :  { %v2194_v7 = vadd.f32 %v2193_v57, %v2192_v40  ;;  %v2415_v12 = vsel %vm1170_vm1, %v1714_v53, %v2414_v20  ;;  %v163_v25 = vunpack.c.h.bf16 %v4581_v45  ;;  %v179_v14 = vunpack.c.h.bf16 %v4583_v21 }
  0x4d   :  { %v2416_v5 = vsel %vm1172_vm2, %v1810_v54, %v2415_v12  ;;  %v195_v15 = vunpack.c.h.bf16 %v4585_v18  ;;  %v211_v40 = vunpack.c.h.bf16 %v4590_v2  ;;  %v227_v31 = vunpack.c.h.bf16 %v4593_v59 }
  0x4e   :  { %v2417_v9 = vsel %vm1174_vm3, %v1906_v55, %v2416_v5  ;;  %v243_v53 = vunpack.c.h.bf16 %v4598_v22  ;;  %v259_v55 = vunpack.c.h.bf16 %v4604_v11  ;;  %v290_v57 = vrot.slane %v147_v1, 4 }
  0x4f   :  { %v2418_v19 = vsel %vm1176_vm4, %v2002_v58, %v2417_v9  ;;  %v386_v58 = vrot.slane %v163_v25, 4  ;;  %v482_v12 = vrot.slane %v179_v14, 4  ;;  %v578_v5 = vrot.slane %v195_v15, 4 }
  0x50   :  { %v2419_v39 = vsel %vm1178_vm5, %v2098_v62, %v2418_v19  ;;  %v674_v9 = vrot.slane %v211_v40, 4  ;;  %v291_v28 = vadd.f32 %v290_v57, %v147_v1  ;;  %v770_v24 = vrot.slane %v227_v31, 4 }
  0x51   :  { %v2420_v54 = vsel %vm1180_vm6, %v2194_v7, %v2419_v39  ;;  %v387_v26 = vadd.f32 %v386_v58, %v163_v25  ;;  %v866_v62 = vrot.slane %v243_v53, 4  ;;  %v483_v49 = vadd.f32 %v482_v12, %v179_v14 }
  0x52   :  { %v2536_v20 = vadd.f32 %v2420_v54, %v1188_v17  ;;  %v579_v61 = vadd.f32 %v578_v5, %v195_v15  ;;  %v675_v50 = vadd.f32 %v674_v9, %v211_v40  ;;  %v292_v16 = vrot.slane %v291_v28, 2 }
  0x53   :  { %v388_v13 = vrot.slane %v387_v26, 2  ;;  %v771_v10 = vadd.f32 %v770_v24, %v227_v31  ;;  %v867_v7 = vadd.f32 %v866_v62, %v243_v53  ;;  %v484_v39 = vrot.slane %v483_v49, 2 }
  0x54   :  { %v2587_v19 = vpack.c.bf16 %v2536_v20, %v2536_v20  ;;  %v580_v6 = vrot.slane %v579_v61, 2  ;;  %v676_v4 = vrot.slane %v675_v50, 2  ;;  %v962_v17 = vrot.slane %v259_v55, 4 }
  0x55   :  { %v293_v54 = vadd.f32 %v292_v16, %v291_v28  ;;  %v389_v0 = vadd.f32 %v388_v13, %v387_v26  ;;  %v772_v56 = vrot.slane %v771_v10, 2  ;;  %v868_v1 = vrot.slane %v867_v7, 2  ;;  %v4619_v16 = vld [vmem:[#allocation3 + $0x48] sm:$0xff] }
  0x56   :  { %3665 = vmatprep.mubr.bf16.mxu0 %v2587_v19  ;;  %v485_v25 = vadd.f32 %v484_v39, %v483_v49  ;;  %v581_v57 = vadd.f32 %v580_v6, %v579_v61  ;;  %v677_v58 = vadd.f32 %v676_v4, %v675_v50  ;;  %v963_v20 = vadd.f32 %v962_v17, %v259_v55  ;;  %v4621_v4 = vld [vmem:[#allocation3 + $0xc8] sm:$0xff] }
  0x57   :  { %v294_v14 = vrot.slane %v293_v54, 1  ;;  %v390_v15 = vrot.slane %v389_v0, 1  ;;  %v773_v40 = vadd.f32 %v772_v56, %v771_v10  ;;  %v869_v12 = vadd.f32 %v868_v1, %v867_v7  ;;  %v4623_v61 = vld [vmem:[#allocation3 + $0x148] sm:$0xff] }
  0x58   :  { %v486_v5 = vrot.slane %v485_v25, 1  ;;  %v582_v24 = vrot.slane %v581_v57, 1  ;;  %v678_v31 = vrot.slane %v677_v58, 1  ;;  %v964_v53 = vrot.slane %v963_v20, 2  ;;  %v4627_v55 = vld [vmem:[#allocation3 + $0x1c8] sm:$0xff] }
  0x59   :  { %v295_v9 = vadd.f32 %v294_v14, %v293_v54  ;;  %v391_v62 = vadd.f32 %v390_v15, %v389_v0  ;;  %v774_v19 = vrot.slane %v773_v40, 1  ;;  %v870_v52 = vrot.slane %v869_v12, 1  ;;  %v4630_v39 = vld [vmem:[#allocation3 + $0x248] sm:$0xff] }
  0x5a   :  { %v487_v13 = vadd.f32 %v486_v5, %v485_v25  ;;  %v583_v26 = vadd.f32 %v582_v24, %v581_v57  ;;  %v679_v28 = vadd.f32 %v678_v31, %v677_v58  ;;  %v965_v6 = vadd.f32 %v964_v53, %v963_v20  ;;  %5800 = vst [vmem:[#allocation12_spill] sm:$0xff] %v4630_v39  ;;  %v4635_v25 = vld [vmem:[#allocation3 + $0x2c8] sm:$0xff] }
  0x5b   :  { %v775_v10 = vadd.f32 %v774_v19, %v773_v40  ;;  %v871_v49 = vadd.f32 %v870_v52, %v869_v12  ;;  %v1196_v50 = vsel %vm1168_vm0, %v391_v62, %v295_v9  ;;  %v1386_v54 = vunpack.c.h.bf16 %v4619_v16  ;;  %5801 = vst [vmem:[#allocation13_spill] sm:$0xff] %v4635_v25  ;;  %v4637_v57 = vld [vmem:[#allocation3 + $0x348] sm:$0xff] }
  0x5c   :  { %v966_v0 = vrot.slane %v965_v6, 1  ;;  %v1197_v7 = vsel %vm1170_vm1, %v487_v13, %v1196_v50  ;;  %5802 = vst [vmem:[#allocation14_spill] sm:$0xff] %v4637_v57  ;;  %v1402_v58 = vunpack.c.h.bf16 %v4621_v4  ;;  %v4643_v40 = vld [vmem:[#allocation3 + $0x3c8] sm:$0xff]  ;;  %v1418_v12 = vunpack.c.h.bf16 %v4623_v61 }
  0x5d   :  { %v1198_v1 = vsel %vm1172_vm2, %v583_v26, %v1197_v7  ;;  %5803 = vst [vmem:[#allocation15_spill] sm:$0xff] %v4643_v40  ;;  %v1434_v5 = vunpack.c.h.bf16 %v4627_v55  ;;  %v1450_v9 = vunpack.c.h.bf16 %v4630_v39  ;;  %v1466_v13 = vunpack.c.h.bf16 %v4635_v25 }
  0x5e   :  { %v967_v14 = vadd.f32 %v966_v0, %v965_v6  ;;  %v1199_v15 = vsel %vm1174_vm3, %v679_v28, %v1198_v1  ;;  %v1482_v26 = vunpack.c.h.bf16 %v4637_v57  ;;  %v1529_v50 = vrot.slane %v1386_v54, 4 }
  0x5f   :  { %v1200_v24 = vsel %vm1176_vm4, %v775_v10, %v1199_v15  ;;  %v1498_v10 = vunpack.c.h.bf16 %v4643_v40  ;;  %v1625_v0 = vrot.slane %v1402_v58, 4  ;;  %v1721_v7 = vrot.slane %v1418_v12, 4 }
  0x60   :  { %v1201_v62 = vsel %vm1178_vm5, %v871_v49, %v1200_v24  ;;  %v1817_v1 = vrot.slane %v1434_v5, 4  ;;  %v1913_v15 = vrot.slane %v1450_v9, 4  ;;  %v1530_v53 = vadd.f32 %v1529_v50, %v1386_v54 }
  0x61   :  { %v4656_v28 = vsel %vm1180_vm6, %v967_v14, %v1201_v62  ;;  %v2009_v49 = vrot.slane %v1466_v13, 4  ;;  %v2105_v24 = vrot.slane %v1482_v26, 4  ;;  %v2201_v19 = vrot.slane %v1498_v10, 4 }
  0x62   :  { %v1626_v31 = vadd.f32 %v1625_v0, %v1402_v58  ;;  %v1722_v20 = vadd.f32 %v1721_v7, %v1418_v12  ;;  %v1818_v52 = vadd.f32 %v1817_v1, %v1434_v5  ;;  %v1914_v17 = vadd.f32 %v1913_v15, %v1450_v9 }
  0x63   :  { %v1531_v56 = vrot.slane %v1530_v53, 2  ;;  %v2010_v14 = vadd.f32 %v2009_v49, %v1466_v13  ;;  %v2106_v62 = vadd.f32 %v2105_v24, %v1482_v26  ;;  %v2202_v51 = vadd.f32 %v2201_v19, %v1498_v10 }
  0x64   :  { %v1627_v6 = vrot.slane %v1626_v31, 2  ;;  %v1723_v48 = vrot.slane %v1722_v20, 2  ;;  %v1819_v47 = vrot.slane %v1818_v52, 2  ;;  %v1915_v44 = vrot.slane %v1914_v17, 2 }
  0x65   :  { %v1532_v43 = vadd.f32 %v1531_v56, %v1530_v53  ;;  %v2011_v38 = vrot.slane %v2010_v14, 2  ;;  %v2107_v57 = vrot.slane %v2106_v62, 2  ;;  %v2203_v40 = vrot.slane %v2202_v51, 2 }
  0x66   :  { %v1628_v54 = vadd.f32 %v1627_v6, %v1626_v31  ;;  %v1724_v50 = vadd.f32 %v1723_v48, %v1722_v20  ;;  %v1820_v25 = vadd.f32 %v1819_v47, %v1818_v52  ;;  %v1916_v39 = vadd.f32 %v1915_v44, %v1914_v17 }
  0x67   :  { %v1533_v58 = vrot.slane %v1532_v43, 1  ;;  %v2012_v12 = vadd.f32 %v2011_v38, %v2010_v14  ;;  %v2108_v5 = vadd.f32 %v2107_v57, %v2106_v62  ;;  %v2204_v9 = vadd.f32 %v2203_v40, %v2202_v51 }
  0x68   :  { %v1629_v0 = vrot.slane %v1628_v54, 1  ;;  %v1725_v13 = vrot.slane %v1724_v50, 1  ;;  %v1821_v26 = vrot.slane %v1820_v25, 1  ;;  %v1917_v19 = vrot.slane %v1916_v39, 1 }
  0x69   :  { %v1534_v10 = vadd.f32 %v1533_v58, %v1532_v43  ;;  %v2013_v7 = vrot.slane %v2012_v12, 1  ;;  %v2109_v1 = vrot.slane %v2108_v5, 1  ;;  %v2205_v15 = vrot.slane %v2204_v9, 1 }
  0x6a   :  { %v1630_v56 = vadd.f32 %v1629_v0, %v1628_v54  ;;  %v1726_v53 = vadd.f32 %v1725_v13, %v1724_v50  ;;  %v1822_v49 = vadd.f32 %v1821_v26, %v1820_v25  ;;  %v1918_v24 = vadd.f32 %v1917_v19, %v1916_v39 }
  0x6b   :  { %v2014_v31 = vadd.f32 %v2013_v7, %v2012_v12  ;;  %v2110_v48 = vadd.f32 %v2109_v1, %v2108_v5  ;;  %v2206_v47 = vadd.f32 %v2205_v15, %v2204_v9  ;;  %v5804_v44 = vunpack.c.l.bf16 %v4507_v32 }
  0x6c   :  { %v2428_v51 = vsel %vm1168_vm0, %v1630_v56, %v1534_v10  ;;  %v5805_v17 = vunpack.c.l.bf16 %v4509_v33  ;;  %v5806_v43 = vunpack.c.l.bf16 %v4511_v34  ;;  %v5807_v20 = vunpack.c.l.bf16 %v4513_v35 }
  0x6d   :  { %v272_v38 = vrot.slane %v5804_v44, 4  ;;  %v2429_v25 = vsel %vm1170_vm1, %v1726_v53, %v2428_v51  ;;  %v5808_v39 = vmov %v5804_v44  ;;  %v5809_v14 = vunpack.c.l.bf16 %v4515_v36 }
  0x6e   :  { %v368_v57 = vrot.slane %v5805_v17, 4  ;;  %v464_v52 = vrot.slane %v5806_v43, 4  ;;  %v560_v40 = vrot.slane %v5807_v20, 4  ;;  %v5810_v54 = vunpack.c.l.bf16 %v4517_v37 }
  0x6f   :  { %v273_v6 = vadd.f32 %v272_v38, %v5808_v39  ;;  %v656_v62 = vrot.slane %v5809_v14, 4  ;;  %v2430_v58 = vsel %vm1172_vm2, %v1822_v49, %v2429_v25  ;;  %v5811_v12 = vmov %v5805_v17 }
  0x70   :  { %v752_v50 = vrot.slane %v5810_v54, 4  ;;  %v369_v5 = vadd.f32 %v368_v57, %v5811_v12  ;;  %v5812_v9 = vmov %v5806_v43  ;;  %v5813_v13 = vmov %v5807_v20 }
  0x71   :  { %v465_v0 = vadd.f32 %v464_v52, %v5812_v9  ;;  %v561_v26 = vadd.f32 %v560_v40, %v5813_v13  ;;  %v2431_v32 = vsel %vm1174_vm3, %v1918_v24, %v2430_v58  ;;  %v274_v19 = vrot.slane %v273_v6, 2 }
  0x72   :  { %v5814_v10 = vmov %v5809_v14  ;;  %v5815_v1 = vmov %v5810_v54  ;;  %v2432_v56 = vsel %vm1176_vm4, %v2014_v31, %v2431_v32  ;;  %v370_v53 = vrot.slane %v369_v5, 2 }
  0x73   :  { %v657_v7 = vadd.f32 %v656_v62, %v5814_v10  ;;  %v753_v15 = vadd.f32 %v752_v50, %v5815_v1  ;;  %v466_v33 = vrot.slane %v465_v0, 2  ;;  %v562_v49 = vrot.slane %v561_v26, 2 }
  0x74   :  { %v2433_v34 = vsel %vm1178_vm5, %v2110_v48, %v2432_v56  ;;  %v275_v44 = vadd.f32 %v274_v19, %v273_v6  ;;  %v371_v24 = vadd.f32 %v370_v53, %v369_v5  ;;  %v5816_v25 = vunpack.c.l.bf16 %v4522_v41 }
  0x75   :  { %v658_v38 = vrot.slane %v657_v7, 2  ;;  %v754_v35 = vrot.slane %v753_v15, 2  ;;  %v2434_v51 = vsel %vm1180_vm6, %v2206_v47, %v2433_v34  ;;  %v467_v17 = vadd.f32 %v466_v33, %v465_v0 }
  0x76   :  { %v563_v57 = vadd.f32 %v562_v49, %v561_v26  ;;  %v2538_v36 = vadd.f32 %v2434_v51, %v4656_v28  ;;  %v276_v43 = vrot.slane %v275_v44, 1  ;;  %v372_v20 = vrot.slane %v371_v24, 1 }
  0x77   :  { %v659_v37 = vadd.f32 %v658_v38, %v657_v7  ;;  %v755_v52 = vadd.f32 %v754_v35, %v753_v15  ;;  %v468_v31 = vrot.slane %v467_v17, 1  ;;  %v848_v39 = vrot.slane %v5816_v25, 4 }
  0x78   :  { %v564_v40 = vrot.slane %v563_v57, 1  ;;  %v2589_v48 = vpack.c.bf16 %v2538_v36, %v2538_v36  ;;  %v277_v6 = vadd.f32 %v276_v43, %v275_v44  ;;  %v373_v54 = vadd.f32 %v372_v20, %v371_v24 }
  0x79   :  { %v660_v14 = vrot.slane %v659_v37, 1  ;;  %v756_v62 = vrot.slane %v755_v52, 1  ;;  %v469_v47 = vadd.f32 %v468_v31, %v467_v17  ;;  %v5817_v58 = vmov %v5816_v25 }
  0x7a   :  { %v565_v50 = vadd.f32 %v564_v40, %v563_v57  ;;  %v849_v12 = vadd.f32 %v848_v39, %v5817_v58  ;;  %3705 = vmatprep.mubr.bf16.mxu1 %v2589_v48  ;;  %v5818_v9 = vunpack.c.l.bf16 %v4524_v42  ;;  %v5819_v13 = vunpack.c.l.bf16 %v4538_v23 }
  0x7b   :  { %v661_v28 = vadd.f32 %v660_v14, %v659_v37  ;;  %v757_v5 = vadd.f32 %v756_v62, %v755_v52  ;;  %v1169_v19 = vsel %vm1168_vm0, %v373_v54, %v277_v6  ;;  %v5820_v10 = vunpack.c.l.bf16 %v4540_v29 }
  0x7c   :  { %v944_v0 = vrot.slane %v5818_v9, 4  ;;  %v1511_v26 = vrot.slane %v5819_v13, 4  ;;  %v850_v32 = vrot.slane %v849_v12, 2  ;;  %v5821_v1 = vunpack.c.l.bf16 %v4542_v30 }
  0x7d   :  { %v1607_v7 = vrot.slane %v5820_v10, 4  ;;  %v5822_v41 = vmov %v5818_v9  ;;  %v1171_v53 = vsel %vm1170_vm1, %v469_v47, %v1169_v19  ;;  %v5823_v33 = vmov %v5819_v13 }
  0x7e   :  { %v1703_v15 = vrot.slane %v5821_v1, 4  ;;  %v945_v56 = vadd.f32 %v944_v0, %v5822_v41  ;;  %v1512_v49 = vadd.f32 %v1511_v26, %v5823_v33  ;;  %v5824_v34 = vunpack.c.l.bf16 %v4544_v46 }
  0x7f   :  { %v851_v38 = vadd.f32 %v850_v32, %v849_v12  ;;  %v1173_v35 = vsel %vm1172_vm2, %v565_v50, %v1171_v53  ;;  %v5825_v51 = vmov %v5820_v10  ;;  %v5826_v17 = vmov %v5821_v1 }
  0x80   :  { %v1799_v44 = vrot.slane %v5824_v34, 4  ;;  %v1608_v24 = vadd.f32 %v1607_v7, %v5825_v51  ;;  %v1704_v57 = vadd.f32 %v1703_v15, %v5826_v17  ;;  %v946_v36 = vrot.slane %v945_v56, 2 }
  0x81   :  { %v1175_v42 = vsel %vm1174_vm3, %v661_v28, %v1173_v35  ;;  %v1513_v43 = vrot.slane %v1512_v49, 2  ;;  %v5827_v37 = vmov %v5824_v34  ;;  %v852_v52 = vrot.slane %v851_v38, 1 }
  0x82   :  { %v1800_v23 = vadd.f32 %v1799_v44, %v5827_v37  ;;  %v1177_v20 = vsel %vm1176_vm4, %v757_v5, %v1175_v42  ;;  %v1609_v31 = vrot.slane %v1608_v24, 2  ;;  %v1705_v40 = vrot.slane %v1704_v57, 2 }
  0x83   :  { %v947_v25 = vadd.f32 %v946_v36, %v945_v56  ;;  %v1514_v39 = vadd.f32 %v1513_v43, %v1512_v49  ;;  %v5828_v29 = vunpack.c.l.bf16 %v4547_v60  ;;  %v853_v30 = vadd.f32 %v852_v52, %v851_v38 }
  0x84   :  { %v1801_v48 = vrot.slane %v1800_v23, 2  ;;  %v1610_v14 = vadd.f32 %v1609_v31, %v1608_v24  ;;  %v1706_v62 = vadd.f32 %v1705_v40, %v1704_v57  ;;  %v5829_v54 = vunpack.c.l.bf16 %v4552_v63 }
  0x85   :  { %v1895_v6 = vrot.slane %v5828_v29, 4  ;;  %v948_v50 = vrot.slane %v947_v25, 1  ;;  %v1515_v46 = vrot.slane %v1514_v39, 1  ;;  %v5830_v12 = vmov %v5828_v29 }
  0x86   :  { %v1991_v47 = vrot.slane %v5829_v54, 4  ;;  %v1802_v58 = vadd.f32 %v1801_v48, %v1800_v23  ;;  %v1179_v5 = vsel %vm1178_vm5, %v853_v30, %v1177_v20  ;;  %v1611_v9 = vrot.slane %v1610_v14, 1 }
  0x87   :  { %v1896_v28 = vadd.f32 %v1895_v6, %v5830_v12  ;;  %v1707_v0 = vrot.slane %v1706_v62, 1  ;;  %v5831_v13 = vmov %v5829_v54  ;;  %v949_v32 = vadd.f32 %v948_v50, %v947_v25 }
  0x88   :  { %v1992_v26 = vadd.f32 %v1991_v47, %v5831_v13  ;;  %v1516_v19 = vadd.f32 %v1515_v46, %v1514_v39  ;;  %v1803_v10 = vrot.slane %v1802_v58, 1  ;;  %v1612_v1 = vadd.f32 %v1611_v9, %v1610_v14 }
  0x89   :  { %v1897_v7 = vrot.slane %v1896_v28, 2  ;;  %v1708_v15 = vadd.f32 %v1707_v0, %v1706_v62  ;;  %v5832_v56 = vunpack.c.l.bf16 %v4557_v3  ;;  %v1181_v60 = vsel %vm1180_vm6, %v949_v32, %v1179_v5 }
  0x8a   :  { %v1993_v41 = vrot.slane %v1992_v26, 2  ;;  %v1804_v33 = vadd.f32 %v1803_v10, %v1802_v58  ;;  %v5833_v34 = vunpack.c.l.bf16 %v4563_v8  ;;  %v2407_v51 = vsel %vm1168_vm0, %v1612_v1, %v1516_v19 }
  0x8b   :  { %v2087_v53 = vrot.slane %v5832_v56, 4  ;;  %v1898_v49 = vadd.f32 %v1897_v7, %v1896_v28  ;;  %v5834_v63 = vmov %v5832_v56  ;;  %v5835_v24 = vunpack.c.l.bf16 %v4579_v27 }
  0x8c   :  { %v2183_v44 = vrot.slane %v5833_v34, 4  ;;  %v1994_v38 = vadd.f32 %v1993_v41, %v1992_v26  ;;  %v5836_v36 = vmov %v5833_v34  ;;  %v2408_v43 = vsel %vm1170_vm1, %v1708_v15, %v2407_v51 }
  0x8d   :  { %v2088_v35 = vadd.f32 %v2087_v53, %v5834_v63  ;;  %v284_v17 = vrot.slane %v5835_v24, 4  ;;  %v1899_v57 = vrot.slane %v1898_v49, 1  ;;  %v5837_v37 = vunpack.c.l.bf16 %v4581_v45 }
  0x8e   :  { %v2184_v42 = vadd.f32 %v2183_v44, %v5836_v36  ;;  %v1995_v52 = vrot.slane %v1994_v38, 1  ;;  %v2409_v31 = vsel %vm1172_vm2, %v1804_v33, %v2408_v43  ;;  %v5838_v3 = vmov %v5835_v24 }
  0x8f   :  { %v380_v23 = vrot.slane %v5837_v37, 4  ;;  %v2089_v20 = vrot.slane %v2088_v35, 2  ;;  %v285_v40 = vadd.f32 %v284_v17, %v5838_v3  ;;  %v1900_v25 = vadd.f32 %v1899_v57, %v1898_v49 }
  0x90   :  { %v2185_v39 = vrot.slane %v2184_v42, 2  ;;  %v5839_v48 = vmov %v5837_v37  ;;  %v5840_v8 = vunpack.c.l.bf16 %v4583_v21  ;;  %v1996_v30 = vadd.f32 %v1995_v52, %v1994_v38 }
  0x91   :  { %v381_v29 = vadd.f32 %v380_v23, %v5839_v48  ;;  %v2090_v14 = vadd.f32 %v2089_v20, %v2088_v35  ;;  %v286_v62 = vrot.slane %v285_v40, 2  ;;  %v5841_v54 = vunpack.c.l.bf16 %v4585_v18 }
  0x92   :  { %v476_v6 = vrot.slane %v5840_v8, 4  ;;  %v2186_v50 = vadd.f32 %v2185_v39, %v2184_v42  ;;  %v2410_v46 = vsel %vm1174_vm3, %v1900_v25, %v2409_v31  ;;  %v5842_v27 = vmov %v5840_v8 }
  0x93   :  { %v572_v47 = vrot.slane %v5841_v54, 4  ;;  %v382_v58 = vrot.slane %v381_v29, 2  ;;  %v2091_v28 = vrot.slane %v2090_v14, 1  ;;  %v2411_v45 = vsel %vm1176_vm4, %v1996_v30, %v2410_v46 }
  0x94   :  { %v477_v12 = vadd.f32 %v476_v6, %v5842_v27  ;;  %v287_v5 = vadd.f32 %v286_v62, %v285_v40  ;;  %v5843_v9 = vmov %v5841_v54  ;;  %v2187_v13 = vrot.slane %v2186_v50, 1  ;;  %v4317_v40 = vld [vmem:[#allocation6 + $0x170] sm:$0xff]  }
  0x95   :  { %v573_v0 = vadd.f32 %v572_v47, %v5843_v9  ;;  %v383_v26 = vadd.f32 %v382_v58, %v381_v29  ;;  %v5844_v19 = vunpack.c.l.bf16 %v4590_v2  ;;  %v2092_v7 = vadd.f32 %v2091_v28, %v2090_v14  ;;  %v4315_v2 = vld [vmem:[#allocation6 + $0x138] sm:$0xff]  }
  0x96   :  { %v478_v32 = vrot.slane %v477_v12, 2  ;;  %v288_v1 = vrot.slane %v287_v5, 1  ;;  %v5845_v41 = vunpack.c.l.bf16 %v4593_v59  ;;  %v2188_v56 = vadd.f32 %v2187_v13, %v2186_v50 }
  0x97   :  { %v668_v10 = vrot.slane %v5844_v19, 4  ;;  %v574_v15 = vrot.slane %v573_v0, 2  ;;  %v384_v53 = vrot.slane %v383_v26, 1  ;;  %v5846_v49 = vmov %v5844_v19 }
  0x98   :  { %v764_v21 = vrot.slane %v5845_v41, 4  ;;  %v479_v33 = vadd.f32 %v478_v32, %v477_v12  ;;  %v2412_v18 = vsel %vm1178_vm5, %v2092_v7, %v2411_v45  ;;  %v289_v44 = vadd.f32 %v288_v1, %v287_v5  ;;  %v4319_v12 = vld [vmem:[#allocation6 + $0x130] sm:$0xff]   ;;  %v4321_v7 = vld [vmem:[#allocation6 + $0x168] sm:$0xff]  }
  0x99   :  { %v669_v34 = vadd.f32 %v668_v10, %v5846_v49  ;;  %v575_v38 = vadd.f32 %v574_v15, %v573_v0  ;;  %v5847_v63 = vmov %v5845_v41  ;;  %v2413_v51 = vsel %vm1180_vm6, %v2188_v56, %v2412_v18  ;;  %v4323_v56 = vld [vmem:[#allocation6 + $0x128] sm:$0xff]  }
  0x9a   :  { %v765_v35 = vadd.f32 %v764_v21, %v5847_v63  ;;  %v385_v24 = vadd.f32 %v384_v53, %v383_v26  ;;  %v480_v17 = vrot.slane %v479_v33, 1  ;;  %v2535_v36 = vadd.f32 %v2413_v51, %v1181_v60  ;;  %v5860_v63 = vld [vmem:[#allocation12_spill] sm:$0xff] }
  0x9b   :  { %v670_v57 = vrot.slane %v669_v34, 2  ;;  %v576_v42 = vrot.slane %v575_v38, 1  ;;  %v5848_v37 = vunpack.c.l.bf16 %v4598_v22  ;;  %v5849_v31 = vunpack.c.l.bf16 %v4604_v11 }
  0x9c   :  { %v766_v43 = vrot.slane %v765_v35, 2  ;;  %v481_v52 = vadd.f32 %v480_v17, %v479_v33  ;;  %v1189_v59 = vsel %vm1168_vm0, %v385_v24, %v289_v44  ;;  %v2586_v25 = vpack.c.bf16 %v2535_v36, %v2535_v36  ;;  %v4325_v24 = vld [vmem:[#allocation6 + $0x160] sm:$0xff]   ;;  %v5862_v36 = vld [vmem:[#allocation13_spill] sm:$0xff] }
  0x9d   :  { %v860_v23 = vrot.slane %v5848_v37, 4  ;;  %v671_v20 = vadd.f32 %v670_v57, %v669_v34  ;;  %v956_v3 = vrot.slane %v5849_v31, 4  ;;  %v577_v39 = vadd.f32 %v576_v42, %v575_v38 }
  0x9e   :  { %v767_v48 = vadd.f32 %v766_v43, %v765_v35  ;;  %v5850_v29 = vmov %v5848_v37  ;;  %v5851_v6 = vmov %v5849_v31  ;;  %v1190_v14 = vsel %vm1170_vm1, %v481_v52, %v1189_v59  ;;  %3666 = vmatmul.mubr.bf16.vlgmr.msra.gmra.mxu0 %v2586_v25  ;;  %v5864_v37 = vld [vmem:[#allocation15_spill] sm:$0xff] }
  0x9f   :  { %v861_v60 = vadd.f32 %v860_v23, %v5850_v29  ;;  %v672_v8 = vrot.slane %v671_v20, 1  ;;  %v957_v30 = vadd.f32 %v956_v3, %v5851_v6  ;;  %v5852_v62 = vunpack.c.l.bf16 %v4619_v16  ;;  %4144 = vmatpush3.bf16.msra.mxu0 %v4315_v2  ;;  %v4327_v31 = vld [vmem:[#allocation6 + $0x120] sm:$0xff]  }
  0xa0   :  { %v768_v47 = vrot.slane %v767_v48, 1  ;;  %v1191_v46 = vsel %vm1172_vm2, %v577_v39, %v1190_v14  ;;  %v5853_v58 = vunpack.c.l.bf16 %v4621_v4  ;;  %v5855_v5 = vunpack.c.l.bf16 %v4623_v61  ;;  %4145 = vmatprep.subr.bf16.mxu0 %v4317_v40 }
  0xa1   :  { %v1523_v54 = vrot.slane %v5852_v62, 4  ;;  %v862_v50 = vrot.slane %v861_v60, 2  ;;  %v673_v22 = vadd.f32 %v672_v8, %v671_v20  ;;  %v958_v28 = vrot.slane %v957_v30, 2 }
  0xa2   :  { %v1619_v27 = vrot.slane %v5853_v58, 4  ;;  %v5854_v45 = vmov %v5852_v62  ;;  %v1715_v9 = vrot.slane %v5855_v5, 4  ;;  %v769_v0 = vadd.f32 %v768_v47, %v767_v48  ;;  %v4329_v48 = vld [vmem:[#allocation6 + $0x158] sm:$0xff]  }
  0xa3   :  { %v1524_v11 = vadd.f32 %v1523_v54, %v5854_v45  ;;  %v863_v13 = vadd.f32 %v862_v50, %v861_v60  ;;  %v5856_v26 = vmov %v5853_v58  ;;  %v5857_v19 = vunpack.c.l.bf16 %v4627_v55  ;;  %4146 = vmatpush3.bf16.msra.mxu0 %v4319_v12  ;;  %v5867_v47 = vld [vmem:[#allocation14_spill] sm:$0xff]  ;;  %v4813_v58 = vld [vmem:[#allocation3 + $0x90] sm:$0xff] }
  0xa4   :  { %v1620_v32 = vadd.f32 %v1619_v27, %v5856_v26  ;;  %v959_v1 = vadd.f32 %v958_v28, %v957_v30  ;;  %v1192_v15 = vsel %vm1174_vm3, %v673_v22, %v1191_v46  ;;  %v5858_v16 = vmov %v5855_v5  ;;  %4147 = vmatprep.subr.bf16.mxu0 %v4321_v7  ;;  %v4809_v30 = vld [vmem:[#allocation3 + $0x10] sm:$0xff]  ;;  %v4331_v28 = vld [vmem:[#allocation6 + $0x118] sm:$0xff]  }
  0xa5   :  { %v1811_v10 = vrot.slane %v5857_v19, 4  ;;  %v1525_v41 = vrot.slane %v1524_v11, 2  ;;  %v1716_v21 = vadd.f32 %v1715_v9, %v5858_v16  ;;  %v864_v53 = vrot.slane %v863_v13, 1  ;;  %v4815_v45 = vld [vmem:[#allocation3 + $0x110] sm:$0xff] }
  0xa6   :  { %v1193_v33 = vsel %vm1176_vm4, %v769_v0, %v1192_v15  ;;  %v1621_v49 = vrot.slane %v1620_v32, 2  ;;  %v5859_v4 = vmov %v5857_v19  ;;  %v960_v18 = vrot.slane %v959_v1, 1  ;;  %v4333_v26 = vld [vmem:[#allocation6 + $0x150] sm:$0xff]  }
  0xa7   :  { %v1812_v34 = vadd.f32 %v1811_v10, %v5859_v4  ;;  %v1526_v44 = vadd.f32 %v1525_v41, %v1524_v11  ;;  %v1717_v38 = vrot.slane %v1716_v21, 2  ;;  %v5861_v35 = vunpack.c.l.bf16 %v5860_v63  ;;  %4148 = vmatpush3.bf16.msra.mxu0 %v4323_v56 }
  0xa8   :  { %v865_v17 = vadd.f32 %v864_v53, %v863_v13  ;;  %v1622_v57 = vadd.f32 %v1621_v49, %v1620_v32  ;;  %v5863_v42 = vunpack.c.l.bf16 %v5862_v36  ;;  %v1497_v23 = vunpack.c.l.bf16 %v5864_v37  ;;  %4149 = vmatprep.subr.bf16.mxu0 %v4325_v24  ;;  %v4335_v24 = vld [vmem:[#allocation6 + $0x110] sm:$0xff]  }
  0xa9   :  { %v1907_v51 = vrot.slane %v5861_v35, 4  ;;  %v1813_v61 = vrot.slane %v1812_v34, 2  ;;  %v1527_v2 = vrot.slane %v1526_v44, 1  ;;  %v1718_v55 = vadd.f32 %v1717_v38, %v1716_v21 }
  0xaa   :  { %v2003_v43 = vrot.slane %v5863_v42, 4  ;;  %v5865_v52 = vmov %v5861_v35  ;;  %v961_v3 = vadd.f32 %v960_v18, %v959_v1  ;;  %v1623_v59 = vrot.slane %v1622_v57, 1  ;;  %v4822_v1 = vld [vmem:[#allocation3 + $0x190] sm:$0xff] }
  0xab   :  { %v1908_v20 = vadd.f32 %v1907_v51, %v5865_v52  ;;  %v1814_v40 = vadd.f32 %v1813_v61, %v1812_v34  ;;  %v5866_v25 = vmov %v5863_v42  ;;  %v1194_v29 = vsel %vm1178_vm5, %v865_v17, %v1193_v33  ;;  %4150 = vmatpush3.bf16.msra.mxu0 %v4327_v31  ;;  %v4826_v33 = vld [vmem:[#allocation3 + $0x210] sm:$0xff] }
  0xac   :  { %v2004_v39 = vadd.f32 %v2003_v43, %v5866_v25  ;;  %v1528_v60 = vadd.f32 %v1527_v2, %v1526_v44  ;;  %v1719_v8 = vrot.slane %v1718_v55, 1  ;;  %v1624_v14 = vadd.f32 %v1623_v59, %v1622_v57  ;;  %4151 = vmatprep.subr.bf16.mxu0 %v4329_v48  ;;  %v4830_v44 = vld [vmem:[#allocation3 + $0x290] sm:$0xff]  ;;  %v4337_v43 = vld [vmem:[#allocation6 + $0x148] sm:$0xff]  }
  0xad   :  { %v1909_v6 = vrot.slane %v1908_v20, 2  ;;  %v1815_v62 = vrot.slane %v1814_v40, 1  ;;  %v5868_v50 = vunpack.c.l.bf16 %v5867_v47  ;;  %v2195_v22 = vrot.slane %v1497_v23, 4  ;;  %v4835_v17 = vld [vmem:[#allocation3 + $0x310] sm:$0xff]  ;;  %v4339_v48 = vld [vmem:[#allocation6 + $0x108] sm:$0xff]  }
  0xae   :  { %v2005_v54 = vrot.slane %v2004_v39, 2  ;;  %v1720_v27 = vadd.f32 %v1719_v8, %v1718_v55  ;;  %v2421_v13 = vsel %vm1168_vm0, %v1624_v14, %v1528_v60  ;;  %v1195_v32 = vsel %vm1180_vm6, %v961_v3, %v1194_v29  ;;  %v4837_v57 = vld [vmem:[#allocation3 + $0x390] sm:$0xff]  ;;  %v4341_v14 = vld [vmem:[#allocation6 + $0x140] sm:$0xff]  }
  0xaf   :  { %v2099_v46 = vrot.slane %v5868_v50, 4  ;;  %v1910_v12 = vadd.f32 %v1909_v6, %v1908_v20  ;;  %v1816_v11 = vadd.f32 %v1815_v62, %v1814_v40  ;;  %v5869_v9 = vmov %v5868_v50  ;;  %4152 = vmatpush3.bf16.msra.mxu0 %v4331_v28 }
  0xb0   :  { %v2006_v5 = vadd.f32 %v2005_v54, %v2004_v39  ;;  %v2196_v10 = vadd.f32 %v2195_v22, %v1497_v23  ;;  %v2422_v7 = vsel %vm1170_vm1, %v1720_v27, %v2421_v13  ;;  %v149_v49 = vunpack.c.h.bf16 %v4809_v30  ;;  %4153 = vmatprep.subr.bf16.mxu0 %v4333_v26 }
  0xb1   :  { %v2100_v0 = vadd.f32 %v2099_v46, %v5869_v9  ;;  %v1911_v19 = vrot.slane %v1910_v12, 1  ;;  %v2423_v16 = vsel %vm1172_vm2, %v1816_v11, %v2422_v7  ;;  %v165_v38 = vunpack.c.h.bf16 %v4813_v58  ;;  %v4316_v9 = vld [vmem:[#allocation6 + $0x1b8] sm:$0xff]  }
  0xb2   :  { %v2007_v15 = vrot.slane %v2006_v5, 1  ;;  %v2197_v53 = vrot.slane %v2196_v10, 2  ;;  %v181_v61 = vunpack.c.h.bf16 %v4815_v45  ;;  %v197_v36 = vunpack.c.h.bf16 %v4822_v1 }
  0xb3   :  { %v2101_v41 = vrot.slane %v2100_v0, 2  ;;  %v1912_v56 = vadd.f32 %v1911_v19, %v1910_v12  ;;  %v213_v2 = vunpack.c.h.bf16 %v4826_v33  ;;  %v229_v31 = vunpack.c.h.bf16 %v4830_v44  ;;  %4154 = vmatpush3.bf16.msra.mxu0 %v4335_v24 }
  0xb4   :  { %v2008_v34 = vadd.f32 %v2007_v15, %v2006_v5  ;;  %v2198_v35 = vadd.f32 %v2197_v53, %v2196_v10  ;;  %v245_v59 = vunpack.c.h.bf16 %v4835_v17  ;;  %v261_v40 = vunpack.c.h.bf16 %v4837_v57  ;;  %4155 = vmatprep.subr.bf16.mxu0 %v4337_v43  ;;  %v4318_v15 = vld [vmem:[#allocation6 + $0x1f0] sm:$0xff]   ;;  %v4345_v53 = vld [vmem:[#allocation6 + $0x278] sm:$0xff]  }
  0xb5   :  { %v2102_v18 = vadd.f32 %v2101_v41, %v2100_v0  ;;  %v2424_v51 = vsel %vm1174_vm3, %v1912_v56, %v2423_v16  ;;  %v302_v25 = vrot.slane %v149_v49, 4  ;;  %v398_v29 = vrot.slane %v165_v38, 4  ;;  %v4343_v0 = vld [vmem:[#allocation6 + $0x100] sm:$0xff]  }
  0xb6   :  { %v2199_v55 = vrot.slane %v2198_v35, 1  ;;  %v2425_v52 = vsel %vm1176_vm4, %v2008_v34, %v2424_v51  ;;  %v494_v60 = vrot.slane %v181_v61, 4  ;;  %v590_v8 = vrot.slane %v197_v36, 4 }
  0xb7   :  { %v2103_v42 = vrot.slane %v2102_v18, 1  ;;  %v303_v62 = vadd.f32 %v302_v25, %v149_v49  ;;  %v686_v54 = vrot.slane %v213_v2, 4  ;;  %v782_v47 = vrot.slane %v229_v31, 4  ;;  %4156 = vmatpush3.bf16.msra.mxu0 %v4339_v48 }
  0xb8   :  { %v2200_v39 = vadd.f32 %v2199_v55, %v2198_v35  ;;  %v399_v46 = vadd.f32 %v398_v29, %v165_v38  ;;  %v495_v27 = vadd.f32 %v494_v60, %v181_v61  ;;  %v591_v12 = vadd.f32 %v590_v8, %v197_v36  ;;  %4157 = vmatprep.subr.bf16.mxu0 %v4341_v14  ;;  %v4320_v61 = vld [vmem:[#allocation6 + $0x1b0] sm:$0xff]   ;;  %v4322_v55 = vld [vmem:[#allocation6 + $0x1e8] sm:$0xff]  }
  0xb9   :  { %v2104_v3 = vadd.f32 %v2103_v42, %v2102_v18  ;;  %v304_v28 = vrot.slane %v303_v62, 2  ;;  %v687_v11 = vadd.f32 %v686_v54, %v213_v2  ;;  %v783_v5 = vadd.f32 %v782_v47, %v229_v31  ;;  %v4853_v8 = vld [vmem:[#allocation3 + $0xd0] sm:$0xff] }
  0xba   :  { %v400_v13 = vrot.slane %v399_v46, 2  ;;  %v496_v26 = vrot.slane %v495_v27, 2  ;;  %v592_v19 = vrot.slane %v591_v12, 2  ;;  %v878_v10 = vrot.slane %v245_v59, 4  ;;  %v4857_v47 = vld [vmem:[#allocation3 + $0x150] sm:$0xff] }
  0xbb   :  { %v2426_v6 = vsel %vm1178_vm5, %v2104_v3, %v2425_v52  ;;  %v305_v41 = vadd.f32 %v304_v28, %v303_v62  ;;  %v688_v16 = vrot.slane %v687_v11, 2  ;;  %v784_v56 = vrot.slane %v783_v5, 2  ;;  %4158 = vmatpush3.bf16.msra.mxu0 %v4343_v0  ;;  %v4326_v28 = vld [vmem:[#allocation6 + $0x1e0] sm:$0xff]   ;;  %v4866_v0 = vld [vmem:[#allocation3 + $0x2d0] sm:$0xff] }
  0xbc   :  { %v2427_v50 = vsel %vm1180_vm6, %v2200_v39, %v2426_v6  ;;  %v401_v49 = vadd.f32 %v400_v13, %v399_v46  ;;  %v497_v34 = vadd.f32 %v496_v26, %v495_v27  ;;  %v879_v18 = vadd.f32 %v878_v10, %v245_v59  ;;  %v4851_v39 = vld [vmem:[#allocation3 + $0x50] sm:$0xff]  ;;  %4187 = vmatprep.subr.bf16.mxu0 %v4345_v53 }
  0xbd   :  { %v2537_v22 = vadd.f32 %v2427_v50, %v1195_v32  ;;  %v593_v32 = vadd.f32 %v592_v19, %v591_v12  ;;  %v306_v38 = vrot.slane %v305_v41, 1  ;;  %v689_v35 = vadd.f32 %v688_v16, %v687_v11  ;;  %v4324_v50 = vld [vmem:[#allocation6 + $0x1a8] sm:$0xff]   ;;  %v4860_v12 = vld [vmem:[#allocation3 + $0x1d0] sm:$0xff] }
  0xbe   :  { %v785_v51 = vadd.f32 %v784_v56, %v783_v5  ;;  %v974_v24 = vrot.slane %v261_v40, 4  ;;  %v402_v36 = vrot.slane %v401_v49, 1  ;;  %v498_v42 = vrot.slane %v497_v34, 1  ;;  %v4876_v53 = vld [vmem:[#allocation3 + $0x3d0] sm:$0xff] }
  0xbf   :  { %v2588_v7 = vpack.c.bf16 %v2537_v22, %v2537_v22  ;;  %v594_v43 = vrot.slane %v593_v32, 1  ;;  %v880_v2 = vrot.slane %v879_v18, 2  ;;  %v307_v52 = vadd.f32 %v306_v38, %v305_v41 }
  0xc0   :  { %v690_v31 = vrot.slane %v689_v35, 1  ;;  %v786_v3 = vrot.slane %v785_v51, 1  ;;  %v975_v25 = vadd.f32 %v974_v24, %v261_v40  ;;  %v403_v59 = vadd.f32 %v402_v36, %v401_v49  ;;  %v4330_v24 = vld [vmem:[#allocation6 + $0x1d8] sm:$0xff]  }
  0xc1   :  { %3706 = vmatmul.mubr.bf16.vlgmr.msra.gmra.mxu1 %v2588_v7  ;;  %v499_v48 = vadd.f32 %v498_v42, %v497_v34  ;;  %v595_v29 = vadd.f32 %v594_v43, %v593_v32  ;;  %v881_v60 = vadd.f32 %v880_v2, %v879_v18  ;;  %v1388_v13 = vunpack.c.h.bf16 %v4851_v39  ;;  %v4871_v7 = vld [vmem:[#allocation3 + $0x350] sm:$0xff]  ;;  %v4328_v32 = vld [vmem:[#allocation6 + $0x1a0] sm:$0xff]  }
  0xc2   :  { %4166 = vmatpush3.bf16.msra.mxu1 %v4316_v9  ;;  %v691_v62 = vadd.f32 %v690_v31, %v689_v35  ;;  %v976_v54 = vrot.slane %v975_v25, 2  ;;  %v787_v40 = vadd.f32 %v786_v3, %v785_v51  ;;  %v1210_v27 = vsel %vm1168_vm0, %v403_v59, %v307_v52  ;;  %v4864_v9 = vld [vmem:[#allocation3 + $0x250] sm:$0xff] }
  0xc3   :  { %4167 = vmatprep.subr.bf16.mxu1 %v4318_v15  ;;  %v882_v46 = vrot.slane %v881_v60, 1  ;;  %v1211_v5 = vsel %vm1170_vm1, %v499_v48, %v1210_v27  ;;  %v1404_v15 = vunpack.c.h.bf16 %v4853_v8  ;;  %v1420_v49 = vunpack.c.h.bf16 %v4857_v47 }
  0xc4   :  { %v977_v11 = vadd.f32 %v976_v54, %v975_v25  ;;  %v1212_v10 = vsel %vm1172_vm2, %v595_v29, %v1211_v5  ;;  %v1436_v34 = vunpack.c.h.bf16 %v4860_v12  ;;  %v1452_v35 = vunpack.c.h.bf16 %v4864_v9  ;;  %v4332_v29 = vld [vmem:[#allocation6 + $0x198] sm:$0xff]  }
  0xc5   :  { %v883_v19 = vadd.f32 %v882_v46, %v881_v60  ;;  %v1213_v56 = vsel %vm1174_vm3, %v691_v62, %v1212_v10  ;;  %v1468_v51 = vunpack.c.h.bf16 %v4866_v0  ;;  %v1484_v43 = vunpack.c.h.bf16 %v4871_v7 }
  0xc6   :  { %4168 = vmatpush3.bf16.msra.mxu1 %v4320_v61  ;;  %v978_v16 = vrot.slane %v977_v11, 1  ;;  %v1214_v18 = vsel %vm1176_vm4, %v787_v40, %v1213_v56  ;;  %v1541_v52 = vrot.slane %v1388_v13, 4  ;;  %v1637_v31 = vrot.slane %v1404_v15, 4  ;;  %v4334_v40 = vld [vmem:[#allocation6 + $0x1d0] sm:$0xff]  }
  0xc7   :  { %4169 = vmatprep.subr.bf16.mxu1 %v4322_v55  ;;  %v4890_v2 = vsel %vm1178_vm5, %v883_v19, %v1214_v18  ;;  %v1500_v55 = vunpack.c.h.bf16 %v4876_v53  ;;  %v1733_v25 = vrot.slane %v1420_v49, 4  ;;  %v1829_v59 = vrot.slane %v1436_v34, 4 }
  0xc8   :  { %v4884_v61 = vadd.f32 %v978_v16, %v977_v11  ;;  %v1925_v48 = vrot.slane %v1452_v35, 4  ;;  %v1542_v60 = vadd.f32 %v1541_v52, %v1388_v13  ;;  %v1638_v62 = vadd.f32 %v1637_v31, %v1404_v15 }
  0xc9   :  { %v2021_v54 = vrot.slane %v1468_v51, 4  ;;  %v1734_v46 = vadd.f32 %v1733_v25, %v1420_v49  ;;  %v1830_v27 = vadd.f32 %v1829_v59, %v1436_v34  ;;  %v2213_v11 = vrot.slane %v1500_v55, 4 }
  0xca   :  { %4170 = vmatpush3.bf16.msra.mxu1 %v4324_v50  ;;  %v2117_v50 = vrot.slane %v1484_v43, 4  ;;  %v1543_v5 = vrot.slane %v1542_v60, 2  ;;  %v1639_v19 = vrot.slane %v1638_v62, 2 }
  0xcb   :  { %4171 = vmatprep.subr.bf16.mxu1 %v4326_v28  ;;  %v1926_v28 = vadd.f32 %v1925_v48, %v1452_v35  ;;  %v2022_v10 = vadd.f32 %v2021_v54, %v1468_v51  ;;  %v1735_v56 = vrot.slane %v1734_v46, 2  ;;  %v1831_v18 = vrot.slane %v1830_v27, 2 }
  0xcc   :  { %v2118_v16 = vadd.f32 %v2117_v50, %v1484_v43  ;;  %v2214_v42 = vadd.f32 %v2213_v11, %v1500_v55  ;;  %v1544_v13 = vadd.f32 %v1543_v5, %v1542_v60  ;;  %v1640_v15 = vadd.f32 %v1639_v19, %v1638_v62 }
  0xcd   :  { %v1927_v3 = vrot.slane %v1926_v28, 2  ;;  %v2023_v52 = vrot.slane %v2022_v10, 2  ;;  %v1736_v49 = vadd.f32 %v1735_v56, %v1734_v46  ;;  %v1832_v34 = vadd.f32 %v1831_v18, %v1830_v27  ;;  %v4342_v46 = vld [vmem:[#allocation6 + $0x1c0] sm:$0xff]  }
  0xce   :  { %4172 = vmatpush3.bf16.msra.mxu1 %v4328_v32  ;;  %v4336_v32 = vld [vmem:[#allocation6 + $0x190] sm:$0xff]   ;;  %v2119_v31 = vrot.slane %v2118_v16, 2  ;;  %v2215_v25 = vrot.slane %v2214_v42, 2  ;;  %v1545_v59 = vrot.slane %v1544_v13, 1  ;;  %v1641_v48 = vrot.slane %v1640_v15, 1 }
  0xcf   :  { %4173 = vmatprep.subr.bf16.mxu1 %v4330_v24  ;;  %v4338_v24 = vld [vmem:[#allocation6 + $0x1c8] sm:$0xff]   ;;  %v1928_v35 = vadd.f32 %v1927_v3, %v1926_v28  ;;  %v2024_v51 = vadd.f32 %v2023_v52, %v2022_v10  ;;  %v1737_v54 = vrot.slane %v1736_v49, 1  ;;  %v1833_v50 = vrot.slane %v1832_v34, 1  ;;  %v4896_v10 = vld [vmem:[#allocation3 + $0x98] sm:$0xff] }
  0xd0   :  { %v2120_v43 = vadd.f32 %v2119_v31, %v2118_v16  ;;  %v2216_v55 = vadd.f32 %v2215_v25, %v2214_v42  ;;  %v1546_v60 = vadd.f32 %v1545_v59, %v1544_v13  ;;  %v1642_v62 = vadd.f32 %v1641_v48, %v1640_v15  ;;  %v4905_v13 = vld [vmem:[#allocation3 + $0x198] sm:$0xff] }
  0xd1   :  { %v1929_v36 = vrot.slane %v1928_v35, 1  ;;  %v2025_v11 = vrot.slane %v2024_v51, 1  ;;  %v1738_v3 = vadd.f32 %v1737_v54, %v1736_v49  ;;  %v1834_v27 = vadd.f32 %v1833_v50, %v1832_v34  ;;  %v4908_v31 = vld [vmem:[#allocation3 + $0x218] sm:$0xff] }
  0xd2   :  { %4174 = vmatpush3.bf16.msra.mxu1 %v4332_v29  ;;  %v4340_v29 = vld [vmem:[#allocation6 + $0x188] sm:$0xff]   ;;  %v2121_v5 = vrot.slane %v2120_v43, 1  ;;  %v2217_v19 = vrot.slane %v2216_v55, 1  ;;  %v1216_v42 = vsel %vm1180_vm6, %v4884_v61, %v4890_v2  ;;  %v2442_v18 = vsel %vm1168_vm0, %v1642_v62, %v1546_v60  ;;  %v4344_v61 = vld [vmem:[#allocation6 + $0x180] sm:$0xff]   ;;  %v4914_v34 = vld [vmem:[#allocation3 + $0x318] sm:$0xff] }
  0xd3   :  { %4175 = vmatprep.subr.bf16.mxu1 %v4334_v40  ;;  %v4894_v40 = vld [vmem:[#allocation3 + $0x18] sm:$0xff]  ;;  %v1930_v28 = vadd.f32 %v1929_v36, %v1928_v35  ;;  %v2026_v56 = vadd.f32 %v2025_v11, %v2024_v51  ;;  %v2443_v36 = vsel %vm1170_vm1, %v1738_v3, %v2442_v18  ;;  %v167_v59 = vunpack.c.h.bf16 %v4896_v10 }
  0xd4   :  { %v2122_v15 = vadd.f32 %v2121_v5, %v2120_v43  ;;  %v2218_v52 = vadd.f32 %v2217_v19, %v2216_v55  ;;  %v2444_v2 = vsel %vm1172_vm2, %v1834_v27, %v2443_v36  ;;  %v151_v35 = vunpack.c.h.bf16 %v4894_v40  ;;  %v4920_v51 = vld [vmem:[#allocation3 + $0x398] sm:$0xff] }
  0xd5   :  { %v2445_v48 = vsel %vm1174_vm3, %v1930_v28, %v2444_v2  ;;  %v199_v50 = vunpack.c.h.bf16 %v4905_v13  ;;  %v4346_v55 = vld [vmem:[#allocation6 + $0x2f8] sm:$0xff]   ;;  %v215_v62 = vunpack.c.h.bf16 %v4908_v31  ;;  %v247_v27 = vunpack.c.h.bf16 %v4914_v34 }
  0xd6   :  { %4176 = vmatpush3.bf16.msra.mxu1 %v4336_v32  ;;  %v4903_v32 = vld [vmem:[#allocation3 + $0x118] sm:$0xff]  ;;  %v263_v19 = vunpack.c.h.bf16 %v4920_v51  ;;  %v410_v18 = vrot.slane %v167_v59, 4 }
  0xd7   :  { %4177 = vmatprep.subr.bf16.mxu1 %v4338_v24  ;;  %v4910_v24 = vld [vmem:[#allocation3 + $0x298] sm:$0xff]  ;;  %v183_v54 = vunpack.c.h.bf16 %v4903_v32  ;;  %v698_v60 = vrot.slane %v215_v62, 4 }
  0xd8   :  { %v231_v11 = vunpack.c.h.bf16 %v4910_v24 }
  0xd9   :  { %v506_v2 = vrot.slane %v183_v54, 4  ;;  %v699_v16 = vadd.f32 %v698_v60, %v215_v62 }
  0xda   :  { %4178 = vmatpush3.bf16.msra.mxu1 %v4340_v29  ;;  %v2446_v29 = vsel %vm1176_vm4, %v2026_v56, %v2445_v48  ;;  %v314_v56 = vrot.slane %v151_v35, 4  ;;  %v602_v48 = vrot.slane %v199_v50, 4 }
  0xdb   :  { %4179 = vmatprep.subr.bf16.mxu1 %v4342_v46  ;;  %v2447_v5 = vsel %vm1178_vm5, %v2122_v15, %v2446_v29  ;;  %v411_v15 = vadd.f32 %v410_v18, %v167_v59  ;;  %v794_v29 = vrot.slane %v231_v11, 4  ;;  %v890_v46 = vrot.slane %v247_v27, 4 }
  0xdc   :  { %v2448_v28 = vsel %vm1180_vm6, %v2218_v52, %v2447_v5  ;;  %v315_v43 = vadd.f32 %v314_v56, %v151_v35  ;;  %v507_v3 = vadd.f32 %v506_v2, %v183_v54  ;;  %v603_v49 = vadd.f32 %v602_v48, %v199_v50 }
  0xdd   :  { %v2540_v36 = vadd.f32 %v2448_v28, %v1216_v42  ;;  %v412_v38 = vrot.slane %v411_v15, 2  ;;  %v795_v52 = vadd.f32 %v794_v29, %v231_v11  ;;  %v891_v5 = vadd.f32 %v890_v46, %v247_v27 }
  0xde   :  { %4180 = vmatpush3.bf16.msra.mxu1 %v4344_v61  ;;  %v316_v61 = vrot.slane %v315_v43, 2  ;;  %v508_v41 = vrot.slane %v507_v3, 2  ;;  %v604_v26 = vrot.slane %v603_v49, 2  ;;  %v700_v42 = vrot.slane %v699_v16, 2 }
  0xdf   :  { %4209 = vmatprep.subr.bf16.mxu1 %v4346_v55  ;;  %v2591_v25 = vpack.c.bf16 %v2540_v36, %v2540_v36  ;;  %v986_v28 = vrot.slane %v263_v19, 4  ;;  %v413_v14 = vadd.f32 %v412_v38, %v411_v15  ;;  %v796_v55 = vrot.slane %v795_v52, 2 }
  0xe0   :  { %v317_v22 = vadd.f32 %v316_v61, %v315_v43  ;;  %v892_v35 = vrot.slane %v891_v5, 2  ;;  %v509_v59 = vadd.f32 %v508_v41, %v507_v3  ;;  %v605_v56 = vadd.f32 %v604_v26, %v603_v49  ;;  %v4935_v43 = vld [vmem:[#allocation3 + $0x58] sm:$0xff] }
  0xe1   :  { %3745 = vmatprep.mubr.bf16.mxu0 %v2591_v25  ;;  %v701_v18 = vadd.f32 %v700_v42, %v699_v16  ;;  %v987_v36 = vadd.f32 %v986_v28, %v263_v19  ;;  %v414_v50 = vrot.slane %v413_v14, 1  ;;  %v797_v60 = vadd.f32 %v796_v55, %v795_v52  ;;  %v4937_v16 = vld [vmem:[#allocation3 + $0xd8] sm:$0xff] }
  0xe2   :  { %v318_v54 = vrot.slane %v317_v22, 1  ;;  %v893_v62 = vadd.f32 %v892_v35, %v891_v5  ;;  %v510_v2 = vrot.slane %v509_v59, 1  ;;  %v606_v11 = vrot.slane %v605_v56, 1  ;;  %v4942_v52 = vld [vmem:[#allocation3 + $0x158] sm:$0xff] }
  0xe3   :  { %v702_v46 = vrot.slane %v701_v18, 1  ;;  %v988_v25 = vrot.slane %v987_v36, 2  ;;  %v415_v48 = vadd.f32 %v414_v50, %v413_v14  ;;  %v798_v29 = vrot.slane %v797_v60, 1  ;;  %v4944_v14 = vld [vmem:[#allocation3 + $0x1d8] sm:$0xff] }
  0xe4   :  { %v319_v27 = vadd.f32 %v318_v54, %v317_v22  ;;  %v894_v6 = vrot.slane %v893_v62, 1  ;;  %v511_v38 = vadd.f32 %v510_v2, %v509_v59  ;;  %v607_v15 = vadd.f32 %v606_v11, %v605_v56  ;;  %5870 = vst [vmem:[#allocation12_spill] sm:$0xff] %v4944_v14  ;;  %v4947_v28 = vld [vmem:[#allocation3 + $0x258] sm:$0xff] }
  0xe5   :  { %v703_v41 = vadd.f32 %v702_v46, %v701_v18  ;;  %v989_v26 = vadd.f32 %v988_v25, %v987_v36  ;;  %v799_v19 = vadd.f32 %v798_v29, %v797_v60  ;;  %5871 = vst [vmem:[#allocation13_spill] sm:$0xff] %v4947_v28  ;;  %v4951_v59 = vld [vmem:[#allocation3 + $0x2d8] sm:$0xff]  ;;  %v1390_v18 = vunpack.c.h.bf16 %v4935_v43 }
  0xe6   :  { %v1224_v61 = vsel %vm1168_vm0, %v415_v48, %v319_v27  ;;  %v895_v22 = vadd.f32 %v894_v6, %v893_v62  ;;  %5872 = vst [vmem:[#allocation15_spill] sm:$0xff] %v4951_v59  ;;  %v4953_v56 = vld [vmem:[#allocation3 + $0x358] sm:$0xff]  ;;  %v1406_v54 = vunpack.c.h.bf16 %v4937_v16  ;;  %v1422_v62 = vunpack.c.h.bf16 %v4942_v52 }
  0xe7   :  { %v990_v5 = vrot.slane %v989_v26, 1  ;;  %v1225_v42 = vsel %vm1170_vm1, %v511_v38, %v1224_v61  ;;  %v4959_v60 = vld [vmem:[#allocation3 + $0x3d8] sm:$0xff]  ;;  %v1438_v2 = vunpack.c.h.bf16 %v4944_v14  ;;  %v1454_v27 = vunpack.c.h.bf16 %v4947_v28 }
  0xe8   :  { %v1226_v35 = vsel %vm1172_vm2, %v607_v15, %v1225_v42  ;;  %5873 = vst [vmem:[#allocation14_spill] sm:$0xff] %v4959_v60  ;;  %v1470_v38 = vunpack.c.h.bf16 %v4951_v59  ;;  %v1486_v15 = vunpack.c.h.bf16 %v4953_v56  ;;  %v1553_v61 = vrot.slane %v1390_v18, 4 }
  0xe9   :  { %v991_v6 = vadd.f32 %v990_v5, %v989_v26  ;;  %v1227_v50 = vsel %vm1174_vm3, %v703_v41, %v1226_v35  ;;  %v1649_v5 = vrot.slane %v1406_v54, 4  ;;  %v1745_v42 = vrot.slane %v1422_v62, 4 }
  0xea   :  { %v1228_v11 = vsel %vm1176_vm4, %v799_v19, %v1227_v50  ;;  %v1502_v19 = vunpack.c.h.bf16 %v4959_v60  ;;  %v1841_v35 = vrot.slane %v1438_v2, 4  ;;  %v1937_v50 = vrot.slane %v1454_v27, 4 }
  0xeb   :  { %v1229_v48 = vsel %vm1178_vm5, %v895_v22, %v1228_v11  ;;  %v1554_v25 = vadd.f32 %v1553_v61, %v1390_v18  ;;  %v2033_v22 = vrot.slane %v1470_v38, 4  ;;  %v2129_v11 = vrot.slane %v1486_v15, 4 }
  0xec   :  { %v4972_v41 = vsel %vm1180_vm6, %v991_v6, %v1229_v48  ;;  %v2225_v29 = vrot.slane %v1502_v19, 4  ;;  %v1650_v46 = vadd.f32 %v1649_v5, %v1406_v54  ;;  %v1746_v36 = vadd.f32 %v1745_v42, %v1422_v62 }
  0xed   :  { %v1842_v55 = vadd.f32 %v1841_v35, %v1438_v2  ;;  %v1938_v3 = vadd.f32 %v1937_v50, %v1454_v27  ;;  %v1555_v49 = vrot.slane %v1554_v25, 2  ;;  %v2034_v6 = vadd.f32 %v2033_v22, %v1470_v38 }
  0xee   :  { %v2130_v48 = vadd.f32 %v2129_v11, %v1486_v15  ;;  %v2226_v20 = vadd.f32 %v2225_v29, %v1502_v19  ;;  %v1651_v26 = vrot.slane %v1650_v46, 2  ;;  %v1747_v23 = vrot.slane %v1746_v36, 2 }
  0xef   :  { %v1843_v37 = vrot.slane %v1842_v55, 2  ;;  %v1939_v63 = vrot.slane %v1938_v3, 2  ;;  %v1556_v4 = vadd.f32 %v1555_v49, %v1554_v25  ;;  %v2035_v21 = vrot.slane %v2034_v6, 2 }
  0xf0   :  { %v2131_v59 = vrot.slane %v2130_v48, 2  ;;  %v2227_v60 = vrot.slane %v2226_v20, 2  ;;  %v1652_v18 = vadd.f32 %v1651_v26, %v1650_v46  ;;  %v1748_v61 = vadd.f32 %v1747_v23, %v1746_v36 }
  0xf1   :  { %v1844_v28 = vadd.f32 %v1843_v37, %v1842_v55  ;;  %v1940_v14 = vadd.f32 %v1939_v63, %v1938_v3  ;;  %v1557_v54 = vrot.slane %v1556_v4, 1  ;;  %v2036_v62 = vadd.f32 %v2035_v21, %v2034_v6 }
  0xf2   :  { %v2132_v2 = vadd.f32 %v2131_v59, %v2130_v48  ;;  %v2228_v27 = vadd.f32 %v2227_v60, %v2226_v20  ;;  %v1653_v5 = vrot.slane %v1652_v18, 1  ;;  %v1749_v38 = vrot.slane %v1748_v61, 1 }
  0xf3   :  { %v1845_v15 = vrot.slane %v1844_v28, 1  ;;  %v1941_v29 = vrot.slane %v1940_v14, 1  ;;  %v1558_v19 = vadd.f32 %v1557_v54, %v1556_v4  ;;  %v2037_v42 = vrot.slane %v2036_v62, 1 }
  0xf4   :  { %v2133_v35 = vrot.slane %v2132_v2, 1  ;;  %v2229_v50 = vrot.slane %v2228_v27, 1  ;;  %v1654_v49 = vadd.f32 %v1653_v5, %v1652_v18  ;;  %v1750_v25 = vadd.f32 %v1749_v38, %v1748_v61 }
  0xf5   :  { %v1846_v22 = vadd.f32 %v1845_v15, %v1844_v28  ;;  %v1942_v11 = vadd.f32 %v1941_v29, %v1940_v14  ;;  %v2038_v46 = vadd.f32 %v2037_v42, %v2036_v62  ;;  %v5874_v63 = vunpack.c.l.bf16 %v4809_v30 }
  0xf6   :  { %v2134_v23 = vadd.f32 %v2133_v35, %v2132_v2  ;;  %v2230_v37 = vadd.f32 %v2229_v50, %v2228_v27  ;;  %v2456_v20 = vsel %vm1168_vm0, %v1654_v49, %v1558_v19  ;;  %v5875_v3 = vunpack.c.l.bf16 %v4813_v58 }
  0xf7   :  { %v296_v21 = vrot.slane %v5874_v63, 4  ;;  %v5876_v4 = vunpack.c.l.bf16 %v4815_v45  ;;  %v5877_v36 = vunpack.c.l.bf16 %v4822_v1  ;;  %v2457_v28 = vsel %vm1170_vm1, %v1750_v25, %v2456_v20 }
  0xf8   :  { %v392_v55 = vrot.slane %v5875_v3, 4  ;;  %v5878_v14 = vmov %v5874_v63  ;;  %v5879_v6 = vunpack.c.l.bf16 %v4826_v33  ;;  %v5880_v18 = vunpack.c.l.bf16 %v4830_v44 }
  0xf9   :  { %v488_v59 = vrot.slane %v5876_v4, 4  ;;  %v584_v60 = vrot.slane %v5877_v36, 4  ;;  %v297_v26 = vadd.f32 %v296_v21, %v5878_v14  ;;  %v2458_v54 = vsel %vm1172_vm2, %v1846_v22, %v2457_v28 }
  0xfa   :  { %v680_v48 = vrot.slane %v5879_v6, 4  ;;  %v776_v61 = vrot.slane %v5880_v18, 4  ;;  %v5881_v62 = vmov %v5875_v3  ;;  %v5882_v27 = vmov %v5876_v4 }
  0xfb   :  { %v393_v2 = vadd.f32 %v392_v55, %v5881_v62  ;;  %v489_v5 = vadd.f32 %v488_v59, %v5882_v27  ;;  %v5883_v38 = vmov %v5877_v36  ;;  %v2459_v30 = vsel %vm1174_vm3, %v1942_v11, %v2458_v54 }
  0xfc   :  { %v585_v15 = vadd.f32 %v584_v60, %v5883_v38  ;;  %v298_v29 = vrot.slane %v297_v26, 2  ;;  %v5884_v19 = vmov %v5879_v6  ;;  %v5885_v35 = vmov %v5880_v18 }
  0xfd   :  { %v681_v42 = vadd.f32 %v680_v48, %v5884_v19  ;;  %v777_v50 = vadd.f32 %v776_v61, %v5885_v35  ;;  %v2460_v49 = vsel %vm1176_vm4, %v2038_v46, %v2459_v30  ;;  %v394_v25 = vrot.slane %v393_v2, 2 }
  0xfe   :  { %v490_v58 = vrot.slane %v489_v5, 2  ;;  %v586_v22 = vrot.slane %v585_v15, 2  ;;  %v2461_v45 = vsel %vm1178_vm5, %v2134_v23, %v2460_v49  ;;  %v299_v63 = vadd.f32 %v298_v29, %v297_v26 }
  0xff   :  { %v682_v21 = vrot.slane %v681_v42, 2  ;;  %v778_v1 = vrot.slane %v777_v50, 2  ;;  %v2462_v20 = vsel %vm1180_vm6, %v2230_v37, %v2461_v45  ;;  %v395_v11 = vadd.f32 %v394_v25, %v393_v2 }
 0x100   :  { %v491_v3 = vadd.f32 %v490_v58, %v489_v5  ;;  %v587_v55 = vadd.f32 %v586_v22, %v585_v15  ;;  %v2542_v33 = vadd.f32 %v2462_v20, %v4972_v41  ;;  %v300_v4 = vrot.slane %v299_v63, 1 }
 0x101   :  { %v683_v44 = vadd.f32 %v682_v21, %v681_v42  ;;  %v779_v59 = vadd.f32 %v778_v1, %v777_v50  ;;  %v396_v36 = vrot.slane %v395_v11, 1  ;;  %v5886_v28 = vunpack.c.l.bf16 %v4835_v17 }
 0x102   :  { %v492_v46 = vrot.slane %v491_v3, 1  ;;  %v588_v60 = vrot.slane %v587_v55, 1  ;;  %v2593_v23 = vpack.c.bf16 %v2542_v33, %v2542_v33  ;;  %v301_v26 = vadd.f32 %v300_v4, %v299_v63 }
 0x103   :  { %v872_v14 = vrot.slane %v5886_v28, 4  ;;  %v684_v6 = vrot.slane %v683_v44, 1  ;;  %v780_v48 = vrot.slane %v779_v59, 1  ;;  %v397_v18 = vadd.f32 %v396_v36, %v395_v11 }
 0x104   :  { %v493_v37 = vadd.f32 %v492_v46, %v491_v3  ;;  %v589_v61 = vadd.f32 %v588_v60, %v587_v55  ;;  %v5887_v54 = vmov %v5886_v28  ;;  %3785 = vmatprep.mubr.bf16.mxu1 %v2593_v23  ;;  %v5888_v27 = vunpack.c.l.bf16 %v4837_v57 }
 0x105   :  { %v873_v62 = vadd.f32 %v872_v14, %v5887_v54  ;;  %v685_v41 = vadd.f32 %v684_v6, %v683_v44  ;;  %v781_v2 = vadd.f32 %v780_v48, %v779_v59  ;;  %v5889_v38 = vunpack.c.l.bf16 %v4851_v39 }
 0x106   :  { %v968_v5 = vrot.slane %v5888_v27, 4  ;;  %v1203_v29 = vsel %vm1168_vm0, %v397_v18, %v301_v26  ;;  %v5890_v19 = vunpack.c.l.bf16 %v4853_v8  ;;  %v5891_v35 = vunpack.c.l.bf16 %v4857_v47 }
 0x107   :  { %v1535_v15 = vrot.slane %v5889_v38, 4  ;;  %v874_v30 = vrot.slane %v873_v62, 2  ;;  %v5892_v17 = vmov %v5888_v27  ;;  %v1204_v25 = vsel %vm1170_vm1, %v493_v37, %v1203_v29 }
 0x108   :  { %v1631_v42 = vrot.slane %v5890_v19, 4  ;;  %v1727_v50 = vrot.slane %v5891_v35, 4  ;;  %v969_v49 = vadd.f32 %v968_v5, %v5892_v17  ;;  %v5893_v58 = vmov %v5889_v38 }
 0x109   :  { %v1536_v22 = vadd.f32 %v1535_v15, %v5893_v58  ;;  %v5894_v45 = vunpack.c.l.bf16 %v4860_v12  ;;  %v875_v21 = vadd.f32 %v874_v30, %v873_v62  ;;  %v1205_v1 = vsel %vm1172_vm2, %v589_v61, %v1204_v25 }
 0x10a   :  { %v5895_v20 = vmov %v5890_v19  ;;  %v5896_v3 = vmov %v5891_v35  ;;  %v970_v33 = vrot.slane %v969_v49, 2  ;;  %v1206_v57 = vsel %vm1174_vm3, %v685_v41, %v1205_v1 }
 0x10b   :  { %v1823_v63 = vrot.slane %v5894_v45, 4  ;;  %v1632_v11 = vadd.f32 %v1631_v42, %v5895_v20  ;;  %v1728_v55 = vadd.f32 %v1727_v50, %v5896_v3  ;;  %v1537_v4 = vrot.slane %v1536_v22, 2 }
 0x10c   :  { %v5897_v44 = vmov %v5894_v45  ;;  %v876_v59 = vrot.slane %v875_v21, 1  ;;  %v1207_v36 = vsel %vm1176_vm4, %v781_v2, %v1206_v57  ;;  %v971_v28 = vadd.f32 %v970_v33, %v969_v49 }
 0x10d   :  { %v1824_v39 = vadd.f32 %v1823_v63, %v5897_v44  ;;  %v1633_v46 = vrot.slane %v1632_v11, 2  ;;  %v1729_v60 = vrot.slane %v1728_v55, 2  ;;  %v1538_v14 = vadd.f32 %v1537_v4, %v1536_v22 }
 0x10e   :  { %v5898_v8 = vunpack.c.l.bf16 %v4864_v9  ;;  %v877_v47 = vadd.f32 %v876_v59, %v875_v21  ;;  %v5899_v18 = vunpack.c.l.bf16 %v4866_v0  ;;  %v972_v61 = vrot.slane %v971_v28, 1 }
 0x10f   :  { %v1825_v23 = vrot.slane %v1824_v39, 2  ;;  %v1634_v6 = vadd.f32 %v1633_v46, %v1632_v11  ;;  %v1730_v48 = vadd.f32 %v1729_v60, %v1728_v55  ;;  %v1539_v12 = vrot.slane %v1538_v14, 1 }
 0x110   :  { %v1919_v26 = vrot.slane %v5898_v8, 4  ;;  %v2015_v37 = vrot.slane %v5899_v18, 4  ;;  %v5900_v62 = vmov %v5898_v8  ;;  %v1208_v2 = vsel %vm1178_vm5, %v877_v47, %v1207_v36 }
 0x111   :  { %v1826_v54 = vadd.f32 %v1825_v23, %v1824_v39  ;;  %v1635_v27 = vrot.slane %v1634_v6, 1  ;;  %v1731_v5 = vrot.slane %v1730_v48, 1  ;;  %v5901_v38 = vmov %v5899_v18 }
 0x112   :  { %v1920_v41 = vadd.f32 %v1919_v26, %v5900_v62  ;;  %v2016_v15 = vadd.f32 %v2015_v37, %v5901_v38  ;;  %v973_v30 = vadd.f32 %v972_v61, %v971_v28  ;;  %v1540_v29 = vadd.f32 %v1539_v12, %v1538_v14 }
 0x113   :  { %v1827_v19 = vrot.slane %v1826_v54, 1  ;;  %v1636_v35 = vadd.f32 %v1635_v27, %v1634_v6  ;;  %v1732_v50 = vadd.f32 %v1731_v5, %v1730_v48  ;;  %v5902_v49 = vunpack.c.l.bf16 %v4871_v7 }
 0x114   :  { %v1921_v42 = vrot.slane %v1920_v41, 2  ;;  %v2017_v17 = vrot.slane %v2016_v15, 2  ;;  %v1209_v9 = vsel %vm1180_vm6, %v973_v30, %v1208_v2  ;;  %v5903_v45 = vunpack.c.l.bf16 %v4876_v53 }
 0x115   :  { %v2111_v25 = vrot.slane %v5902_v49, 4  ;;  %v1828_v58 = vadd.f32 %v1827_v19, %v1826_v54  ;;  %v5904_v0 = vmov %v5902_v49  ;;  %v2435_v20 = vsel %vm1168_vm0, %v1636_v35, %v1540_v29 }
 0x116   :  { %v1922_v22 = vadd.f32 %v1921_v42, %v1920_v41  ;;  %v2207_v63 = vrot.slane %v5903_v45, 4  ;;  %v2018_v21 = vadd.f32 %v2017_v17, %v2016_v15  ;;  %v5905_v11 = vunpack.c.l.bf16 %v4894_v40 }
 0x117   :  { %v2112_v1 = vadd.f32 %v2111_v25, %v5904_v0  ;;  %v5906_v33 = vmov %v5903_v45  ;;  %v2436_v4 = vsel %vm1170_vm1, %v1732_v50, %v2435_v20  ;;  %v5907_v44 = vunpack.c.l.bf16 %v4896_v10 }
 0x118   :  { %v308_v3 = vrot.slane %v5905_v11, 4  ;;  %v1923_v55 = vrot.slane %v1922_v22, 1  ;;  %v2208_v57 = vadd.f32 %v2207_v63, %v5906_v33  ;;  %v2019_v59 = vrot.slane %v2018_v21, 1 }
 0x119   :  { %v404_v39 = vrot.slane %v5907_v44, 4  ;;  %v2113_v36 = vrot.slane %v2112_v1, 2  ;;  %v2437_v46 = vsel %vm1172_vm2, %v1828_v58, %v2436_v4  ;;  %v5908_v7 = vmov %v5905_v11 }
 0x11a   :  { %v309_v60 = vadd.f32 %v308_v3, %v5908_v7  ;;  %v1924_v28 = vadd.f32 %v1923_v55, %v1922_v22  ;;  %v2209_v14 = vrot.slane %v2208_v57, 2  ;;  %v5909_v23 = vmov %v5907_v44 }
 0x11b   :  { %v405_v8 = vadd.f32 %v404_v39, %v5909_v23  ;;  %v5910_v53 = vunpack.c.l.bf16 %v4903_v32  ;;  %v2020_v47 = vadd.f32 %v2019_v59, %v2018_v21  ;;  %v2114_v6 = vadd.f32 %v2113_v36, %v2112_v1 }
 0x11c   :  { %v310_v48 = vrot.slane %v309_v60, 2  ;;  %v5911_v18 = vunpack.c.l.bf16 %v4905_v13  ;;  %v2210_v61 = vadd.f32 %v2209_v14, %v2208_v57  ;;  %v2438_v12 = vsel %vm1174_vm3, %v1924_v28, %v2437_v46 }
 0x11d   :  { %v500_v26 = vrot.slane %v5910_v53, 4  ;;  %v406_v54 = vrot.slane %v405_v8, 2  ;;  %v5912_v40 = vmov %v5910_v53  ;;  %v2115_v41 = vrot.slane %v2114_v6, 1 }
 0x11e   :  { %v596_v37 = vrot.slane %v5911_v18, 4  ;;  %v2439_v10 = vsel %vm1176_vm4, %v2020_v47, %v2438_v12  ;;  %v311_v2 = vadd.f32 %v310_v48, %v309_v60  ;;  %v5913_v27 = vmov %v5911_v18 }
 0x11f   :  { %v501_v62 = vadd.f32 %v500_v26, %v5912_v40  ;;  %v2211_v38 = vrot.slane %v2210_v61, 1  ;;  %v407_v15 = vadd.f32 %v406_v54, %v405_v8  ;;  %v5914_v29 = vunpack.c.l.bf16 %v4908_v31 }
 0x120   :  { %v597_v5 = vadd.f32 %v596_v37, %v5913_v27  ;;  %v2116_v42 = vadd.f32 %v2115_v41, %v2114_v6  ;;  %v312_v35 = vrot.slane %v311_v2, 1  ;;  %v5915_v17 = vunpack.c.l.bf16 %v4910_v24  ;;  %v4347_v24 = vld [vmem:[#allocation6 + $0x238] sm:$0xff]   ;;  %v4351_v27 = vld [vmem:[#allocation6 + $0x230] sm:$0xff]  }
 0x121   :  { %v502_v30 = vrot.slane %v501_v62, 2  ;;  %v692_v19 = vrot.slane %v5914_v29, 4  ;;  %v2212_v49 = vadd.f32 %v2211_v38, %v2210_v61  ;;  %v408_v25 = vrot.slane %v407_v15, 1 }
 0x122   :  { %v598_v50 = vrot.slane %v597_v5, 2  ;;  %v788_v32 = vrot.slane %v5915_v17, 4  ;;  %v5916_v22 = vmov %v5914_v29  ;;  %v2440_v13 = vsel %vm1178_vm5, %v2116_v42, %v2439_v10  ;;  %v5927_v29 = vld [vmem:[#allocation12_spill] sm:$0xff] }
 0x123   :  { %v503_v58 = vadd.f32 %v502_v30, %v501_v62  ;;  %v693_v45 = vadd.f32 %v692_v19, %v5916_v22  ;;  %v313_v63 = vadd.f32 %v312_v35, %v311_v2  ;;  %v5917_v0 = vmov %v5915_v17  ;;  %v4353_v35 = vld [vmem:[#allocation6 + $0x268] sm:$0xff]  }
 0x124   :  { %v599_v21 = vadd.f32 %v598_v50, %v597_v5  ;;  %v789_v1 = vadd.f32 %v788_v32, %v5917_v0  ;;  %v2441_v20 = vsel %vm1180_vm6, %v2212_v49, %v2440_v13  ;;  %v409_v11 = vadd.f32 %v408_v25, %v407_v15 }
 0x125   :  { %v504_v3 = vrot.slane %v503_v58, 1  ;;  %v694_v55 = vrot.slane %v693_v45, 2  ;;  %v2539_v33 = vadd.f32 %v2441_v20, %v1209_v9  ;;  %v5918_v44 = vunpack.c.l.bf16 %v4914_v34  ;;  %v4349_v9 = vld [vmem:[#allocation6 + $0x270] sm:$0xff]   ;;  %v4355_v20 = vld [vmem:[#allocation6 + $0x228] sm:$0xff]  }
 0x126   :  { %v600_v57 = vrot.slane %v599_v21, 1  ;;  %v790_v4 = vrot.slane %v789_v1, 2  ;;  %v5919_v36 = vunpack.c.l.bf16 %v4920_v51  ;;  %v1217_v7 = vsel %vm1168_vm0, %v409_v11, %v313_v63  ;;  %v5933_v11 = vld [vmem:[#allocation14_spill] sm:$0xff] }
 0x127   :  { %v884_v39 = vrot.slane %v5918_v44, 4  ;;  %v505_v31 = vadd.f32 %v504_v3, %v503_v58  ;;  %v695_v59 = vadd.f32 %v694_v55, %v693_v45  ;;  %v2590_v60 = vpack.c.bf16 %v2539_v33, %v2539_v33  ;;  %v5934_v33 = vld [vmem:[#allocation15_spill] sm:$0xff] }
 0x128   :  { %v980_v46 = vrot.slane %v5919_v36, 4  ;;  %v601_v28 = vadd.f32 %v600_v57, %v599_v21  ;;  %v791_v14 = vadd.f32 %v790_v4, %v789_v1  ;;  %v5920_v23 = vmov %v5918_v44  ;;  %v5931_v21 = vld [vmem:[#allocation13_spill] sm:$0xff]  ;;  %v4357_v44 = vld [vmem:[#allocation6 + $0x260] sm:$0xff]  }
 0x129   :  { %v885_v8 = vadd.f32 %v884_v39, %v5920_v23  ;;  %v696_v53 = vrot.slane %v695_v59, 1  ;;  %v5921_v26 = vmov %v5919_v36  ;;  %v1218_v6 = vsel %vm1170_vm1, %v505_v31, %v1217_v7  ;;  %3746 = vmatmul.mubr.bf16.vlgmr.msra.gmra.mxu0 %v2590_v60 }
 0x12a   :  { %v981_v47 = vadd.f32 %v980_v46, %v5921_v26  ;;  %v5922_v48 = vunpack.c.l.bf16 %v4935_v43  ;;  %v792_v37 = vrot.slane %v791_v14, 1  ;;  %v1219_v12 = vsel %vm1172_vm2, %v601_v28, %v1218_v6  ;;  %4188 = vmatpush3.bf16.msra.mxu0 %v4347_v24  ;;  %v4359_v26 = vld [vmem:[#allocation6 + $0x220] sm:$0xff]  }
 0x12b   :  { %v886_v61 = vrot.slane %v885_v8, 2  ;;  %v5923_v54 = vunpack.c.l.bf16 %v4937_v16  ;;  %v697_v34 = vadd.f32 %v696_v53, %v695_v59  ;;  %v5925_v51 = vunpack.c.l.bf16 %v4942_v52  ;;  %4189 = vmatprep.subr.bf16.mxu0 %v4349_v9 }
 0x12c   :  { %v1547_v18 = vrot.slane %v5922_v48, 4  ;;  %v982_v62 = vrot.slane %v981_v47, 2  ;;  %v5924_v41 = vmov %v5922_v48  ;;  %v1485_v5 = vunpack.c.l.bf16 %v4953_v56 }
 0x12d   :  { %v1643_v40 = vrot.slane %v5923_v54, 4  ;;  %v1739_v2 = vrot.slane %v5925_v51, 4  ;;  %v887_v38 = vadd.f32 %v886_v61, %v885_v8  ;;  %v5926_v15 = vmov %v5923_v54 }
 0x12e   :  { %v1548_v10 = vadd.f32 %v1547_v18, %v5924_v41  ;;  %v5928_v19 = vunpack.c.l.bf16 %v5927_v29  ;;  %v793_v50 = vadd.f32 %v792_v37, %v791_v14  ;;  %v983_v17 = vadd.f32 %v982_v62, %v981_v47  ;;  %4190 = vmatpush3.bf16.msra.mxu0 %v4351_v27  ;;  %v4361_v37 = vld [vmem:[#allocation6 + $0x258] sm:$0xff]  }
 0x12f   :  { %v1644_v30 = vadd.f32 %v1643_v40, %v5926_v15  ;;  %v5929_v32 = vmov %v5925_v51  ;;  %v888_v25 = vrot.slane %v887_v38, 1  ;;  %v1220_v58 = vsel %vm1174_vm3, %v697_v34, %v1219_v12  ;;  %4191 = vmatprep.subr.bf16.mxu0 %v4353_v35  ;;  %v5127_v51 = vld [vmem:[#allocation3 + $0x20] sm:$0xff]  ;;  %v4363_v15 = vld [vmem:[#allocation6 + $0x218] sm:$0xff]   ;;  %v4365_v35 = vld [vmem:[#allocation6 + $0x250] sm:$0xff]  }
 0x130   :  { %v1835_v42 = vrot.slane %v5928_v19, 4  ;;  %v1549_v43 = vrot.slane %v1548_v10, 2  ;;  %v1740_v49 = vadd.f32 %v1739_v2, %v5929_v32  ;;  %v5930_v56 = vmov %v5928_v19 }
 0x131   :  { %v1645_v22 = vrot.slane %v1644_v30, 2  ;;  %v984_v16 = vrot.slane %v983_v17, 1  ;;  %v5932_v0 = vunpack.c.l.bf16 %v5931_v21  ;;  %v1501_v3 = vunpack.c.l.bf16 %v5933_v11  ;;  %v4367_v21 = vld [vmem:[#allocation6 + $0x210] sm:$0xff]  }
 0x132   :  { %v1836_v45 = vadd.f32 %v1835_v42, %v5930_v56  ;;  %v1550_v13 = vadd.f32 %v1549_v43, %v1548_v10  ;;  %v1741_v63 = vrot.slane %v1740_v49, 2  ;;  %v5935_v57 = vunpack.c.l.bf16 %v5934_v33  ;;  %4192 = vmatpush3.bf16.msra.mxu0 %v4355_v20  ;;  %v5141_v56 = vld [vmem:[#allocation3 + $0x2a0] sm:$0xff] }
 0x133   :  { %v1931_v1 = vrot.slane %v5932_v0, 4  ;;  %v1646_v55 = vadd.f32 %v1645_v22, %v1644_v30  ;;  %v889_v39 = vadd.f32 %v888_v25, %v887_v38  ;;  %v5936_v36 = vmov %v5932_v0  ;;  %4193 = vmatprep.subr.bf16.mxu0 %v4357_v44  ;;  %v5130_v30 = vld [vmem:[#allocation3 + $0xa0] sm:$0xff] }
 0x134   :  { %v1837_v52 = vrot.slane %v1836_v45, 2  ;;  %v2027_v4 = vrot.slane %v5935_v57, 4  ;;  %v1551_v31 = vrot.slane %v1550_v13, 1  ;;  %v1742_v59 = vadd.f32 %v1741_v63, %v1740_v49  ;;  %v5138_v49 = vld [vmem:[#allocation3 + $0x220] sm:$0xff] }
 0x135   :  { %v1932_v46 = vadd.f32 %v1931_v1, %v5936_v36  ;;  %v1221_v7 = vsel %vm1176_vm4, %v793_v50, %v1220_v58  ;;  %v1647_v24 = vrot.slane %v1646_v55, 1  ;;  %v5937_v28 = vmov %v5935_v57  ;;  %v5133_v50 = vld [vmem:[#allocation3 + $0x120] sm:$0xff] }
 0x136   :  { %v1838_v60 = vadd.f32 %v1837_v52, %v1836_v45  ;;  %v2028_v14 = vadd.f32 %v2027_v4, %v5937_v28  ;;  %v985_v23 = vadd.f32 %v984_v16, %v983_v17  ;;  %v1552_v8 = vadd.f32 %v1551_v31, %v1550_v13  ;;  %4194 = vmatpush3.bf16.msra.mxu0 %v4359_v26  ;;  %v5146_v0 = vld [vmem:[#allocation3 + $0x320] sm:$0xff] }
 0x137   :  { %v1743_v9 = vrot.slane %v1742_v59, 1  ;;  %v1933_v53 = vrot.slane %v1932_v46, 2  ;;  %v1648_v47 = vadd.f32 %v1647_v24, %v1646_v55  ;;  %v2123_v18 = vrot.slane %v1485_v5, 4  ;;  %4195 = vmatprep.subr.bf16.mxu0 %v4361_v37  ;;  %v5148_v1 = vld [vmem:[#allocation3 + $0x3a0] sm:$0xff]  ;;  %v4369_v55 = vld [vmem:[#allocation6 + $0x248] sm:$0xff]  }
 0x138   :  { %v1839_v6 = vrot.slane %v1838_v60, 1  ;;  %v2029_v48 = vrot.slane %v2028_v14, 2  ;;  %v1222_v61 = vsel %vm1178_vm5, %v889_v39, %v1221_v7  ;;  %v2219_v40 = vrot.slane %v1501_v3, 4 }
 0x139   :  { %v1744_v12 = vadd.f32 %v1743_v9, %v1742_v59  ;;  %v1934_v54 = vadd.f32 %v1933_v53, %v1932_v46  ;;  %v2124_v41 = vadd.f32 %v2123_v18, %v1485_v5  ;;  %v2449_v10 = vsel %vm1168_vm0, %v1648_v47, %v1552_v8  ;;  %v5135_v5 = vld [vmem:[#allocation3 + $0x1a0] sm:$0xff] }
 0x13a   :  { %v1840_v34 = vadd.f32 %v1839_v6, %v1838_v60  ;;  %v2030_v62 = vadd.f32 %v2029_v48, %v2028_v14  ;;  %v2220_v27 = vadd.f32 %v2219_v40, %v1501_v3  ;;  %v1223_v17 = vsel %vm1180_vm6, %v985_v23, %v1222_v61  ;;  %4196 = vmatpush3.bf16.msra.mxu0 %v4363_v15  ;;  %v4371_v60 = vld [vmem:[#allocation6 + $0x208] sm:$0xff]   ;;  %v4373_v9 = vld [vmem:[#allocation6 + $0x240] sm:$0xff]   ;;  %v4350_v15 = vld [vmem:[#allocation6 + $0x2f0] sm:$0xff]  }
 0x13b   :  { %v1935_v2 = vrot.slane %v1934_v54, 1  ;;  %v2450_v38 = vsel %vm1170_vm1, %v1744_v12, %v2449_v10  ;;  %v2125_v19 = vrot.slane %v2124_v41, 2  ;;  %v153_v45 = vunpack.c.h.bf16 %v5127_v51  ;;  %4197 = vmatprep.subr.bf16.mxu0 %v4365_v35  ;;  %v4377_v35 = vld [vmem:[#allocation6 + $0x378] sm:$0xff]  }
 0x13c   :  { %v2031_v29 = vrot.slane %v2030_v62, 1  ;;  %v2451_v42 = vsel %vm1172_vm2, %v1840_v34, %v2450_v38  ;;  %v2221_v32 = vrot.slane %v2220_v27, 2  ;;  %v169_v16 = vunpack.c.h.bf16 %v5130_v30  ;;  %v4348_v34 = vld [vmem:[#allocation6 + $0x2b8] sm:$0xff]  }
 0x13d   :  { %v1936_v43 = vadd.f32 %v1935_v2, %v1934_v54  ;;  %v2126_v22 = vadd.f32 %v2125_v19, %v2124_v41  ;;  %v185_v20 = vunpack.c.h.bf16 %v5133_v50  ;;  %v201_v11 = vunpack.c.h.bf16 %v5135_v5 }
 0x13e   :  { %v2032_v58 = vadd.f32 %v2031_v29, %v2030_v62  ;;  %v2222_v13 = vadd.f32 %v2221_v32, %v2220_v27  ;;  %v217_v57 = vunpack.c.h.bf16 %v5138_v49  ;;  %v233_v31 = vunpack.c.h.bf16 %v5141_v56  ;;  %4198 = vmatpush3.bf16.msra.mxu0 %v4367_v21  ;;  %v4375_v62 = vld [vmem:[#allocation6 + $0x200] sm:$0xff]  }
 0x13f   :  { %v2452_v63 = vsel %vm1174_vm3, %v1936_v43, %v2451_v42  ;;  %v2127_v3 = vrot.slane %v2126_v22, 1  ;;  %v249_v36 = vunpack.c.h.bf16 %v5146_v0  ;;  %v265_v46 = vunpack.c.h.bf16 %v5148_v1  ;;  %4199 = vmatprep.subr.bf16.mxu0 %v4369_v55  ;;  %v4354_v55 = vld [vmem:[#allocation6 + $0x2e8] sm:$0xff]  }
 0x140   :  { %v2223_v4 = vrot.slane %v2222_v13, 1  ;;  %v2453_v44 = vsel %vm1176_vm4, %v2032_v58, %v2452_v63  ;;  %v326_v7 = vrot.slane %v153_v45, 4  ;;  %v422_v28 = vrot.slane %v169_v16, 4  ;;  %v4352_v63 = vld [vmem:[#allocation6 + $0x2b0] sm:$0xff]  }
 0x141   :  { %v2128_v59 = vadd.f32 %v2127_v3, %v2126_v22  ;;  %v518_v14 = vrot.slane %v185_v20, 4  ;;  %v614_v23 = vrot.slane %v201_v11, 4  ;;  %v710_v26 = vrot.slane %v217_v57, 4 }
 0x142   :  { %v2224_v24 = vadd.f32 %v2223_v4, %v2222_v13  ;;  %v327_v53 = vadd.f32 %v326_v7, %v153_v45  ;;  %v806_v47 = vrot.slane %v233_v31, 4  ;;  %v423_v48 = vadd.f32 %v422_v28, %v169_v16  ;;  %4200 = vmatpush3.bf16.msra.mxu0 %v4371_v60  ;;  %v5162_v60 = vld [vmem:[#allocation3 + $0x60] sm:$0xff] }
 0x143   :  { %v2454_v8 = vsel %vm1178_vm5, %v2128_v59, %v2453_v44  ;;  %v519_v18 = vadd.f32 %v518_v14, %v185_v20  ;;  %v615_v37 = vadd.f32 %v614_v23, %v201_v11  ;;  %v711_v54 = vadd.f32 %v710_v26, %v217_v57  ;;  %4201 = vmatprep.subr.bf16.mxu0 %v4373_v9  ;;  %v5166_v9 = vld [vmem:[#allocation3 + $0xe0] sm:$0xff] }
 0x144   :  { %v2455_v6 = vsel %vm1180_vm6, %v2224_v24, %v2454_v8  ;;  %v328_v12 = vrot.slane %v327_v53, 2  ;;  %v807_v40 = vadd.f32 %v806_v47, %v233_v31  ;;  %v424_v41 = vrot.slane %v423_v48, 2 }
 0x145   :  { %v2541_v61 = vadd.f32 %v2455_v6, %v1223_v17  ;;  %v520_v10 = vrot.slane %v519_v18, 2  ;;  %v616_v2 = vrot.slane %v615_v37, 2  ;;  %v902_v27 = vrot.slane %v249_v36, 4 }
 0x146   :  { %v329_v29 = vadd.f32 %v328_v12, %v327_v53  ;;  %v712_v19 = vrot.slane %v711_v54, 2  ;;  %v808_v42 = vrot.slane %v807_v40, 2  ;;  %v425_v43 = vadd.f32 %v424_v41, %v423_v48  ;;  %4202 = vmatpush3.bf16.msra.mxu0 %v4375_v62  ;;  %v4356_v53 = vld [vmem:[#allocation6 + $0x2a8] sm:$0xff]   ;;  %v5170_v48 = vld [vmem:[#allocation3 + $0x160] sm:$0xff] }
 0x147   :  { %v2592_v38 = vpack.c.bf16 %v2541_v61, %v2541_v61  ;;  %v521_v32 = vadd.f32 %v520_v10, %v519_v18  ;;  %v617_v17 = vadd.f32 %v616_v2, %v615_v37  ;;  %v903_v58 = vadd.f32 %v902_v27, %v249_v36  ;;  %4231 = vmatprep.subr.bf16.mxu0 %v4377_v35  ;;  %v5172_v18 = vld [vmem:[#allocation3 + $0x1e0] sm:$0xff] }
 0x148   :  { %v330_v22 = vrot.slane %v329_v29, 1  ;;  %v713_v45 = vadd.f32 %v712_v19, %v711_v54  ;;  %v809_v16 = vadd.f32 %v808_v42, %v807_v40  ;;  %v998_v13 = vrot.slane %v265_v46, 4  ;;  %v4358_v37 = vld [vmem:[#allocation6 + $0x2e0] sm:$0xff]  }
 0x149   :  { %3786 = vmatmul.mubr.bf16.vlgmr.msra.gmra.mxu1 %v2592_v38  ;;  %v426_v21 = vrot.slane %v425_v43, 1  ;;  %v522_v20 = vrot.slane %v521_v32, 1  ;;  %v618_v11 = vrot.slane %v617_v17, 1  ;;  %v904_v3 = vrot.slane %v903_v58, 2  ;;  %v5176_v40 = vld [vmem:[#allocation3 + $0x260] sm:$0xff] }
 0x14a   :  { %4210 = vmatpush3.bf16.msra.mxu1 %v4348_v34  ;;  %v331_v57 = vadd.f32 %v330_v22, %v329_v29  ;;  %v714_v4 = vrot.slane %v713_v45, 1  ;;  %v810_v44 = vrot.slane %v809_v16, 1  ;;  %v999_v31 = vadd.f32 %v998_v13, %v265_v46  ;;  %v5178_v34 = vld [vmem:[#allocation3 + $0x2e0] sm:$0xff] }
 0x14b   :  { %4211 = vmatprep.subr.bf16.mxu1 %v4350_v15  ;;  %v427_v59 = vadd.f32 %v426_v21, %v425_v43  ;;  %v523_v36 = vadd.f32 %v522_v20, %v521_v32  ;;  %v619_v7 = vadd.f32 %v618_v11, %v617_v17  ;;  %v905_v24 = vadd.f32 %v904_v3, %v903_v58  ;;  %v5182_v2 = vld [vmem:[#allocation3 + $0x360] sm:$0xff] }
 0x14c   :  { %v715_v23 = vadd.f32 %v714_v4, %v713_v45  ;;  %v1000_v8 = vrot.slane %v999_v31, 2  ;;  %v811_v46 = vadd.f32 %v810_v44, %v809_v16  ;;  %v1392_v27 = vunpack.c.h.bf16 %v5162_v60  ;;  %v5187_v19 = vld [vmem:[#allocation3 + $0x3e0] sm:$0xff]  ;;  %v4362_v45 = vld [vmem:[#allocation6 + $0x2d8] sm:$0xff]  }
 0x14d   :  { %v906_v47 = vrot.slane %v905_v24, 1  ;;  %v1238_v6 = vsel %vm1168_vm0, %v427_v59, %v331_v57  ;;  %v1408_v38 = vunpack.c.h.bf16 %v5166_v9  ;;  %v1424_v42 = vunpack.c.h.bf16 %v5170_v48  ;;  %v4360_v43 = vld [vmem:[#allocation6 + $0x2a0] sm:$0xff]   ;;  %v4364_v59 = vld [vmem:[#allocation6 + $0x298] sm:$0xff]  }
 0x14e   :  { %4212 = vmatpush3.bf16.msra.mxu1 %v4352_v63  ;;  %v1001_v12 = vadd.f32 %v1000_v8, %v999_v31  ;;  %v1239_v54 = vsel %vm1170_vm1, %v523_v36, %v1238_v6  ;;  %v1440_v35 = vunpack.c.h.bf16 %v5172_v18  ;;  %v1456_v58 = vunpack.c.h.bf16 %v5176_v40  ;;  %v4366_v8 = vld [vmem:[#allocation6 + $0x2d0] sm:$0xff]  }
 0x14f   :  { %4213 = vmatprep.subr.bf16.mxu1 %v4354_v55  ;;  %v907_v41 = vadd.f32 %v906_v47, %v905_v24  ;;  %v1240_v10 = vsel %vm1172_vm2, %v619_v7, %v1239_v54  ;;  %v1472_v22 = vunpack.c.h.bf16 %v5178_v34  ;;  %v1488_v21 = vunpack.c.h.bf16 %v5182_v2 }
 0x150   :  { %v1002_v15 = vrot.slane %v1001_v12, 1  ;;  %v1241_v29 = vsel %vm1174_vm3, %v715_v23, %v1240_v10  ;;  %v1504_v11 = vunpack.c.h.bf16 %v5187_v19  ;;  %v1565_v3 = vrot.slane %v1392_v27, 4 }
 0x151   :  { %v1242_v32 = vsel %vm1176_vm4, %v811_v46, %v1241_v29  ;;  %v1661_v55 = vrot.slane %v1408_v38, 4  ;;  %v1757_v4 = vrot.slane %v1424_v42, 4  ;;  %v1853_v44 = vrot.slane %v1440_v35, 4 }
 0x152   :  { %4214 = vmatpush3.bf16.msra.mxu1 %v4356_v53  ;;  %v5199_v20 = vadd.f32 %v1002_v15, %v1001_v12  ;;  %v5203_v57 = vsel %vm1178_vm5, %v907_v41, %v1242_v32  ;;  %v1949_v31 = vrot.slane %v1456_v58, 4  ;;  %v1566_v36 = vadd.f32 %v1565_v3, %v1392_v27 }
 0x153   :  { %4215 = vmatprep.subr.bf16.mxu1 %v4358_v37  ;;  %v1662_v7 = vadd.f32 %v1661_v55, %v1408_v38  ;;  %v2045_v24 = vrot.slane %v1472_v22, 4  ;;  %v2141_v23 = vrot.slane %v1488_v21, 4  ;;  %v1758_v53 = vadd.f32 %v1757_v4, %v1424_v42 }
 0x154   :  { %v1854_v46 = vadd.f32 %v1853_v44, %v1440_v35  ;;  %v1950_v47 = vadd.f32 %v1949_v31, %v1456_v58  ;;  %v2237_v6 = vrot.slane %v1504_v11, 4  ;;  %v1567_v37 = vrot.slane %v1566_v36, 2 }
 0x155   :  { %v1663_v12 = vrot.slane %v1662_v7, 2  ;;  %v2046_v54 = vadd.f32 %v2045_v24, %v1472_v22  ;;  %v2142_v41 = vadd.f32 %v2141_v23, %v1488_v21  ;;  %v1759_v10 = vrot.slane %v1758_v53, 2 }
 0x156   :  { %4216 = vmatpush3.bf16.msra.mxu1 %v4360_v43  ;;  %v1855_v15 = vrot.slane %v1854_v46, 2  ;;  %v1951_v29 = vrot.slane %v1950_v47, 2  ;;  %v2238_v32 = vadd.f32 %v2237_v6, %v1504_v11  ;;  %v4368_v43 = vld [vmem:[#allocation6 + $0x290] sm:$0xff]   ;;  %v1568_v27 = vadd.f32 %v1567_v37, %v1566_v36 }
 0x157   :  { %4217 = vmatprep.subr.bf16.mxu1 %v4362_v45  ;;  %v1664_v38 = vadd.f32 %v1663_v12, %v1662_v7  ;;  %v2047_v3 = vrot.slane %v2046_v54, 2  ;;  %v2143_v55 = vrot.slane %v2142_v41, 2  ;;  %v4370_v45 = vld [vmem:[#allocation6 + $0x2c8] sm:$0xff]   ;;  %v1760_v42 = vadd.f32 %v1759_v10, %v1758_v53 }
 0x158   :  { %v1856_v35 = vadd.f32 %v1855_v15, %v1854_v46  ;;  %v1952_v58 = vadd.f32 %v1951_v29, %v1950_v47  ;;  %v2239_v4 = vrot.slane %v2238_v32, 2  ;;  %v1569_v44 = vrot.slane %v1568_v27, 1  ;;  %v5205_v10 = vld [vmem:[#allocation3 + $0x28] sm:$0xff] }
 0x159   :  { %v1665_v31 = vrot.slane %v1664_v38, 1  ;;  %v2048_v22 = vadd.f32 %v2047_v3, %v2046_v54  ;;  %v2144_v21 = vadd.f32 %v2143_v55, %v2142_v41  ;;  %v1761_v24 = vrot.slane %v1760_v42, 1  ;;  %v5207_v54 = vld [vmem:[#allocation3 + $0xa8] sm:$0xff] }
 0x15a   :  { %4218 = vmatpush3.bf16.msra.mxu1 %v4364_v59  ;;  %v1857_v23 = vrot.slane %v1856_v35, 1  ;;  %v1953_v63 = vrot.slane %v1952_v58, 1  ;;  %v2240_v11 = vadd.f32 %v2239_v4, %v2238_v32  ;;  %v4372_v59 = vld [vmem:[#allocation6 + $0x288] sm:$0xff]   ;;  %v1570_v36 = vadd.f32 %v1569_v44, %v1568_v27 }
 0x15b   :  { %4219 = vmatprep.subr.bf16.mxu1 %v4366_v8  ;;  %v1666_v7 = vadd.f32 %v1665_v31, %v1664_v38  ;;  %v2049_v6 = vrot.slane %v2048_v22, 1  ;;  %v2145_v37 = vrot.slane %v2144_v21, 1  ;;  %v4374_v8 = vld [vmem:[#allocation6 + $0x2c0] sm:$0xff]   ;;  %v1762_v53 = vadd.f32 %v1761_v24, %v1760_v42  ;;  %v5214_v27 = vld [vmem:[#allocation3 + $0x1a8] sm:$0xff] }
 0x15c   :  { %v1858_v46 = vadd.f32 %v1857_v23, %v1856_v35  ;;  %v1954_v47 = vadd.f32 %v1953_v63, %v1952_v58  ;;  %v2241_v12 = vrot.slane %v2240_v11, 1  ;;  %v1244_v63 = vsel %vm1180_vm6, %v5199_v20, %v5203_v57  ;;  %v5223_v42 = vld [vmem:[#allocation3 + $0x2a8] sm:$0xff]  ;;  %v4376_v35 = vld [vmem:[#allocation6 + $0x280] sm:$0xff]  }
 0x15d   :  { %v2050_v29 = vadd.f32 %v2049_v6, %v2048_v22  ;;  %v2470_v32 = vsel %vm1168_vm0, %v1666_v7, %v1570_v36  ;;  %v2146_v3 = vadd.f32 %v2145_v37, %v2144_v21  ;;  %v5226_v44 = vld [vmem:[#allocation3 + $0x328] sm:$0xff]  ;;  %v155_v31 = vunpack.c.h.bf16 %v5205_v10 }
 0x15e   :  { %4220 = vmatpush3.bf16.msra.mxu1 %v4368_v43  ;;  %v5212_v43 = vld [vmem:[#allocation3 + $0x128] sm:$0xff]  ;;  %v2471_v55 = vsel %vm1170_vm1, %v1762_v53, %v2470_v32  ;;  %v2242_v58 = vadd.f32 %v2241_v12, %v2240_v11  ;;  %v171_v20 = vunpack.c.h.bf16 %v5207_v54  ;;  %v203_v23 = vunpack.c.h.bf16 %v5214_v27  ;;  %v4378_v11 = vld [vmem:[#allocation6 + $0x3f8] sm:$0xff]  }
 0x15f   :  { %4221 = vmatprep.subr.bf16.mxu1 %v4370_v45  ;;  %v5221_v45 = vld [vmem:[#allocation3 + $0x228] sm:$0xff]  ;;  %v2472_v4 = vsel %vm1172_vm2, %v1858_v46, %v2471_v55  ;;  %v187_v24 = vunpack.c.h.bf16 %v5212_v43  ;;  %v235_v6 = vunpack.c.h.bf16 %v5223_v42  ;;  %v251_v46 = vunpack.c.h.bf16 %v5226_v44 }
 0x160   :  { %v2473_v57 = vsel %vm1174_vm3, %v1954_v47, %v2472_v4  ;;  %v5231_v22 = vld [vmem:[#allocation3 + $0x3a8] sm:$0xff]  ;;  %v219_v7 = vunpack.c.h.bf16 %v5221_v45  ;;  %v434_v32 = vrot.slane %v171_v20, 4 }
 0x161   :  { %v267_v12 = vunpack.c.h.bf16 %v5231_v22  ;;  %v530_v4 = vrot.slane %v187_v24, 4 }
 0x162   :  { %4222 = vmatpush3.bf16.msra.mxu1 %v4372_v59  ;;  %v2474_v59 = vsel %vm1176_vm4, %v2050_v29, %v2473_v57  ;;  %v338_v29 = vrot.slane %v155_v31, 4  ;;  %v626_v57 = vrot.slane %v203_v23, 4  ;;  %v722_v36 = vrot.slane %v219_v7, 4 }
 0x163   :  { %4223 = vmatprep.subr.bf16.mxu1 %v4374_v8  ;;  %v2475_v37 = vsel %vm1178_vm5, %v2146_v3, %v2474_v59  ;;  %v435_v3 = vadd.f32 %v434_v32, %v171_v20  ;;  %v818_v59 = vrot.slane %v235_v6, 4  ;;  %v914_v8 = vrot.slane %v251_v46, 4 }
 0x164   :  { %v2476_v47 = vsel %vm1180_vm6, %v2242_v58, %v2475_v37  ;;  %v339_v21 = vadd.f32 %v338_v29, %v155_v31  ;;  %v531_v53 = vadd.f32 %v530_v4, %v187_v24  ;;  %v627_v15 = vadd.f32 %v626_v57, %v203_v23 }
 0x165   :  { %v2544_v55 = vadd.f32 %v2476_v47, %v1244_v63  ;;  %v723_v41 = vadd.f32 %v722_v36, %v219_v7  ;;  %v436_v13 = vrot.slane %v435_v3, 2  ;;  %v819_v58 = vadd.f32 %v818_v59, %v235_v6 }
 0x166   :  { %4224 = vmatpush3.bf16.msra.mxu1 %v4376_v35  ;;  %v340_v35 = vrot.slane %v339_v21, 2  ;;  %v915_v37 = vadd.f32 %v914_v8, %v251_v46  ;;  %v532_v16 = vrot.slane %v531_v53, 2  ;;  %v628_v17 = vrot.slane %v627_v15, 2 }
 0x167   :  { %4253 = vmatprep.subr.bf16.mxu1 %v4378_v11  ;;  %v2595_v38 = vpack.c.bf16 %v2544_v55, %v2544_v55  ;;  %v724_v63 = vrot.slane %v723_v41, 2  ;;  %v1010_v47 = vrot.slane %v267_v12, 4  ;;  %v437_v61 = vadd.f32 %v436_v13, %v435_v3 }
 0x168   :  { %v341_v62 = vadd.f32 %v340_v35, %v339_v21  ;;  %v820_v11 = vrot.slane %v819_v58, 2  ;;  %v916_v31 = vrot.slane %v915_v37, 2  ;;  %v533_v20 = vadd.f32 %v532_v16, %v531_v53  ;;  %v5246_v16 = vld [vmem:[#allocation3 + $0x68] sm:$0xff] }
 0x169   :  { %3825 = vmatprep.mubr.bf16.mxu0 %v2595_v38  ;;  %v629_v29 = vadd.f32 %v628_v17, %v627_v15  ;;  %v725_v32 = vadd.f32 %v724_v63, %v723_v41  ;;  %v1011_v55 = vadd.f32 %v1010_v47, %v267_v12  ;;  %v438_v23 = vrot.slane %v437_v61, 1  ;;  %v5248_v17 = vld [vmem:[#allocation3 + $0xe8] sm:$0xff] }
 0x16a   :  { %v342_v24 = vrot.slane %v341_v62, 1  ;;  %v821_v36 = vadd.f32 %v820_v11, %v819_v58  ;;  %v917_v7 = vadd.f32 %v916_v31, %v915_v37  ;;  %v534_v4 = vrot.slane %v533_v20, 1  ;;  %v5253_v58 = vld [vmem:[#allocation3 + $0x168] sm:$0xff] }
 0x16b   :  { %v630_v6 = vrot.slane %v629_v29, 1  ;;  %v726_v8 = vrot.slane %v725_v32, 1  ;;  %v1012_v38 = vrot.slane %v1011_v55, 2  ;;  %v439_v57 = vadd.f32 %v438_v23, %v437_v61  ;;  %v5255_v61 = vld [vmem:[#allocation3 + $0x1e8] sm:$0xff] }
 0x16c   :  { %v343_v46 = vadd.f32 %v342_v24, %v341_v62  ;;  %v822_v59 = vrot.slane %v821_v36, 1  ;;  %v918_v26 = vrot.slane %v917_v7, 1  ;;  %v535_v21 = vadd.f32 %v534_v4, %v533_v20  ;;  %5938 = vst [vmem:[#allocation12_spill] sm:$0xff] %v5255_v61  ;;  %v5259_v11 = vld [vmem:[#allocation3 + $0x268] sm:$0xff] }
 0x16d   :  { %v631_v13 = vadd.f32 %v630_v6, %v629_v29  ;;  %v727_v3 = vadd.f32 %v726_v8, %v725_v32  ;;  %v1013_v35 = vadd.f32 %v1012_v38, %v1011_v55  ;;  %v5263_v29 = vld [vmem:[#allocation3 + $0x2e8] sm:$0xff]  ;;  %v1394_v55 = vunpack.c.h.bf16 %v5246_v16 }
 0x16e   :  { %v823_v53 = vadd.f32 %v822_v59, %v821_v36  ;;  %v1252_v12 = vsel %vm1168_vm0, %v439_v57, %v343_v46  ;;  %v919_v37 = vadd.f32 %v918_v26, %v917_v7  ;;  %5939 = vst [vmem:[#allocation13_spill] sm:$0xff] %v5263_v29  ;;  %v5265_v32 = vld [vmem:[#allocation3 + $0x368] sm:$0xff]  ;;  %v1410_v24 = vunpack.c.h.bf16 %v5248_v17 }
 0x16f   :  { %v1014_v63 = vrot.slane %v1013_v35, 1  ;;  %v1253_v47 = vsel %vm1170_vm1, %v535_v21, %v1252_v12  ;;  %5940 = vst [vmem:[#allocation14_spill] sm:$0xff] %v5265_v32  ;;  %v5270_v36 = vld [vmem:[#allocation3 + $0x3e8] sm:$0xff]  ;;  %v1426_v7 = vunpack.c.h.bf16 %v5253_v58  ;;  %v1442_v4 = vunpack.c.h.bf16 %v5255_v61 }
 0x170   :  { %v1254_v20 = vsel %vm1172_vm2, %v631_v13, %v1253_v47  ;;  %5941 = vst [vmem:[#allocation15_spill] sm:$0xff] %v5270_v36  ;;  %v1458_v46 = vunpack.c.h.bf16 %v5259_v11  ;;  %v1474_v21 = vunpack.c.h.bf16 %v5263_v29  ;;  %v1490_v13 = vunpack.c.h.bf16 %v5265_v32 }
 0x171   :  { %v1015_v23 = vadd.f32 %v1014_v63, %v1013_v35  ;;  %v1255_v26 = vsel %vm1174_vm3, %v727_v3, %v1254_v20  ;;  %v1577_v12 = vrot.slane %v1394_v55, 4  ;;  %v1673_v63 = vrot.slane %v1410_v24, 4 }
 0x172   :  { %v1256_v6 = vsel %vm1176_vm4, %v823_v53, %v1255_v26  ;;  %v1506_v53 = vunpack.c.h.bf16 %v5270_v36  ;;  %v1769_v47 = vrot.slane %v1426_v7, 4  ;;  %v1865_v20 = vrot.slane %v1442_v4, 4 }
 0x173   :  { %v1257_v57 = vsel %vm1178_vm5, %v919_v37, %v1256_v6  ;;  %v1961_v26 = vrot.slane %v1458_v46, 4  ;;  %v1578_v38 = vadd.f32 %v1577_v12, %v1394_v55  ;;  %v2057_v37 = vrot.slane %v1474_v21, 4 }
 0x174   :  { %v5283_v3 = vsel %vm1180_vm6, %v1015_v23, %v1257_v57  ;;  %v2153_v6 = vrot.slane %v1490_v13, 4  ;;  %v2249_v59 = vrot.slane %v1506_v53, 4  ;;  %v1674_v8 = vadd.f32 %v1673_v63, %v1410_v24 }
 0x175   :  { %v1770_v31 = vadd.f32 %v1769_v47, %v1426_v7  ;;  %v1866_v62 = vadd.f32 %v1865_v20, %v1442_v4  ;;  %v1962_v15 = vadd.f32 %v1961_v26, %v1458_v46  ;;  %v1579_v41 = vrot.slane %v1578_v38, 2 }
 0x176   :  { %v2058_v23 = vadd.f32 %v2057_v37, %v1474_v21  ;;  %v2154_v57 = vadd.f32 %v2153_v6, %v1490_v13  ;;  %v2250_v14 = vadd.f32 %v2249_v59, %v1506_v53  ;;  %v1675_v35 = vrot.slane %v1674_v8, 2 }
 0x177   :  { %v1771_v28 = vrot.slane %v1770_v31, 2  ;;  %v1867_v39 = vrot.slane %v1866_v62, 2  ;;  %v1963_v33 = vrot.slane %v1962_v15, 2  ;;  %v1580_v52 = vadd.f32 %v1579_v41, %v1578_v38 }
 0x178   :  { %v2059_v25 = vrot.slane %v2058_v23, 2  ;;  %v2155_v36 = vrot.slane %v2154_v57, 2  ;;  %v2251_v32 = vrot.slane %v2250_v14, 2  ;;  %v1676_v55 = vadd.f32 %v1675_v35, %v1674_v8 }
 0x179   :  { %v1772_v12 = vadd.f32 %v1771_v28, %v1770_v31  ;;  %v1868_v61 = vadd.f32 %v1867_v39, %v1866_v62  ;;  %v1964_v29 = vadd.f32 %v1963_v33, %v1962_v15  ;;  %v1581_v24 = vrot.slane %v1580_v52, 1 }
 0x17a   :  { %v2060_v7 = vadd.f32 %v2059_v25, %v2058_v23  ;;  %v2156_v4 = vadd.f32 %v2155_v36, %v2154_v57  ;;  %v2252_v46 = vadd.f32 %v2251_v32, %v2250_v14  ;;  %v1677_v63 = vrot.slane %v1676_v55, 1 }
 0x17b   :  { %v1773_v21 = vrot.slane %v1772_v12, 1  ;;  %v1869_v13 = vrot.slane %v1868_v61, 1  ;;  %v1965_v59 = vrot.slane %v1964_v29, 1  ;;  %v1582_v53 = vadd.f32 %v1581_v24, %v1580_v52 }
 0x17c   :  { %v2061_v47 = vrot.slane %v2060_v7, 1  ;;  %v2157_v20 = vrot.slane %v2156_v4, 1  ;;  %v2253_v26 = vrot.slane %v2252_v46, 1  ;;  %v1678_v41 = vadd.f32 %v1677_v63, %v1676_v55 }
 0x17d   :  { %v1774_v38 = vadd.f32 %v1773_v21, %v1772_v12  ;;  %v1870_v37 = vadd.f32 %v1869_v13, %v1868_v61  ;;  %v1966_v6 = vadd.f32 %v1965_v59, %v1964_v29  ;;  %v5942_v33 = vunpack.c.l.bf16 %v5127_v51 }
 0x17e   :  { %v2062_v8 = vadd.f32 %v2061_v47, %v2060_v7  ;;  %v2158_v28 = vadd.f32 %v2157_v20, %v2156_v4  ;;  %v2254_v39 = vadd.f32 %v2253_v26, %v2252_v46  ;;  %v2484_v14 = vsel %vm1168_vm0, %v1678_v41, %v1582_v53 }
 0x17f   :  { %v320_v25 = vrot.slane %v5942_v33, 4  ;;  %v5943_v15 = vunpack.c.l.bf16 %v5130_v30  ;;  %v5944_v52 = vunpack.c.l.bf16 %v5133_v50  ;;  %v5945_v32 = vunpack.c.l.bf16 %v5135_v5 }
 0x180   :  { %v2485_v61 = vsel %vm1170_vm1, %v1774_v38, %v2484_v14  ;;  %v5946_v29 = vmov %v5942_v33  ;;  %v5947_v23 = vunpack.c.l.bf16 %v5138_v49  ;;  %v5948_v55 = vunpack.c.l.bf16 %v5141_v56 }
 0x181   :  { %v416_v62 = vrot.slane %v5943_v15, 4  ;;  %v512_v31 = vrot.slane %v5944_v52, 4  ;;  %v608_v36 = vrot.slane %v5945_v32, 4  ;;  %v321_v35 = vadd.f32 %v320_v25, %v5946_v29 }
 0x182   :  { %v704_v57 = vrot.slane %v5947_v23, 4  ;;  %v800_v12 = vrot.slane %v5948_v55, 4  ;;  %v2486_v24 = vsel %vm1172_vm2, %v1870_v37, %v2485_v61  ;;  %v5949_v7 = vmov %v5943_v15 }
 0x183   :  { %v417_v4 = vadd.f32 %v416_v62, %v5949_v7  ;;  %v5950_v46 = vmov %v5944_v52  ;;  %v5951_v21 = vmov %v5945_v32  ;;  %v2487_v51 = vsel %vm1174_vm3, %v1966_v6, %v2486_v24 }
 0x184   :  { %v513_v63 = vadd.f32 %v512_v31, %v5950_v46  ;;  %v609_v13 = vadd.f32 %v608_v36, %v5951_v21  ;;  %v322_v59 = vrot.slane %v321_v35, 2  ;;  %v5952_v53 = vmov %v5947_v23 }
 0x185   :  { %v705_v47 = vadd.f32 %v704_v57, %v5952_v53  ;;  %v5953_v20 = vmov %v5948_v55  ;;  %v2488_v41 = vsel %vm1176_vm4, %v2062_v8, %v2487_v51  ;;  %v418_v38 = vrot.slane %v417_v4, 2 }
 0x186   :  { %v801_v26 = vadd.f32 %v800_v12, %v5953_v20  ;;  %v514_v30 = vrot.slane %v513_v63, 2  ;;  %v610_v37 = vrot.slane %v609_v13, 2  ;;  %v2489_v50 = vsel %vm1178_vm5, %v2158_v28, %v2488_v41 }
 0x187   :  { %v323_v33 = vadd.f32 %v322_v59, %v321_v35  ;;  %v706_v25 = vrot.slane %v705_v47, 2  ;;  %v2490_v14 = vsel %vm1180_vm6, %v2254_v39, %v2489_v50  ;;  %v419_v6 = vadd.f32 %v418_v38, %v417_v4 }
 0x188   :  { %v802_v5 = vrot.slane %v801_v26, 2  ;;  %v515_v15 = vadd.f32 %v514_v30, %v513_v63  ;;  %v611_v62 = vadd.f32 %v610_v37, %v609_v13  ;;  %v2546_v49 = vadd.f32 %v2490_v14, %v5283_v3 }
 0x189   :  { %v324_v52 = vrot.slane %v323_v33, 1  ;;  %v707_v56 = vadd.f32 %v706_v25, %v705_v47  ;;  %v420_v32 = vrot.slane %v419_v6, 1  ;;  %v5954_v61 = vunpack.c.l.bf16 %v5146_v0 }
 0x18a   :  { %v803_v31 = vadd.f32 %v802_v5, %v801_v26  ;;  %v516_v8 = vrot.slane %v515_v15, 1  ;;  %v612_v36 = vrot.slane %v611_v62, 1  ;;  %v2597_v28 = vpack.c.bf16 %v2546_v49, %v2546_v49 }
 0x18b   :  { %v896_v29 = vrot.slane %v5954_v61, 4  ;;  %v325_v35 = vadd.f32 %v324_v52, %v323_v33  ;;  %v708_v23 = vrot.slane %v707_v56, 1  ;;  %v421_v55 = vadd.f32 %v420_v32, %v419_v6 }
 0x18c   :  { %v804_v57 = vrot.slane %v803_v31, 1  ;;  %v517_v39 = vadd.f32 %v516_v8, %v515_v15  ;;  %v613_v12 = vadd.f32 %v612_v36, %v611_v62  ;;  %v5955_v24 = vmov %v5954_v61  ;;  %3865 = vmatprep.mubr.bf16.mxu1 %v2597_v28 }
 0x18d   :  { %v897_v7 = vadd.f32 %v896_v29, %v5955_v24  ;;  %v709_v3 = vadd.f32 %v708_v23, %v707_v56  ;;  %v5956_v46 = vunpack.c.l.bf16 %v5148_v1  ;;  %v5957_v21 = vunpack.c.l.bf16 %v5162_v60 }
 0x18e   :  { %v805_v4 = vadd.f32 %v804_v57, %v803_v31  ;;  %v1231_v59 = vsel %vm1168_vm0, %v421_v55, %v325_v35  ;;  %v5958_v53 = vunpack.c.l.bf16 %v5166_v9  ;;  %v5959_v20 = vunpack.c.l.bf16 %v5170_v48 }
 0x18f   :  { %v992_v63 = vrot.slane %v5956_v46, 4  ;;  %v1559_v13 = vrot.slane %v5957_v21, 4  ;;  %v898_v51 = vrot.slane %v897_v7, 2  ;;  %v5960_v0 = vmov %v5956_v46 }
 0x190   :  { %v1655_v47 = vrot.slane %v5958_v53, 4  ;;  %v1751_v26 = vrot.slane %v5959_v20, 4  ;;  %v1232_v38 = vsel %vm1170_vm1, %v517_v39, %v1231_v59  ;;  %v5961_v30 = vmov %v5957_v21 }
 0x191   :  { %v993_v41 = vadd.f32 %v992_v63, %v5960_v0  ;;  %v1560_v37 = vadd.f32 %v1559_v13, %v5961_v30  ;;  %v5962_v50 = vunpack.c.l.bf16 %v5172_v18  ;;  %v899_v25 = vadd.f32 %v898_v51, %v897_v7 }
 0x192   :  { %v1233_v5 = vsel %vm1172_vm2, %v613_v12, %v1232_v38  ;;  %v5963_v14 = vmov %v5958_v53  ;;  %v5964_v15 = vmov %v5959_v20  ;;  %v5966_v9 = vunpack.c.l.bf16 %v5176_v40 }
 0x193   :  { %v1847_v33 = vrot.slane %v5962_v50, 4  ;;  %v1656_v6 = vadd.f32 %v1655_v47, %v5963_v14  ;;  %v1752_v62 = vadd.f32 %v1751_v26, %v5964_v15  ;;  %v994_v49 = vrot.slane %v993_v41, 2 }
 0x194   :  { %v1234_v1 = vsel %vm1174_vm3, %v709_v3, %v1233_v5  ;;  %v1561_v52 = vrot.slane %v1560_v37, 2  ;;  %v5965_v56 = vmov %v5962_v50  ;;  %v900_v31 = vrot.slane %v899_v25, 1 }
 0x195   :  { %v1848_v60 = vadd.f32 %v1847_v33, %v5965_v56  ;;  %v1235_v32 = vsel %vm1176_vm4, %v805_v4, %v1234_v1  ;;  %v1657_v8 = vrot.slane %v1656_v6, 2  ;;  %v1753_v36 = vrot.slane %v1752_v62, 2 }
 0x196   :  { %v995_v61 = vadd.f32 %v994_v49, %v993_v41  ;;  %v1562_v29 = vadd.f32 %v1561_v52, %v1560_v37  ;;  %v1943_v35 = vrot.slane %v5966_v9, 4  ;;  %v901_v48 = vadd.f32 %v900_v31, %v899_v25 }
 0x197   :  { %v1849_v28 = vrot.slane %v1848_v60, 2  ;;  %v1658_v23 = vadd.f32 %v1657_v8, %v1656_v6  ;;  %v1754_v57 = vadd.f32 %v1753_v36, %v1752_v62  ;;  %v5967_v55 = vunpack.c.l.bf16 %v5178_v34 }
 0x198   :  { %v996_v12 = vrot.slane %v995_v61, 1  ;;  %v1563_v18 = vrot.slane %v1562_v29, 1  ;;  %v5968_v7 = vmov %v5966_v9  ;;  %v1236_v4 = vsel %vm1178_vm5, %v901_v48, %v1235_v32 }
 0x199   :  { %v2039_v39 = vrot.slane %v5967_v55, 4  ;;  %v1850_v24 = vadd.f32 %v1849_v28, %v1848_v60  ;;  %v1944_v3 = vadd.f32 %v1943_v35, %v5968_v7  ;;  %v1659_v46 = vrot.slane %v1658_v23, 1 }
 0x19a   :  { %v1755_v63 = vrot.slane %v1754_v57, 1  ;;  %v5969_v21 = vmov %v5967_v55  ;;  %v997_v51 = vadd.f32 %v996_v12, %v995_v61  ;;  %v1564_v59 = vadd.f32 %v1563_v18, %v1562_v29 }
 0x19b   :  { %v2040_v13 = vadd.f32 %v2039_v39, %v5969_v21  ;;  %v1851_v53 = vrot.slane %v1850_v24, 1  ;;  %v1945_v47 = vrot.slane %v1944_v3, 2  ;;  %v1660_v20 = vadd.f32 %v1659_v46, %v1658_v23 }
 0x19c   :  { %v1756_v26 = vadd.f32 %v1755_v63, %v1754_v57  ;;  %v5970_v41 = vunpack.c.l.bf16 %v5182_v2  ;;  %v1237_v40 = vsel %vm1180_vm6, %v997_v51, %v1236_v4  ;;  %v5971_v50 = vunpack.c.l.bf16 %v5187_v19 }
 0x19d   :  { %v2041_v0 = vrot.slane %v2040_v13, 2  ;;  %v1852_v30 = vadd.f32 %v1851_v53, %v1850_v24  ;;  %v1946_v37 = vadd.f32 %v1945_v47, %v1944_v3  ;;  %v2463_v14 = vsel %vm1168_vm0, %v1660_v20, %v1564_v59 }
 0x19e   :  { %v2135_v38 = vrot.slane %v5970_v41, 4  ;;  %v2231_v33 = vrot.slane %v5971_v50, 4  ;;  %v5972_v34 = vmov %v5970_v41  ;;  %v5973_v6 = vunpack.c.l.bf16 %v5205_v10 }
 0x19f   :  { %v2042_v25 = vadd.f32 %v2041_v0, %v2040_v13  ;;  %v1947_v62 = vrot.slane %v1946_v37, 1  ;;  %v5974_v49 = vmov %v5971_v50  ;;  %v2464_v52 = vsel %vm1170_vm1, %v1756_v26, %v2463_v14 }
 0x1a0   :  { %v2136_v5 = vadd.f32 %v2135_v38, %v5972_v34  ;;  %v332_v15 = vrot.slane %v5973_v6, 4  ;;  %v2232_v1 = vadd.f32 %v2231_v33, %v5974_v49  ;;  %v5975_v56 = vunpack.c.l.bf16 %v5207_v54 }
 0x1a1   :  { %v2043_v31 = vrot.slane %v2042_v25, 1  ;;  %v2465_v8 = vsel %vm1172_vm2, %v1852_v30, %v2464_v52  ;;  %v5976_v2 = vmov %v5973_v6  ;;  %v1948_v61 = vadd.f32 %v1947_v62, %v1946_v37 }
 0x1a2   :  { %v428_v60 = vrot.slane %v5975_v56, 4  ;;  %v2137_v32 = vrot.slane %v2136_v5, 2  ;;  %v333_v36 = vadd.f32 %v332_v15, %v5976_v2  ;;  %v2233_v29 = vrot.slane %v2232_v1, 2 }
 0x1a3   :  { %v5977_v28 = vmov %v5975_v56  ;;  %v5978_v19 = vunpack.c.l.bf16 %v5212_v43  ;;  %v2044_v48 = vadd.f32 %v2043_v31, %v2042_v25  ;;  %v5979_v55 = vunpack.c.l.bf16 %v5214_v27 }
 0x1a4   :  { %v429_v9 = vadd.f32 %v428_v60, %v5977_v28  ;;  %v2138_v23 = vadd.f32 %v2137_v32, %v2136_v5  ;;  %v334_v57 = vrot.slane %v333_v36, 2  ;;  %v2234_v12 = vadd.f32 %v2233_v29, %v2232_v1 }
 0x1a5   :  { %v524_v35 = vrot.slane %v5978_v19, 4  ;;  %v620_v39 = vrot.slane %v5979_v55, 4  ;;  %v2466_v18 = vsel %vm1174_vm3, %v1948_v61, %v2465_v8  ;;  %v5980_v10 = vmov %v5978_v19 }
 0x1a6   :  { %v430_v24 = vrot.slane %v429_v9, 2  ;;  %v2139_v3 = vrot.slane %v2138_v23, 1  ;;  %v2467_v54 = vsel %vm1176_vm4, %v2044_v48, %v2466_v18  ;;  %v335_v4 = vadd.f32 %v334_v57, %v333_v36 }
 0x1a7   :  { %v525_v7 = vadd.f32 %v524_v35, %v5980_v10  ;;  %v5981_v46 = vmov %v5979_v55  ;;  %v2235_v21 = vrot.slane %v2234_v12, 1  ;;  %v5982_v59 = vunpack.c.l.bf16 %v5221_v45 }
 0x1a8   :  { %v621_v63 = vadd.f32 %v620_v39, %v5981_v46  ;;  %v431_v13 = vadd.f32 %v430_v24, %v429_v9  ;;  %v2140_v47 = vadd.f32 %v2139_v3, %v2138_v23  ;;  %v336_v20 = vrot.slane %v335_v4, 1  ;;  %v4383_v46 = vld [vmem:[#allocation6 + $0x330] sm:$0xff]  }
 0x1a9   :  { %v526_v51 = vrot.slane %v525_v7, 2  ;;  %v716_v53 = vrot.slane %v5982_v59, 4  ;;  %v5983_v0 = vunpack.c.l.bf16 %v5223_v42  ;;  %v2236_v41 = vadd.f32 %v2235_v21, %v2234_v12  ;;  %v4379_v42 = vld [vmem:[#allocation6 + $0x338] sm:$0xff]  }
 0x1aa   :  { %v622_v26 = vrot.slane %v621_v63, 2  ;;  %v432_v38 = vrot.slane %v431_v13, 1  ;;  %v5984_v37 = vmov %v5982_v59  ;;  %v2468_v27 = vsel %vm1178_vm5, %v2140_v47, %v2467_v54  ;;  %v5996_v59 = vld [vmem:[#allocation12_spill] sm:$0xff] }
 0x1ab   :  { %v812_v43 = vrot.slane %v5983_v0, 4  ;;  %v527_v30 = vadd.f32 %v526_v51, %v525_v7  ;;  %v717_v50 = vadd.f32 %v716_v53, %v5984_v37  ;;  %v337_v33 = vadd.f32 %v336_v20, %v335_v4  ;;  %v4385_v20 = vld [vmem:[#allocation6 + $0x368] sm:$0xff]  }
 0x1ac   :  { %v623_v25 = vadd.f32 %v622_v26, %v621_v63  ;;  %v5985_v34 = vmov %v5983_v0  ;;  %v2469_v14 = vsel %vm1180_vm6, %v2236_v41, %v2468_v27  ;;  %v433_v6 = vadd.f32 %v432_v38, %v431_v13  ;;  %v5994_v63 = vld [vmem:[#allocation13_spill] sm:$0xff]  ;;  %v5998_v26 = vld [vmem:[#allocation14_spill] sm:$0xff] }
 0x1ad   :  { %v813_v5 = vadd.f32 %v812_v43, %v5985_v34  ;;  %v528_v15 = vrot.slane %v527_v30, 1  ;;  %v718_v62 = vrot.slane %v717_v50, 2  ;;  %v2543_v49 = vadd.f32 %v2469_v14, %v1237_v40  ;;  %v4381_v40 = vld [vmem:[#allocation6 + $0x370] sm:$0xff]   ;;  %v4387_v14 = vld [vmem:[#allocation6 + $0x328] sm:$0xff]  }
 0x1ae   :  { %v624_v1 = vrot.slane %v623_v25, 1  ;;  %v5986_v56 = vunpack.c.l.bf16 %v5226_v44  ;;  %v5987_v32 = vunpack.c.l.bf16 %v5231_v22  ;;  %v1245_v2 = vsel %vm1168_vm0, %v433_v6, %v337_v33  ;;  %v6001_v6 = vld [vmem:[#allocation15_spill] sm:$0xff] }
 0x1af   :  { %v814_v52 = vrot.slane %v813_v5, 2  ;;  %v529_v45 = vadd.f32 %v528_v15, %v527_v30  ;;  %v719_v31 = vadd.f32 %v718_v62, %v717_v50  ;;  %v2594_v36 = vpack.c.bf16 %v2543_v49, %v2543_v49 }
 0x1b0   :  { %v908_v60 = vrot.slane %v5986_v56, 4  ;;  %v1004_v8 = vrot.slane %v5987_v32, 4  ;;  %v625_v61 = vadd.f32 %v624_v1, %v623_v25  ;;  %v5988_v28 = vmov %v5986_v56 }
 0x1b1   :  { %v815_v29 = vadd.f32 %v814_v52, %v813_v5  ;;  %v720_v19 = vrot.slane %v719_v31, 1  ;;  %v5989_v35 = vmov %v5987_v32  ;;  %v1246_v23 = vsel %vm1170_vm1, %v529_v45, %v1245_v2  ;;  %3826 = vmatmul.mubr.bf16.vlgmr.msra.gmra.mxu0 %v2594_v36 }
 0x1b2   :  { %v909_v9 = vadd.f32 %v908_v60, %v5988_v28  ;;  %v1005_v48 = vadd.f32 %v1004_v8, %v5989_v35  ;;  %v5990_v57 = vunpack.c.l.bf16 %v5246_v16  ;;  %v1457_v39 = vunpack.c.l.bf16 %v5259_v11  ;;  %4232 = vmatpush3.bf16.msra.mxu0 %v4379_v42  ;;  %v4391_v28 = vld [vmem:[#allocation6 + $0x320] sm:$0xff]  }
 0x1b3   :  { %v816_v12 = vrot.slane %v815_v29, 1  ;;  %v5991_v24 = vunpack.c.l.bf16 %v5248_v17  ;;  %v721_v44 = vadd.f32 %v720_v19, %v719_v31  ;;  %v5993_v22 = vunpack.c.l.bf16 %v5253_v58  ;;  %4233 = vmatprep.subr.bf16.mxu0 %v4381_v40  ;;  %v4389_v58 = vld [vmem:[#allocation6 + $0x360] sm:$0xff]  }
 0x1b4   :  { %v1571_v55 = vrot.slane %v5990_v57, 4  ;;  %v910_v18 = vrot.slane %v909_v9, 2  ;;  %v1006_v7 = vrot.slane %v1005_v48, 2  ;;  %v5992_v3 = vmov %v5990_v57 }
 0x1b5   :  { %v1667_v10 = vrot.slane %v5991_v24, 4  ;;  %v1763_v4 = vrot.slane %v5993_v22, 4  ;;  %v1473_v21 = vunpack.c.l.bf16 %v5994_v63  ;;  %v1247_v11 = vsel %vm1172_vm2, %v625_v61, %v1246_v23 }
 0x1b6   :  { %v1572_v54 = vadd.f32 %v1571_v55, %v5992_v3  ;;  %v5995_v13 = vmov %v5991_v24  ;;  %v5997_v53 = vunpack.c.l.bf16 %v5996_v59  ;;  %v1489_v16 = vunpack.c.l.bf16 %v5998_v26  ;;  %4234 = vmatpush3.bf16.msra.mxu0 %v4383_v46  ;;  %v5439_v59 = vld [vmem:[#allocation3 + $0x1b0] sm:$0xff] }
 0x1b7   :  { %v1668_v51 = vadd.f32 %v1667_v10, %v5995_v13  ;;  %v911_v0 = vadd.f32 %v910_v18, %v909_v9  ;;  %v5999_v41 = vmov %v5993_v22  ;;  %v817_v30 = vadd.f32 %v816_v12, %v815_v29  ;;  %4235 = vmatprep.subr.bf16.mxu0 %v4385_v20  ;;  %v5432_v22 = vld [vmem:[#allocation3 + $0x30] sm:$0xff] }
 0x1b8   :  { %v1859_v47 = vrot.slane %v5997_v53, 4  ;;  %v1573_v43 = vrot.slane %v1572_v54, 2  ;;  %v1764_v38 = vadd.f32 %v1763_v4, %v5999_v41  ;;  %v1007_v37 = vadd.f32 %v1006_v7, %v1005_v48  ;;  %v4393_v48 = vld [vmem:[#allocation6 + $0x358] sm:$0xff]   ;;  %v5434_v4 = vld [vmem:[#allocation3 + $0xb0] sm:$0xff] }
 0x1b9   :  { %v1669_v50 = vrot.slane %v1668_v51, 2  ;;  %v6000_v27 = vmov %v5997_v53  ;;  %v1248_v17 = vsel %vm1174_vm3, %v721_v44, %v1247_v11  ;;  %v1955_v5 = vrot.slane %v1457_v39, 4  ;;  %v4397_v13 = vld [vmem:[#allocation6 + $0x350] sm:$0xff]  }
 0x1ba   :  { %v1860_v33 = vadd.f32 %v1859_v47, %v6000_v27  ;;  %v1574_v25 = vadd.f32 %v1573_v43, %v1572_v54  ;;  %v1765_v34 = vrot.slane %v1764_v38, 2  ;;  %v1505_v15 = vunpack.c.l.bf16 %v6001_v6  ;;  %4236 = vmatpush3.bf16.msra.mxu0 %v4387_v14  ;;  %v4395_v54 = vld [vmem:[#allocation6 + $0x318] sm:$0xff]   ;;  %v5442_v26 = vld [vmem:[#allocation3 + $0x230] sm:$0xff]  ;;  %v4401_v14 = vld [vmem:[#allocation6 + $0x348] sm:$0xff]  }
 0x1bb   :  { %v1670_v62 = vadd.f32 %v1669_v50, %v1668_v51  ;;  %v2051_v1 = vrot.slane %v1473_v21, 4  ;;  %v912_v52 = vrot.slane %v911_v0, 1  ;;  %v1956_v45 = vadd.f32 %v1955_v5, %v1457_v39  ;;  %4237 = vmatprep.subr.bf16.mxu0 %v4389_v58  ;;  %v5437_v51 = vld [vmem:[#allocation3 + $0x130] sm:$0xff] }
 0x1bc   :  { %v1861_v49 = vrot.slane %v1860_v33, 2  ;;  %v1575_v56 = vrot.slane %v1574_v25, 1  ;;  %v1766_v60 = vadd.f32 %v1765_v34, %v1764_v38  ;;  %v1249_v31 = vsel %vm1176_vm4, %v817_v30, %v1248_v17  ;;  %v5444_v43 = vld [vmem:[#allocation3 + $0x2b0] sm:$0xff] }
 0x1bd   :  { %v1671_v32 = vrot.slane %v1670_v62, 1  ;;  %v2052_v2 = vadd.f32 %v2051_v1, %v1473_v21  ;;  %v1008_v42 = vrot.slane %v1007_v37, 1  ;;  %v1957_v29 = vrot.slane %v1956_v45, 2  ;;  %v4399_v50 = vld [vmem:[#allocation6 + $0x310] sm:$0xff]  }
 0x1be   :  { %v1862_v8 = vadd.f32 %v1861_v49, %v1860_v33  ;;  %v1576_v36 = vadd.f32 %v1575_v56, %v1574_v25  ;;  %v1767_v61 = vrot.slane %v1766_v60, 1  ;;  %v2147_v35 = vrot.slane %v1489_v16, 4  ;;  %4238 = vmatpush3.bf16.msra.mxu0 %v4391_v28  ;;  %v5449_v27 = vld [vmem:[#allocation3 + $0x330] sm:$0xff] }
 0x1bf   :  { %v1672_v9 = vadd.f32 %v1671_v32, %v1670_v62  ;;  %v2053_v19 = vrot.slane %v2052_v2, 2  ;;  %v913_v23 = vadd.f32 %v912_v52, %v911_v0  ;;  %v1958_v55 = vadd.f32 %v1957_v29, %v1956_v45  ;;  %4239 = vmatprep.subr.bf16.mxu0 %v4393_v48  ;;  %v5451_v33 = vld [vmem:[#allocation3 + $0x3b0] sm:$0xff]  ;;  %v4403_v32 = vld [vmem:[#allocation6 + $0x308] sm:$0xff]  }
 0x1c0   :  { %v1863_v40 = vrot.slane %v1862_v8, 1  ;;  %v1768_v57 = vadd.f32 %v1767_v61, %v1766_v60  ;;  %v2243_v39 = vrot.slane %v1505_v15, 4  ;;  %v2148_v24 = vadd.f32 %v2147_v35, %v1489_v16  ;;  %v4405_v61 = vld [vmem:[#allocation6 + $0x340] sm:$0xff]  }
 0x1c1   :  { %v2054_v18 = vadd.f32 %v2053_v19, %v2052_v2  ;;  %v2477_v10 = vsel %vm1168_vm0, %v1672_v9, %v1576_v36  ;;  %v1959_v44 = vrot.slane %v1958_v55, 1  ;;  %v1009_v46 = vadd.f32 %v1008_v42, %v1007_v37 }
 0x1c2   :  { %v1864_v12 = vadd.f32 %v1863_v40, %v1862_v8  ;;  %v2244_v7 = vadd.f32 %v2243_v39, %v1505_v15  ;;  %v2478_v3 = vsel %vm1170_vm1, %v1768_v57, %v2477_v10  ;;  %v2149_v21 = vrot.slane %v2148_v24, 2  ;;  %4240 = vmatpush3.bf16.msra.mxu0 %v4395_v54  ;;  %v4382_v54 = vld [vmem:[#allocation6 + $0x3f0] sm:$0xff]  }
 0x1c3   :  { %v2055_v63 = vrot.slane %v2054_v18, 1  ;;  %v1250_v53 = vsel %vm1178_vm5, %v913_v23, %v1249_v31  ;;  %v1960_v47 = vadd.f32 %v1959_v44, %v1958_v55  ;;  %v157_v41 = vunpack.c.h.bf16 %v5432_v22  ;;  %4241 = vmatprep.subr.bf16.mxu0 %v4397_v13 }
 0x1c4   :  { %v2479_v11 = vsel %vm1172_vm2, %v1864_v12, %v2478_v3  ;;  %v2245_v20 = vrot.slane %v2244_v7, 2  ;;  %v2150_v0 = vadd.f32 %v2149_v21, %v2148_v24  ;;  %v173_v38 = vunpack.c.h.bf16 %v5434_v4  ;;  %v4380_v12 = vld [vmem:[#allocation6 + $0x3b8] sm:$0xff]  }
 0x1c5   :  { %v2056_v16 = vadd.f32 %v2055_v63, %v2054_v18  ;;  %v2480_v37 = vsel %vm1174_vm3, %v1960_v47, %v2479_v11  ;;  %v189_v17 = vunpack.c.h.bf16 %v5437_v51  ;;  %v205_v25 = vunpack.c.h.bf16 %v5439_v59  ;;  %v4407_v18 = vld [vmem:[#allocation6 + $0x300] sm:$0xff]  }
 0x1c6   :  { %v2246_v30 = vadd.f32 %v2245_v20, %v2244_v7  ;;  %v1251_v34 = vsel %vm1180_vm6, %v1009_v46, %v1250_v53  ;;  %v2151_v5 = vrot.slane %v2150_v0, 1  ;;  %v221_v15 = vunpack.c.h.bf16 %v5442_v26  ;;  %4242 = vmatpush3.bf16.msra.mxu0 %v4399_v50 }
 0x1c7   :  { %v2481_v49 = vsel %vm1176_vm4, %v2056_v16, %v2480_v37  ;;  %v237_v58 = vunpack.c.h.bf16 %v5444_v43  ;;  %v253_v56 = vunpack.c.h.bf16 %v5449_v27  ;;  %v269_v60 = vunpack.c.h.bf16 %v5451_v33  ;;  %4243 = vmatprep.subr.bf16.mxu0 %v4401_v14  ;;  %v4384_v37 = vld [vmem:[#allocation6 + $0x3b0] sm:$0xff]  }
 0x1c8   :  { %v2247_v62 = vrot.slane %v2246_v30, 1  ;;  %v2152_v52 = vadd.f32 %v2151_v5, %v2150_v0  ;;  %v350_v45 = vrot.slane %v157_v41, 4  ;;  %v446_v8 = vrot.slane %v173_v38, 4  ;;  %v4386_v5 = vld [vmem:[#allocation6 + $0x3e8] sm:$0xff]  }
 0x1c9   :  { %v542_v2 = vrot.slane %v189_v17, 4  ;;  %v638_v42 = vrot.slane %v205_v25, 4  ;;  %v734_v28 = vrot.slane %v221_v15, 4  ;;  %v830_v9 = vrot.slane %v237_v58, 4 }
 0x1ca   :  { %v2248_v31 = vadd.f32 %v2247_v62, %v2246_v30  ;;  %v2482_v36 = vsel %vm1178_vm5, %v2152_v52, %v2481_v49  ;;  %v351_v29 = vadd.f32 %v350_v45, %v157_v41  ;;  %v447_v19 = vadd.f32 %v446_v8, %v173_v38  ;;  %4244 = vmatpush3.bf16.msra.mxu0 %v4403_v32  ;;  %v5465_v38 = vpop.f32.mrf.mxu0  ;;  %v5467_v30 = vpop.f32.mrf.mxu1 }
 0x1cb   :  { %v543_v35 = vadd.f32 %v542_v2, %v189_v17  ;;  %v639_v48 = vadd.f32 %v638_v42, %v205_v25  ;;  %v735_v55 = vadd.f32 %v734_v28, %v221_v15  ;;  %v831_v39 = vadd.f32 %v830_v9, %v237_v58  ;;  %4245 = vmatprep.subr.bf16.mxu0 %v4405_v61  ;;  %v5476_v61 = vld [vmem:[#allocation3 + $0x70] sm:$0xff]  ;;  %v4388_v9 = vld [vmem:[#allocation6 + $0x3a8] sm:$0xff]  }
 0x1cc   :  { %v2483_v40 = vsel %vm1180_vm6, %v2248_v31, %v2482_v36  ;;  %v352_v57 = vrot.slane %v351_v29, 2  ;;  %v448_v24 = vrot.slane %v447_v19, 2  ;;  %v926_v7 = vrot.slane %v253_v56, 4  ;;  %6002 = vst [vmem:[#allocation13_spill] sm:$0xff] %v5465_v38  ;;  %6003 = vst [vmem:[#allocation12_spill] sm:$0xff] %v5467_v30  ;;  %v5469_v58 = vpop.f32.mrf.mxu0  ;;  %v5471_v52 = vpop.f32.mrf.mxu1 }
 0x1cd   :  { %v2545_v23 = vadd.f32 %v2483_v40, %v1251_v34  ;;  %v544_v10 = vrot.slane %v543_v35, 2  ;;  %v640_v44 = vrot.slane %v639_v48, 2  ;;  %v736_v63 = vrot.slane %v735_v55, 2  ;;  %6004 = vst [vmem:[#allocation14_spill] sm:$0xff] %v5469_v58  ;;  %6005 = vst [vmem:[#allocation15_spill] sm:$0xff] %v5471_v52 }
 0x1ce   :  { %v353_v46 = vadd.f32 %v352_v57, %v351_v29  ;;  %v832_v21 = vrot.slane %v831_v39, 2  ;;  %v449_v11 = vadd.f32 %v448_v24, %v447_v19  ;;  %v927_v47 = vadd.f32 %v926_v7, %v253_v56  ;;  %4246 = vmatpush3.bf16.msra.mxu0 %v4407_v18  ;;  %v5478_v29 = vld [vmem:[#allocation3 + $0xf0] sm:$0xff]  ;;  %v4140_v28 = vpop.f32.mrf.mxu1 }
 0x1cf   :  { %v2596_v3 = vpack.c.bf16 %v2545_v23, %v2545_v23  ;;  %v545_v13 = vadd.f32 %v544_v10, %v543_v35  ;;  %v641_v53 = vadd.f32 %v640_v44, %v639_v48  ;;  %v737_v16 = vadd.f32 %v736_v63, %v735_v55  ;;  %v5483_v23 = vld [vmem:[#allocation3 + $0x170] sm:$0xff]  ;;  %v4390_v55 = vld [vmem:[#allocation6 + $0x3e0] sm:$0xff]  }
 0x1d0   :  { %v354_v20 = vrot.slane %v353_v46, 1  ;;  %v833_v0 = vadd.f32 %v832_v21, %v831_v39  ;;  %v1022_v41 = vrot.slane %v269_v60, 4  ;;  %v450_v50 = vrot.slane %v449_v11, 1  ;;  %v5485_v57 = vld [vmem:[#allocation3 + $0x1f0] sm:$0xff] }
 0x1d1   :  { %3866 = vmatmul.mubr.bf16.vlgmr.msra.gmra.mxu1 %v2596_v3  ;;  %v546_v17 = vrot.slane %v545_v13, 1  ;;  %v642_v25 = vrot.slane %v641_v53, 1  ;;  %v928_v34 = vrot.slane %v927_v47, 2  ;;  %v738_v15 = vrot.slane %v737_v16, 1  ;;  %v5491_v10 = vld [vmem:[#allocation3 + $0x270] sm:$0xff]  ;;  %v4141_v3 = vpop.f32.mrf.mxu1 }
 0x1d2   :  { %4254 = vmatpush3.bf16.msra.mxu1 %v4380_v12  ;;  %v355_v14 = vadd.f32 %v354_v20, %v353_v46  ;;  %v834_v62 = vrot.slane %v833_v0, 1  ;;  %v1023_v49 = vadd.f32 %v1022_v41, %v269_v60  ;;  %v451_v56 = vadd.f32 %v450_v50, %v449_v11  ;;  %v4118_v60 = vpop.f32.mrf.mxu0  ;;  %v5493_v44 = vld [vmem:[#allocation3 + $0x2f0] sm:$0xff] }
 0x1d3   :  { %4255 = vmatprep.subr.bf16.mxu1 %v4382_v54  ;;  %v547_v45 = vadd.f32 %v546_v17, %v545_v13  ;;  %v643_v31 = vadd.f32 %v642_v25, %v641_v53  ;;  %v929_v32 = vadd.f32 %v928_v34, %v927_v47  ;;  %v739_v35 = vadd.f32 %v738_v15, %v737_v16  ;;  %v5496_v63 = vld [vmem:[#allocation3 + $0x370] sm:$0xff]  ;;  %v4394_v25 = vld [vmem:[#allocation6 + $0x3d8] sm:$0xff]  }
 0x1d4   :  { %v1024_v36 = vrot.slane %v1023_v49, 2  ;;  %v1266_v48 = vsel %vm1168_vm0, %v451_v56, %v355_v14  ;;  %v4119_v7 = vpop.f32.mrf.mxu0  ;;  %v835_v54 = vadd.f32 %v834_v62, %v833_v0  ;;  %v1396_v21 = vunpack.c.h.bf16 %v5476_v61  ;;  %v5500_v13 = vld [vmem:[#allocation3 + $0x3f0] sm:$0xff]  ;;  %v4392_v0 = vld [vmem:[#allocation6 + $0x3a0] sm:$0xff]  }
 0x1d5   :  { %v930_v12 = vrot.slane %v929_v32, 1  ;;  %v1267_v24 = vsel %vm1170_vm1, %v547_v45, %v1266_v48  ;;  %v1412_v11 = vunpack.c.h.bf16 %v5478_v29  ;;  %v1428_v20 = vunpack.c.h.bf16 %v5483_v23 }
 0x1d6   :  { %4256 = vmatpush3.bf16.msra.mxu1 %v4384_v37  ;;  %v5488_v18 = vadd.f32 %v1024_v36, %v1023_v49  ;;  %v1268_v46 = vsel %vm1172_vm2, %v643_v31, %v1267_v24  ;;  %v1444_v16 = vunpack.c.h.bf16 %v5485_v57  ;;  %v1460_v50 = vunpack.c.h.bf16 %v5491_v10 }
 0x1d7   :  { %4257 = vmatprep.subr.bf16.mxu1 %v4386_v5  ;;  %v1269_v41 = vsel %vm1174_vm3, %v739_v35, %v1268_v46  ;;  %v1476_v17 = vunpack.c.h.bf16 %v5493_v44  ;;  %v5510_v34 = vadd.f32 %v930_v12, %v929_v32  ;;  %v1492_v15 = vunpack.c.h.bf16 %v5496_v63  ;;  %v4396_v32 = vld [vmem:[#allocation6 + $0x398] sm:$0xff]   ;;  %v4398_v12 = vld [vmem:[#allocation6 + $0x3d0] sm:$0xff]  }
 0x1d8   :  { %v1026_v5 = vrot.slane %v5488_v18, 1  ;;  %v1508_v49 = vunpack.c.h.bf16 %v5500_v13  ;;  %v1589_v56 = vrot.slane %v1396_v21, 4  ;;  %v1685_v45 = vrot.slane %v1412_v11, 4 }
 0x1d9   :  { %v5518_v31 = vsel %vm1176_vm4, %v835_v54, %v1269_v41  ;;  %v1781_v36 = vrot.slane %v1428_v20, 4  ;;  %v1877_v60 = vrot.slane %v1444_v16, 4  ;;  %v1973_v28 = vrot.slane %v1460_v50, 4 }
 0x1da   :  { %4258 = vmatpush3.bf16.msra.mxu1 %v4388_v9  ;;  %v1590_v9 = vadd.f32 %v1589_v56, %v1396_v21  ;;  %v1686_v35 = vadd.f32 %v1685_v45, %v1412_v11  ;;  %v2069_v48 = vrot.slane %v1476_v17, 4  ;;  %v2261_v46 = vrot.slane %v1508_v49, 4 }
 0x1db   :  { %4259 = vmatprep.subr.bf16.mxu1 %v4390_v55  ;;  %v2165_v55 = vrot.slane %v1492_v15, 4  ;;  %v1782_v24 = vadd.f32 %v1781_v36, %v1428_v20  ;;  %v1878_v7 = vadd.f32 %v1877_v60, %v1444_v16  ;;  %v1974_v3 = vadd.f32 %v1973_v28, %v1460_v50 }
 0x1dc   :  { %v1591_v62 = vrot.slane %v1590_v9, 2  ;;  %v1687_v14 = vrot.slane %v1686_v35, 2  ;;  %v2070_v37 = vadd.f32 %v2069_v48, %v1476_v17  ;;  %v2262_v39 = vadd.f32 %v2261_v46, %v1508_v49 }
 0x1dd   :  { %v2166_v54 = vadd.f32 %v2165_v55, %v1492_v15  ;;  %v1783_v41 = vrot.slane %v1782_v24, 2  ;;  %v1879_v47 = vrot.slane %v1878_v7, 2  ;;  %v1975_v53 = vrot.slane %v1974_v3, 2 }
 0x1de   :  { %4260 = vmatpush3.bf16.msra.mxu1 %v4392_v0  ;;  %v4400_v0 = vld [vmem:[#allocation6 + $0x390] sm:$0xff]   ;;  %v1592_v21 = vadd.f32 %v1591_v62, %v1590_v9  ;;  %v1688_v11 = vadd.f32 %v1687_v14, %v1686_v35  ;;  %v2071_v56 = vrot.slane %v2070_v37, 2  ;;  %v2263_v36 = vrot.slane %v2262_v39, 2 }
 0x1df   :  { %4261 = vmatprep.subr.bf16.mxu1 %v4394_v25  ;;  %v2167_v45 = vrot.slane %v2166_v54, 2  ;;  %v4402_v25 = vld [vmem:[#allocation6 + $0x3c8] sm:$0xff]   ;;  %v1784_v20 = vadd.f32 %v1783_v41, %v1782_v24  ;;  %v1880_v16 = vadd.f32 %v1879_v47, %v1878_v7  ;;  %v1976_v50 = vadd.f32 %v1975_v53, %v1974_v3  ;;  %v5520_v3 = vld [vmem:[#allocation3 + $0x38] sm:$0xff] }
 0x1e0   :  { %v1593_v60 = vrot.slane %v1592_v21, 1  ;;  %v1689_v28 = vrot.slane %v1688_v11, 1  ;;  %v2072_v17 = vadd.f32 %v2071_v56, %v2070_v37  ;;  %v2264_v49 = vadd.f32 %v2263_v36, %v2262_v39  ;;  %v5522_v37 = vld [vmem:[#allocation3 + $0xb8] sm:$0xff] }
 0x1e1   :  { %v2168_v15 = vadd.f32 %v2167_v45, %v2166_v54  ;;  %v1785_v48 = vrot.slane %v1784_v20, 1  ;;  %v1881_v55 = vrot.slane %v1880_v16, 1  ;;  %v1977_v19 = vrot.slane %v1976_v50, 1 }
 0x1e2   :  { %4262 = vmatpush3.bf16.msra.mxu1 %v4396_v32  ;;  %v4404_v32 = vld [vmem:[#allocation6 + $0x388] sm:$0xff]   ;;  %v1594_v62 = vadd.f32 %v1593_v60, %v1592_v21  ;;  %v1690_v14 = vadd.f32 %v1689_v28, %v1688_v11  ;;  %v2073_v9 = vrot.slane %v2072_v17, 1  ;;  %v2265_v7 = vrot.slane %v2264_v49, 1  ;;  %v5531_v21 = vld [vmem:[#allocation3 + $0x1b8] sm:$0xff] }
 0x1e3   :  { %4263 = vmatprep.subr.bf16.mxu1 %v4398_v12  ;;  %v2169_v35 = vrot.slane %v2168_v15, 1  ;;  %v4406_v12 = vld [vmem:[#allocation6 + $0x3c0] sm:$0xff]   ;;  %v1786_v24 = vadd.f32 %v1785_v48, %v1784_v20  ;;  %v1882_v47 = vadd.f32 %v1881_v55, %v1880_v16  ;;  %v1978_v53 = vadd.f32 %v1977_v19, %v1976_v50  ;;  %v5543_v50 = vld [vmem:[#allocation3 + $0x338] sm:$0xff] }
 0x1e4   :  { %v1027_v39 = vadd.f32 %v1026_v5, %v5488_v18  ;;  %v2074_v54 = vadd.f32 %v2073_v9, %v2072_v17  ;;  %v2498_v41 = vsel %vm1168_vm0, %v1690_v14, %v1594_v62  ;;  %v1271_v19 = vsel %vm1178_vm5, %v5510_v34, %v5518_v31  ;;  %v5540_v18 = vld [vmem:[#allocation3 + $0x2b8] sm:$0xff]  ;;  %v4408_v5 = vld [vmem:[#allocation6 + $0x380] sm:$0xff]  }
 0x1e5   :  { %v2170_v56 = vadd.f32 %v2169_v35, %v2168_v15  ;;  %v2499_v45 = vsel %vm1170_vm1, %v1786_v24, %v2498_v41  ;;  %v2266_v20 = vadd.f32 %v2265_v7, %v2264_v49  ;;  %v159_v36 = vunpack.c.h.bf16 %v5520_v3  ;;  %v5549_v28 = vld [vmem:[#allocation3 + $0x3b8] sm:$0xff] }
 0x1e6   :  { %4264 = vmatpush3.bf16.msra.mxu1 %v4400_v0  ;;  %v5529_v0 = vld [vmem:[#allocation3 + $0x138] sm:$0xff]  ;;  %v2500_v16 = vsel %vm1172_vm2, %v1882_v47, %v2499_v45  ;;  %v175_v34 = vunpack.c.h.bf16 %v5522_v37  ;;  %v207_v15 = vunpack.c.h.bf16 %v5531_v21  ;;  %v1272_v48 = vsel %vm1180_vm6, %v1027_v39, %v1271_v19 }
 0x1e7   :  { %4265 = vmatprep.subr.bf16.mxu1 %v4402_v25  ;;  %v5538_v25 = vld [vmem:[#allocation3 + $0x238] sm:$0xff]  ;;  %v2501_v60 = vsel %vm1174_vm3, %v1978_v53, %v2500_v16  ;;  %v191_v17 = vunpack.c.h.bf16 %v5529_v0  ;;  %v255_v35 = vunpack.c.h.bf16 %v5543_v50  ;;  %v271_v24 = vunpack.c.h.bf16 %v5549_v28 }
 0x1e8   :  { %v2502_v55 = vsel %vm1176_vm4, %v2074_v54, %v2501_v60  ;;  %v223_v49 = vunpack.c.h.bf16 %v5538_v25  ;;  %v362_v47 = vrot.slane %v159_v36, 4  ;;  %v458_v53 = vrot.slane %v175_v34, 4 }
 0x1e9   :  { %v2503_v62 = vsel %vm1178_vm5, %v2170_v56, %v2502_v55  ;;  %v554_v39 = vrot.slane %v191_v17, 4  ;;  %v650_v54 = vrot.slane %v207_v15, 4  ;;  %v938_v16 = vrot.slane %v255_v35, 4 }
 0x1ea   :  { %4266 = vmatpush3.bf16.msra.mxu1 %v4404_v32  ;;  %v239_v32 = vunpack.c.h.bf16 %v5540_v18  ;;  %v746_v41 = vrot.slane %v223_v49, 4  ;;  %v363_v19 = vadd.f32 %v362_v47, %v159_v36  ;;  %v459_v45 = vadd.f32 %v458_v53, %v175_v34 }
 0x1eb   :  { %4267 = vmatprep.subr.bf16.mxu1 %v4406_v12  ;;  %v2504_v12 = vsel %vm1180_vm6, %v2266_v20, %v2503_v62  ;;  %v555_v55 = vadd.f32 %v554_v39, %v191_v17  ;;  %v651_v9 = vadd.f32 %v650_v54, %v207_v15  ;;  %v939_v20 = vadd.f32 %v938_v16, %v255_v35  ;;  %v5563_v17 = vpop.f32.mrf.mxu0 }
 0x1ec   :  { %v2548_v7 = vadd.f32 %v2504_v12, %v1272_v48  ;;  %v842_v56 = vrot.slane %v239_v32, 4  ;;  %v747_v14 = vadd.f32 %v746_v41, %v223_v49  ;;  %v364_v31 = vrot.slane %v363_v19, 2  ;;  %6006 = vst [vmem:[#allocation16_spill] sm:$0xff] %v5563_v17 }
 0x1ed   :  { %v556_v62 = vrot.slane %v555_v55, 2  ;;  %v652_v46 = vrot.slane %v651_v9, 2  ;;  %v1034_v48 = vrot.slane %v271_v24, 4  ;;  %v940_v36 = vrot.slane %v939_v20, 2  ;;  %v5565_v16 = vpop.f32.mrf.mxu0 }
 0x1ee   :  { %4268 = vmatpush3.bf16.msra.mxu1 %v4408_v5  ;;  %v2599_v60 = vpack.c.bf16 %v2548_v7, %v2548_v7  ;;  %v460_v5 = vrot.slane %v459_v45, 2  ;;  %v843_v11 = vadd.f32 %v842_v56, %v239_v32  ;;  %v748_v40 = vrot.slane %v747_v14, 2  ;;  %6007 = vst [vmem:[#allocation17_spill] sm:$0xff] %v5565_v16 }
 0x1ef   :  { %v365_v12 = vadd.f32 %v364_v31, %v363_v19  ;;  %v557_v34 = vadd.f32 %v556_v62, %v555_v55  ;;  %v653_v47 = vadd.f32 %v652_v46, %v651_v9  ;;  %v1035_v7 = vadd.f32 %v1034_v48, %v271_v24  ;;  %v5567_v9 = vld [vmem:[#allocation3 + $0x78] sm:$0xff] }
 0x1f0   :  { %3905 = vmatprep.mubr.bf16.mxu0 %v2599_v60  ;;  %v461_v42 = vadd.f32 %v460_v5, %v459_v45  ;;  %v844_v2 = vrot.slane %v843_v11, 2  ;;  %v749_v53 = vadd.f32 %v748_v40, %v747_v14  ;;  %v941_v32 = vadd.f32 %v940_v36, %v939_v20  ;;  %v5569_v24 = vld [vmem:[#allocation3 + $0xf8] sm:$0xff] }
 0x1f1   :  { %v366_v15 = vrot.slane %v365_v12, 1  ;;  %v558_v35 = vrot.slane %v557_v34, 1  ;;  %v654_v54 = vrot.slane %v653_v47, 1  ;;  %v1036_v56 = vrot.slane %v1035_v7, 2  ;;  %6008 = vst [vmem:[#allocation18_spill] sm:$0xff] %v5569_v24  ;;  %v5574_v48 = vld [vmem:[#allocation3 + $0x178] sm:$0xff] }
 0x1f2   :  { %v462_v49 = vrot.slane %v461_v42, 1  ;;  %v845_v39 = vadd.f32 %v844_v2, %v843_v11  ;;  %v750_v41 = vrot.slane %v749_v53, 1  ;;  %v942_v60 = vrot.slane %v941_v32, 1  ;;  %v4162_v2 = vpop.f32.mrf.mxu0 }
 0x1f3   :  { %v367_v31 = vadd.f32 %v366_v15, %v365_v12  ;;  %v559_v55 = vadd.f32 %v558_v35, %v557_v34  ;;  %v655_v46 = vadd.f32 %v654_v54, %v653_v47  ;;  %v1037_v14 = vadd.f32 %v1036_v56, %v1035_v7  ;;  %v5586_v35 = vld [vmem:[#allocation3 + $0x378] sm:$0xff] }
 0x1f4   :  { %v463_v19 = vadd.f32 %v462_v49, %v461_v42  ;;  %v846_v45 = vrot.slane %v845_v39, 1  ;;  %v751_v40 = vadd.f32 %v750_v41, %v749_v53  ;;  %v5576_v42 = vld [vmem:[#allocation3 + $0x1f8] sm:$0xff]  ;;  %v943_v36 = vadd.f32 %v942_v60, %v941_v32  ;;  %v4163_v7 = vpop.f32.mrf.mxu0  ;;  %6010 = vst [vmem:[#allocation20_spill] sm:$0xff] %v5586_v35 }
 0x1f5   :  { %v1038_v34 = vrot.slane %v1037_v14, 1  ;;  %v5580_v53 = vld [vmem:[#allocation3 + $0x278] sm:$0xff]  ;;  %v1398_v54 = vunpack.c.h.bf16 %v5567_v9  ;;  %v1414_v41 = vunpack.c.h.bf16 %v5569_v24 }
 0x1f6   :  { %v847_v20 = vadd.f32 %v846_v45, %v845_v39  ;;  %v1280_v62 = vsel %vm1168_vm0, %v463_v19, %v367_v31  ;;  %v5584_v39 = vld [vmem:[#allocation3 + $0x2f8] sm:$0xff]  ;;  %v1430_v19 = vunpack.c.h.bf16 %v5574_v48  ;;  %v1446_v45 = vunpack.c.h.bf16 %v5576_v42 }
 0x1f7   :  { %v1281_v47 = vsel %vm1170_vm1, %v559_v55, %v1280_v62  ;;  %6009 = vst [vmem:[#allocation19_spill] sm:$0xff] %v5584_v39  ;;  %v1039_v56 = vadd.f32 %v1038_v34, %v1037_v14  ;;  %v5591_v31 = vld [vmem:[#allocation3 + $0x3f8] sm:$0xff]  ;;  %v1462_v2 = vunpack.c.h.bf16 %v5580_v53  ;;  %v1494_v34 = vunpack.c.h.bf16 %v5586_v35 }
 0x1f8   :  { %v1282_v49 = vsel %vm1172_vm2, %v655_v46, %v1281_v47  ;;  %6011 = vst [vmem:[#allocation21_spill] sm:$0xff] %v5591_v31  ;;  %v1601_v55 = vrot.slane %v1398_v54, 4  ;;  %v1697_v60 = vrot.slane %v1414_v41, 4 }
 0x1f9   :  { %v1283_v32 = vsel %vm1174_vm3, %v751_v40, %v1282_v49  ;;  %v1478_v40 = vunpack.c.h.bf16 %v5584_v39  ;;  %v1510_v49 = vunpack.c.h.bf16 %v5591_v31  ;;  %v1985_v15 = vrot.slane %v1462_v2, 4 }
 0x1fa   :  { %v1284_v46 = vsel %vm1176_vm4, %v847_v20, %v1283_v32  ;;  %v1793_v20 = vrot.slane %v1430_v19, 4  ;;  %v1889_v32 = vrot.slane %v1446_v45, 4  ;;  %v1602_v12 = vadd.f32 %v1601_v55, %v1398_v54 }
 0x1fb   :  { %v1285_v62 = vsel %vm1178_vm5, %v943_v36, %v1284_v46  ;;  %v2081_v36 = vrot.slane %v1478_v40, 4  ;;  %v2177_v46 = vrot.slane %v1494_v34, 4  ;;  %v2273_v14 = vrot.slane %v1510_v49, 4 }
 0x1fc   :  { %v5604_v47 = vsel %vm1180_vm6, %v1039_v56, %v1285_v62  ;;  %v1698_v5 = vadd.f32 %v1697_v60, %v1414_v41  ;;  %v1794_v11 = vadd.f32 %v1793_v20, %v1430_v19  ;;  %v1890_v8 = vadd.f32 %v1889_v32, %v1446_v45 }
 0x1fd   :  { %v1986_v1 = vadd.f32 %v1985_v15, %v1462_v2  ;;  %v1603_v6 = vrot.slane %v1602_v12, 2  ;;  %v2082_v56 = vadd.f32 %v2081_v36, %v1478_v40  ;;  %v2178_v62 = vadd.f32 %v2177_v46, %v1494_v34 }
 0x1fe   :  { %v2274_v16 = vadd.f32 %v2273_v14, %v1510_v49  ;;  %v1699_v7 = vrot.slane %v1698_v5, 2  ;;  %v1795_v17 = vrot.slane %v1794_v11, 2  ;;  %v1891_v52 = vrot.slane %v1890_v8, 2 }
 0x1ff   :  { %v1987_v30 = vrot.slane %v1986_v1, 2  ;;  %v1604_v58 = vadd.f32 %v1603_v6, %v1602_v12  ;;  %v2083_v38 = vrot.slane %v2082_v56, 2  ;;  %v2179_v31 = vrot.slane %v2178_v62, 2 }
 0x200   :  { %v2275_v35 = vrot.slane %v2274_v16, 2  ;;  %v1700_v54 = vadd.f32 %v1699_v7, %v1698_v5  ;;  %v1796_v55 = vadd.f32 %v1795_v17, %v1794_v11  ;;  %v1892_v24 = vadd.f32 %v1891_v52, %v1890_v8 }
 0x201   :  { %v1988_v39 = vadd.f32 %v1987_v30, %v1986_v1  ;;  %v1605_v41 = vrot.slane %v1604_v58, 1  ;;  %v2084_v19 = vadd.f32 %v2083_v38, %v2082_v56  ;;  %v2180_v45 = vadd.f32 %v2179_v31, %v2178_v62 }
 0x202   :  { %v2276_v15 = vadd.f32 %v2275_v35, %v2274_v16  ;;  %v1701_v60 = vrot.slane %v1700_v54, 1  ;;  %v1797_v2 = vrot.slane %v1796_v55, 1  ;;  %v1893_v40 = vrot.slane %v1892_v24, 1 }
 0x203   :  { %v1989_v14 = vrot.slane %v1988_v39, 1  ;;  %v1606_v34 = vadd.f32 %v1605_v41, %v1604_v58  ;;  %v2085_v49 = vrot.slane %v2084_v19, 1  ;;  %v2181_v20 = vrot.slane %v2180_v45, 1 }
 0x204   :  { %v2277_v32 = vrot.slane %v2276_v15, 1  ;;  %v1702_v6 = vadd.f32 %v1701_v60, %v1700_v54  ;;  %v1798_v12 = vadd.f32 %v1797_v2, %v1796_v55  ;;  %v1894_v36 = vadd.f32 %v1893_v40, %v1892_v24 }
 0x205   :  { %v1990_v46 = vadd.f32 %v1989_v14, %v1988_v39  ;;  %v2086_v5 = vadd.f32 %v2085_v49, %v2084_v19  ;;  %v2182_v17 = vadd.f32 %v2181_v20, %v2180_v45  ;;  %v6012_v1 = vunpack.c.l.bf16 %v5432_v22 }
 0x206   :  { %v2278_v52 = vadd.f32 %v2277_v32, %v2276_v15  ;;  %v2512_v30 = vsel %vm1168_vm0, %v1702_v6, %v1606_v34  ;;  %v6013_v8 = vunpack.c.l.bf16 %v5434_v4  ;;  %v6014_v58 = vunpack.c.l.bf16 %v5437_v51 }
 0x207   :  { %v344_v38 = vrot.slane %v6012_v1, 4  ;;  %v6015_v35 = vunpack.c.l.bf16 %v5439_v59  ;;  %v2513_v24 = vsel %vm1170_vm1, %v1798_v12, %v2512_v30  ;;  %v6016_v39 = vmov %v6012_v1 }
 0x208   :  { %v440_v16 = vrot.slane %v6013_v8, 4  ;;  %v536_v11 = vrot.slane %v6014_v58, 4  ;;  %v6017_v56 = vunpack.c.l.bf16 %v5442_v26  ;;  %v6018_v54 = vunpack.c.l.bf16 %v5444_v43 }
 0x209   :  { %v632_v31 = vrot.slane %v6015_v35, 4  ;;  %v345_v7 = vadd.f32 %v344_v38, %v6016_v39  ;;  %v2514_v41 = vsel %vm1172_vm2, %v1894_v36, %v2513_v24  ;;  %v6019_v19 = vmov %v6013_v8  ;;  %v5637_v1 = vpop.f32.mrf.mxu1 }
 0x20a   :  { %v728_v62 = vrot.slane %v6017_v56, 4  ;;  %v824_v55 = vrot.slane %v6018_v54, 4  ;;  %v441_v45 = vadd.f32 %v440_v16, %v6019_v19  ;;  %v6020_v15 = vmov %v6014_v58 }
 0x20b   :  { %v537_v60 = vadd.f32 %v536_v11, %v6020_v15  ;;  %v6021_v2 = vmov %v6015_v35  ;;  %v2515_v22 = vsel %vm1174_vm3, %v1990_v46, %v2514_v41  ;;  %v346_v14 = vrot.slane %v345_v7, 2  ;;  %v5641_v58 = vpop.f32.mrf.mxu1 }
 0x20c   :  { %v633_v40 = vadd.f32 %v632_v31, %v6021_v2  ;;  %v6022_v34 = vmov %v6017_v56  ;;  %v6023_v20 = vmov %v6018_v54  ;;  %v2516_v6 = vsel %vm1176_vm4, %v2086_v5, %v2515_v22 }
 0x20d   :  { %v729_v49 = vadd.f32 %v728_v62, %v6022_v34  ;;  %v825_v32 = vadd.f32 %v824_v55, %v6023_v20  ;;  %v442_v12 = vrot.slane %v441_v45, 2  ;;  %v538_v4 = vrot.slane %v537_v60, 2  ;;  %v4184_v56 = vpop.f32.mrf.mxu1 }
 0x20e   :  { %v634_v36 = vrot.slane %v633_v40, 2  ;;  %v2517_v51 = vsel %vm1178_vm5, %v2182_v17, %v2516_v6  ;;  %v347_v59 = vadd.f32 %v346_v14, %v345_v7  ;;  %v6024_v17 = vunpack.c.l.bf16 %v5449_v27 }
 0x20f   :  { %v730_v38 = vrot.slane %v729_v49, 2  ;;  %v826_v30 = vrot.slane %v825_v32, 2  ;;  %v2518_v46 = vsel %vm1180_vm6, %v2278_v52, %v2517_v51  ;;  %v443_v8 = vadd.f32 %v442_v12, %v441_v45 }
 0x210   :  { %v539_v26 = vadd.f32 %v538_v4, %v537_v60  ;;  %v635_v16 = vadd.f32 %v634_v36, %v633_v40  ;;  %v2550_v43 = vadd.f32 %v2518_v46, %v5604_v47  ;;  %v348_v5 = vrot.slane %v347_v59, 1  ;;  %v4185_v60 = vpop.f32.mrf.mxu1 }
 0x211   :  { %v731_v11 = vadd.f32 %v730_v38, %v729_v49  ;;  %v827_v35 = vadd.f32 %v826_v30, %v825_v32  ;;  %v444_v31 = vrot.slane %v443_v8, 1  ;;  %v920_v7 = vrot.slane %v6024_v17, 4 }
 0x212   :  { %v540_v24 = vrot.slane %v539_v26, 1  ;;  %v636_v39 = vrot.slane %v635_v16, 1  ;;  %v2601_v62 = vpack.c.bf16 %v2550_v43, %v2550_v43  ;;  %v349_v54 = vadd.f32 %v348_v5, %v347_v59 }
 0x213   :  { %v732_v52 = vrot.slane %v731_v11, 1  ;;  %v828_v55 = vrot.slane %v827_v35, 1  ;;  %v445_v41 = vadd.f32 %v444_v31, %v443_v8  ;;  %v6025_v15 = vmov %v6024_v17 }
 0x214   :  { %v541_v19 = vadd.f32 %v540_v24, %v539_v26  ;;  %v637_v45 = vadd.f32 %v636_v39, %v635_v16  ;;  %v921_v47 = vadd.f32 %v920_v7, %v6025_v15  ;;  %3945 = vmatprep.mubr.bf16.mxu1 %v2601_v62  ;;  %v6026_v22 = vunpack.c.l.bf16 %v5451_v33 }
 0x215   :  { %v733_v2 = vadd.f32 %v732_v52, %v731_v11  ;;  %v829_v40 = vadd.f32 %v828_v55, %v827_v35  ;;  %v6027_v34 = vunpack.c.l.bf16 %v5476_v61  ;;  %v1259_v32 = vsel %vm1168_vm0, %v445_v41, %v349_v54 }
 0x216   :  { %v1016_v14 = vrot.slane %v6026_v22, 4  ;;  %v922_v20 = vrot.slane %v921_v47, 2  ;;  %v6028_v6 = vunpack.c.l.bf16 %v5478_v29  ;;  %v6029_v4 = vunpack.c.l.bf16 %v5483_v23 }
 0x217   :  { %v1583_v49 = vrot.slane %v6027_v34, 4  ;;  %v6030_v36 = vmov %v6026_v22  ;;  %v1260_v59 = vsel %vm1170_vm1, %v541_v19, %v1259_v32  ;;  %v6031_v38 = vmov %v6027_v34 }
 0x218   :  { %v1679_v12 = vrot.slane %v6028_v6, 4  ;;  %v1775_v27 = vrot.slane %v6029_v4, 4  ;;  %v1017_v51 = vadd.f32 %v1016_v14, %v6030_v36  ;;  %v6032_v46 = vunpack.c.l.bf16 %v5485_v57 }
 0x219   :  { %v1584_v30 = vadd.f32 %v1583_v49, %v6031_v38  ;;  %v923_v26 = vadd.f32 %v922_v20, %v921_v47  ;;  %v1261_v16 = vsel %vm1172_vm2, %v637_v45, %v1260_v59  ;;  %v6033_v43 = vmov %v6028_v6 }
 0x21a   :  { %v1871_v8 = vrot.slane %v6032_v46, 4  ;;  %v1680_v5 = vadd.f32 %v1679_v12, %v6033_v43  ;;  %v6034_v11 = vmov %v6029_v4  ;;  %v1018_v31 = vrot.slane %v1017_v51, 2 }
 0x21b   :  { %v1776_v35 = vadd.f32 %v1775_v27, %v6034_v11  ;;  %v1262_v33 = vsel %vm1174_vm3, %v733_v2, %v1261_v16  ;;  %v1585_v24 = vrot.slane %v1584_v30, 2  ;;  %v6035_v39 = vmov %v6032_v46 }
 0x21c   :  { %v1872_v61 = vadd.f32 %v1871_v8, %v6035_v39  ;;  %v924_v17 = vrot.slane %v923_v26, 1  ;;  %v1263_v7 = vsel %vm1176_vm4, %v829_v40, %v1262_v33  ;;  %v1681_v56 = vrot.slane %v1680_v5, 2 }
 0x21d   :  { %v1777_v62 = vrot.slane %v1776_v35, 2  ;;  %v1019_v54 = vadd.f32 %v1018_v31, %v1017_v51  ;;  %v1586_v52 = vadd.f32 %v1585_v24, %v1584_v30  ;;  %v6036_v29 = vunpack.c.l.bf16 %v5491_v10 }
 0x21e   :  { %v1873_v55 = vrot.slane %v1872_v61, 2  ;;  %v925_v23 = vadd.f32 %v924_v17, %v923_v26  ;;  %v1682_v19 = vadd.f32 %v1681_v56, %v1680_v5  ;;  %v6037_v15 = vunpack.c.l.bf16 %v5493_v44 }
 0x21f   :  { %v1967_v41 = vrot.slane %v6036_v29, 4  ;;  %v1778_v45 = vadd.f32 %v1777_v62, %v1776_v35  ;;  %v1020_v60 = vrot.slane %v1019_v54, 1  ;;  %v1587_v57 = vrot.slane %v1586_v52, 1 }
 0x220   :  { %v2063_v47 = vrot.slane %v6037_v15, 4  ;;  %v1874_v2 = vadd.f32 %v1873_v55, %v1872_v61  ;;  %v6038_v22 = vmov %v6036_v29  ;;  %v1264_v14 = vsel %vm1178_vm5, %v925_v23, %v1263_v7 }
 0x221   :  { %v1968_v40 = vadd.f32 %v1967_v41, %v6038_v22  ;;  %v1683_v34 = vrot.slane %v1682_v19, 1  ;;  %v1779_v49 = vrot.slane %v1778_v45, 1  ;;  %v6039_v20 = vmov %v6037_v15 }
 0x222   :  { %v2064_v32 = vadd.f32 %v2063_v47, %v6039_v20  ;;  %v1021_v6 = vadd.f32 %v1020_v60, %v1019_v54  ;;  %v1588_v12 = vadd.f32 %v1587_v57, %v1586_v52  ;;  %v1875_v4 = vrot.slane %v1874_v2, 1 }
 0x223   :  { %v1969_v27 = vrot.slane %v1968_v40, 2  ;;  %v1684_v36 = vadd.f32 %v1683_v34, %v1682_v19  ;;  %v1780_v51 = vadd.f32 %v1779_v49, %v1778_v45  ;;  %v6040_v38 = vunpack.c.l.bf16 %v5496_v63 }
 0x224   :  { %v2065_v59 = vrot.slane %v2064_v32, 2  ;;  %v1265_v10 = vsel %vm1180_vm6, %v1021_v6, %v1264_v14  ;;  %v1876_v46 = vadd.f32 %v1875_v4, %v1874_v2  ;;  %v6041_v26 = vunpack.c.l.bf16 %v5500_v13 }
 0x225   :  { %v2159_v30 = vrot.slane %v6040_v38, 4  ;;  %v1970_v8 = vadd.f32 %v1969_v27, %v1968_v40  ;;  %v6042_v44 = vmov %v6040_v38  ;;  %v2491_v11 = vsel %vm1168_vm0, %v1684_v36, %v1588_v12 }
 0x226   :  { %v2255_v16 = vrot.slane %v6041_v26, 4  ;;  %v2066_v43 = vadd.f32 %v2065_v59, %v2064_v32  ;;  %v6043_v35 = vunpack.c.l.bf16 %v5520_v3  ;;  %v6044_v24 = vmov %v6041_v26 }
 0x227   :  { %v2160_v5 = vadd.f32 %v2159_v30, %v6042_v44  ;;  %v1971_v33 = vrot.slane %v1970_v8, 1  ;;  %v2492_v61 = vsel %vm1170_vm1, %v1780_v51, %v2491_v11  ;;  %v6045_v17 = vunpack.c.l.bf16 %v5522_v37 }
 0x228   :  { %v356_v31 = vrot.slane %v6043_v35, 4  ;;  %v2256_v39 = vadd.f32 %v2255_v16, %v6044_v24  ;;  %v2067_v56 = vrot.slane %v2066_v43, 1  ;;  %v2493_v54 = vsel %vm1172_vm2, %v1876_v46, %v2492_v61 }
 0x229   :  { %v452_v7 = vrot.slane %v6045_v17, 4  ;;  %v2161_v62 = vrot.slane %v2160_v5, 2  ;;  %v6046_v63 = vmov %v6043_v35  ;;  %v1972_v55 = vadd.f32 %v1971_v33, %v1970_v8 }
 0x22a   :  { %v357_v52 = vadd.f32 %v356_v31, %v6046_v63  ;;  %v2257_v29 = vrot.slane %v2256_v39, 2  ;;  %v6047_v41 = vmov %v6045_v17  ;;  %v6048_v13 = vunpack.c.l.bf16 %v5529_v0 }
 0x22b   :  { %v453_v23 = vadd.f32 %v452_v7, %v6047_v41  ;;  %v2068_v45 = vadd.f32 %v2067_v56, %v2066_v43  ;;  %v2162_v15 = vadd.f32 %v2161_v62, %v2160_v5  ;;  %v6049_v60 = vunpack.c.l.bf16 %v5531_v21 }
 0x22c   :  { %v548_v19 = vrot.slane %v6048_v13, 4  ;;  %v358_v47 = vrot.slane %v357_v52, 2  ;;  %v2258_v2 = vadd.f32 %v2257_v29, %v2256_v39  ;;  %v2494_v22 = vsel %vm1174_vm3, %v1972_v55, %v2493_v54 }
 0x22d   :  { %v644_v57 = vrot.slane %v6049_v60, 4  ;;  %v454_v40 = vrot.slane %v453_v23, 2  ;;  %v6050_v3 = vmov %v6048_v13  ;;  %v2163_v34 = vrot.slane %v2162_v15, 1 }
 0x22e   :  { %v549_v14 = vadd.f32 %v548_v19, %v6050_v3  ;;  %v2495_v37 = vsel %vm1176_vm4, %v2068_v45, %v2494_v22  ;;  %v359_v49 = vadd.f32 %v358_v47, %v357_v52  ;;  %v6051_v20 = vmov %v6049_v60 }
 0x22f   :  { %v645_v32 = vadd.f32 %v644_v57, %v6051_v20  ;;  %v2259_v6 = vrot.slane %v2258_v2, 1  ;;  %v455_v12 = vadd.f32 %v454_v40, %v453_v23  ;;  %v6052_v27 = vunpack.c.l.bf16 %v5538_v25 }
 0x230   :  { %v550_v4 = vrot.slane %v549_v14, 2  ;;  %v2164_v51 = vadd.f32 %v2163_v34, %v2162_v15  ;;  %v360_v59 = vrot.slane %v359_v49, 1  ;;  %v6053_v30 = vunpack.c.l.bf16 %v5540_v18 }
 0x231   :  { %v740_v36 = vrot.slane %v6052_v27, 4  ;;  %v646_v38 = vrot.slane %v645_v32, 2  ;;  %v2260_v46 = vadd.f32 %v2259_v6, %v2258_v2  ;;  %v456_v8 = vrot.slane %v455_v12, 1  ;;  %v6062_v2 = vld [vmem:[#allocation18_spill] sm:$0xff] }
 0x232   :  { %v836_v0 = vrot.slane %v6053_v30, 4  ;;  %v551_v26 = vadd.f32 %v550_v4, %v549_v14  ;;  %v6054_v16 = vmov %v6052_v27  ;;  %v2496_v21 = vsel %vm1178_vm5, %v2164_v51, %v2495_v37  ;;  %v6065_v37 = vld [vmem:[#allocation20_spill] sm:$0xff]  ;;  %v6067_v4 = vld [vmem:[#allocation21_spill] sm:$0xff] }
 0x233   :  { %v741_v43 = vadd.f32 %v740_v36, %v6054_v16  ;;  %v361_v44 = vadd.f32 %v360_v59, %v359_v49  ;;  %v647_v5 = vadd.f32 %v646_v38, %v645_v32  ;;  %v6055_v11 = vmov %v6053_v30 }
 0x234   :  { %v837_v35 = vadd.f32 %v836_v0, %v6055_v11  ;;  %v2497_v31 = vsel %vm1180_vm6, %v2260_v46, %v2496_v21  ;;  %v457_v33 = vadd.f32 %v456_v8, %v455_v12  ;;  %v552_v24 = vrot.slane %v551_v26, 1 }
 0x235   :  { %v742_v39 = vrot.slane %v741_v43, 2  ;;  %v2547_v61 = vadd.f32 %v2497_v31, %v1265_v10  ;;  %v648_v17 = vrot.slane %v647_v5, 1  ;;  %v6056_v56 = vunpack.c.l.bf16 %v5543_v50 }
 0x236   :  { %v838_v7 = vrot.slane %v837_v35, 2  ;;  %v1429_v25 = vunpack.c.l.bf16 %v5574_v48  ;;  %v1445_v54 = vunpack.c.l.bf16 %v5576_v42  ;;  %v553_v63 = vadd.f32 %v552_v24, %v551_v26  ;;  %v6060_v48 = vld [vmem:[#allocation19_spill] sm:$0xff] }
 0x237   :  { %v932_v62 = vrot.slane %v6056_v56, 4  ;;  %v6057_v52 = vunpack.c.l.bf16 %v5549_v28  ;;  %v2598_v55 = vpack.c.bf16 %v2547_v61, %v2547_v61  ;;  %v743_v29 = vadd.f32 %v742_v39, %v741_v43 }
 0x238   :  { %v6058_v41 = vmov %v6056_v56  ;;  %v1273_v10 = vsel %vm1168_vm0, %v457_v33, %v361_v44  ;;  %v1461_v13 = vunpack.c.l.bf16 %v5580_v53  ;;  %v839_v19 = vadd.f32 %v838_v7, %v837_v35 }
 0x239   :  { %v1028_v18 = vrot.slane %v6057_v52, 4  ;;  %v933_v23 = vadd.f32 %v932_v62, %v6058_v41  ;;  %v6059_v45 = vunpack.c.l.bf16 %v5567_v9  ;;  %v1477_v47 = vunpack.c.l.bf16 %v6060_v48  ;;  %3906 = vmatmul.mubr.bf16.vlgmr.msra.gmra.mxu0 %v2598_v55 }
 0x23a   :  { %v649_v42 = vadd.f32 %v648_v17, %v647_v5  ;;  %v6061_v60 = vmov %v6057_v52  ;;  %v6063_v22 = vunpack.c.l.bf16 %v6062_v2  ;;  %v1274_v3 = vsel %vm1170_vm1, %v553_v63, %v1273_v10 }
 0x23b   :  { %v1595_v15 = vrot.slane %v6059_v45, 4  ;;  %v1029_v57 = vadd.f32 %v1028_v18, %v6061_v60  ;;  %v934_v50 = vrot.slane %v933_v23, 2  ;;  %v6064_v14 = vmov %v6059_v45 }
 0x23c   :  { %v1691_v40 = vrot.slane %v6063_v22, 4  ;;  %v1787_v34 = vrot.slane %v1429_v25, 4  ;;  %v1493_v49 = vunpack.c.l.bf16 %v6065_v37  ;;  %v744_v20 = vrot.slane %v743_v29, 1 }
 0x23d   :  { %v1596_v53 = vadd.f32 %v1595_v15, %v6064_v14  ;;  %v6066_v32 = vmov %v6063_v22  ;;  %v1883_v12 = vrot.slane %v1445_v54, 4  ;;  %v1509_v28 = vunpack.c.l.bf16 %v6067_v4 }
 0x23e   :  { %v1692_v6 = vadd.f32 %v1691_v40, %v6066_v32  ;;  %v840_v27 = vrot.slane %v839_v19, 1  ;;  %v1788_v51 = vadd.f32 %v1787_v34, %v1429_v25  ;;  %v1030_v59 = vrot.slane %v1029_v57, 2 }
 0x23f   :  { %v1597_v36 = vrot.slane %v1596_v53, 2  ;;  %v1275_v38 = vsel %vm1172_vm2, %v649_v42, %v1274_v3  ;;  %v1884_v0 = vadd.f32 %v1883_v12, %v1445_v54  ;;  %v935_v9 = vadd.f32 %v934_v50, %v933_v23 }
 0x240   :  { %v1693_v30 = vrot.slane %v1692_v6, 2  ;;  %v1789_v8 = vrot.slane %v1788_v51, 2  ;;  %v1979_v26 = vrot.slane %v1461_v13, 4  ;;  %v745_v16 = vadd.f32 %v744_v20, %v743_v29 }
 0x241   :  { %v1598_v46 = vadd.f32 %v1597_v36, %v1596_v53  ;;  %v1885_v21 = vrot.slane %v1884_v0, 2  ;;  %v2075_v44 = vrot.slane %v1477_v47, 4  ;;  %v841_v5 = vadd.f32 %v840_v27, %v839_v19 }
 0x242   :  { %v1694_v43 = vadd.f32 %v1693_v30, %v1692_v6  ;;  %v1790_v35 = vadd.f32 %v1789_v8, %v1788_v51  ;;  %v1980_v31 = vadd.f32 %v1979_v26, %v1461_v13  ;;  %v1031_v33 = vadd.f32 %v1030_v59, %v1029_v57  ;;  %v6068_v59 = vld [vmem:[#allocation13_spill] sm:$0xff]  ;;  %v6071_v8 = vld [vmem:[#allocation15_spill] sm:$0xff] }
 0x243   :  { %v1599_v11 = vrot.slane %v1598_v46, 1  ;;  %v1886_v39 = vadd.f32 %v1885_v21, %v1884_v0  ;;  %v2076_v61 = vadd.f32 %v2075_v44, %v1477_v47  ;;  %v936_v17 = vrot.slane %v935_v9, 1  ;;  %v3970_v0 = vld [vmem:[%s5774_s2] ss:$0 sm:$0xff]  ;;  %s4480_s2 = smov [#allocation8]  }
 0x244   :  { %v1695_v24 = vrot.slane %v1694_v43, 1  ;;  %v1791_v56 = vrot.slane %v1790_v35, 1  ;;  %v1981_v62 = vrot.slane %v1980_v31, 2  ;;  %v2171_v52 = vrot.slane %v1493_v49, 4  ;;  %s3960_s25 = sshll.u32 %s4480_s2, 4  ;;  %s3961_s25 = int_to_ptr.vmem [resolvable:$true] %s3960_s25 }
 0x245   :  { %v1600_v7 = vadd.f32 %v1599_v11, %v1598_v46  ;;  %v1887_v54 = vrot.slane %v1886_v39, 1  ;;  %v2077_v63 = vrot.slane %v2076_v61, 2  ;;  %v1276_v18 = vsel %vm1174_vm3, %v745_v16, %v1275_v38  ;;  %v6069_v38 = vld [vmem:[#allocation14_spill] sm:$0xff]  ;;  %v6070_v46 = vld [vmem:[#allocation12_spill] sm:$0xff]  ;;  %s4449_s26 = scalar_lea.vmem %s3961_s25, 128  ;;  %p4454_p11 = scmp.lt.s32.totalorder %s3961_s25, %s3961_s25 }
 0x246   :  { %v1696_v25 = vadd.f32 %v1695_v24, %v1694_v43  ;;  %v1792_v55 = vadd.f32 %v1791_v56, %v1790_v35  ;;  %v1982_v29 = vadd.f32 %v1981_v62, %v1980_v31  ;;  %v2267_v41 = vrot.slane %v1509_v28, 4  ;;  %v6072_v16 = vld [vmem:[#allocation16_spill] sm:$0xff]  ;;  %v6073_v43 = vld [vmem:[#allocation17_spill] sm:$0xff]  ;;  %p4450_p10 = scmp.ne.s32.totalorder %s3961_s25, %s4449_s26  ;;  %p4455_p12 = scmp.lt.s32.totalorder %s4449_s26, %s4449_s26 }
 0x247   :  { %v1888_v23 = vadd.f32 %v1887_v54, %v1886_v39  ;;  %v2078_v10 = vadd.f32 %v2077_v63, %v2076_v61  ;;  %v2172_v13 = vadd.f32 %v2171_v52, %v1493_v49  ;;  %v1032_v45 = vrot.slane %v1031_v33, 1 }
 0x248   :  { %v2505_v19 = vsel %vm1168_vm0, %v1696_v25, %v1600_v7  ;;  %v1983_v15 = vrot.slane %v1982_v29, 1  ;;  %v2268_v48 = vadd.f32 %v2267_v41, %v1509_v28  ;;  %v937_v42 = vadd.f32 %v936_v17, %v935_v9  ;;  %p4456_p13 = por %p4455_p12, %p4454_p11 }
 0x249   :  { %v2506_v47 = vsel %vm1170_vm1, %v1792_v55, %v2505_v19  ;;  %v2079_v60 = vrot.slane %v2078_v10, 1  ;;  %v2173_v57 = vrot.slane %v2172_v13, 2  ;;  %v1277_v22 = vsel %vm1176_vm4, %v841_v5, %v1276_v18 }
 0x24a   :  { %v2507_v2 = vsel %vm1172_vm2, %v1888_v23, %v2506_v47  ;;  %v1984_v40 = vadd.f32 %v1983_v15, %v1982_v29  ;;  %v2269_v50 = vrot.slane %v2268_v48, 2  ;;  %v4183_v3 = vadd.f32 %v5641_v58, %v5637_v1  ;;  %p4457_p0 = pnand %p4456_p13, %p4450_p10 }
 0x24b   :  { %v2080_v14 = vadd.f32 %v2079_v60, %v2078_v10  ;;  %v2174_v53 = vadd.f32 %v2173_v57, %v2172_v13  ;;  %v1033_v34 = vadd.f32 %v1032_v45, %v1031_v33  ;;  %v1278_v20 = vsel %vm1178_vm5, %v937_v42, %v1277_v22 }
 0x24c   :  { %v2270_v37 = vadd.f32 %v2269_v50, %v2268_v48  ;;  %v2508_v49 = vsel %vm1174_vm3, %v1984_v40, %v2507_v2  ;;  %v4117_v30 = vadd.f32 %v6069_v38, %v6068_v59  ;;  %v4139_v26 = vadd.f32 %v6071_v8, %v6070_v46 }
 0x24d   :  { %v2175_v32 = vrot.slane %v2174_v53, 1  ;;  %v2509_v12 = vsel %vm1176_vm4, %v2080_v14, %v2508_v49  ;;  %v1279_v28 = vsel %vm1180_vm6, %v1033_v34, %v1278_v20  ;;  %v4161_v21 = vadd.f32 %v6073_v43, %v6072_v16 }
 0x24e   :  { %v2271_v6 = vrot.slane %v2270_v37, 1  ;;  %v3668_v9 = vadd.f32 %v4117_v30, %v3970_v0 }
 0x24f   :  { %v2176_v4 = vadd.f32 %v2175_v32, %v2174_v53 }
 0x250   :  { %v2272_v27 = vadd.f32 %v2271_v6, %v2270_v37  ;;  %v3708_v44 = vadd.f32 %v4139_v26, %v3668_v9 }
 0x251   :  { %v2510_v36 = vsel %vm1178_vm5, %v2176_v4, %v2509_v12 }
 0x252   :  { %v2511_v1 = vsel %vm1180_vm6, %v2272_v27, %v2510_v36  ;;  %v3748_v5 = vadd.f32 %v4161_v21, %v3708_v44 }
 0x253   :  { %v2549_v58 = vadd.f32 %v2511_v1, %v1279_v28 }
 0x254   :  { %v3788_v31 = vadd.f32 %v4183_v3, %v3748_v5 }
 0x255   :  { %v2600_v51 = vpack.c.bf16 %v2549_v58, %v2549_v58 }
 0x257   :  { %3946 = vmatmul.mubr.bf16.vlgmr.msra.gmra.mxu1 %v2600_v51 }
 0x271   :  { %v4203_v11 = vpop.f32.mrf.mxu0 }
 0x273   :  { %v4204_v35 = vpop.f32.mrf.mxu0 }
 0x274   :  { %v4205_v33 = vadd.f32 %v4204_v35, %v4203_v11 }
 0x275   :  { %v4206_v24 = vpop.f32.mrf.mxu0 }
 0x276   :  { %v3828_v39 = vadd.f32 %v4205_v33, %v3788_v31 }
 0x277   :  { %v4207_v61 = vpop.f32.mrf.mxu0 }
 0x291   :  { %v4225_v17 = vpop.f32.mrf.mxu1 }
 0x293   :  { %v4226_v7 = vpop.f32.mrf.mxu1 }
 0x294   :  { %v4227_v56 = vadd.f32 %v4226_v7, %v4225_v17 }
 0x295   :  { %v4228_v62 = vpop.f32.mrf.mxu1 }
 0x296   :  { %v3868_v25 = vadd.f32 %v4227_v56, %v3828_v39 }
 0x297   :  { %v4229_v54 = vpop.f32.mrf.mxu1 }
 0x2f9   :  { %v4247_v63 = vpop.f32.mrf.mxu0 }
 0x2fb   :  { %v4248_v52 = vpop.f32.mrf.mxu0 }
 0x2fc   :  { %v4249_v29 = vadd.f32 %v4248_v52, %v4247_v63 }
 0x2fd   :  { %v4250_v18 = vpop.f32.mrf.mxu0 }
 0x2fe   :  { %v3908_v23 = vadd.f32 %v4249_v29, %v3868_v25 }
 0x2ff   :  { %v4251_v55 = vpop.f32.mrf.mxu0 }
 0x317   :  { %v4269_v41 = vpop.f32.mrf.mxu1 }
 0x319   :  { %v4270_v10 = vpop.f32.mrf.mxu1 }
 0x31a   :  { %v4271_v13 = vadd.f32 %v4270_v10, %v4269_v41 }
 0x31b   :  { %v4272_v19 = vpop.f32.mrf.mxu1 }
 0x31c   :  { %v3948_v45 = vadd.f32 %v4271_v13, %v3908_v23 }
 0x31d   :  { %v4273_v15 = vpop.f32.mrf.mxu1 }
 0x31e   :  { %3953 = vst [vmem:[#allocation8] sm:$0xff] %v3948_v45 }
 0x31f   :  { %4460 = shalt.err (!%p4457_p0)
}
 0x320   :  { %3963 = dma.vmem_to_hbm [thread:$0]  %s3961_s25, 128, %s5775_s3, [#allocation5]  }
 0x321   :  { %4473 = dma.done.wait [#allocation5], 128  }
 0x322   :  { %4474 = vsyncadd [#allocation5], 4294967168 }
 0x323   :  { %3967 = vsyncpa [#allocation4], 1 }
 0x324   :  { %3968 = vsyncpa [#allocation7], 1 }
 0x325   :  { %3969 = vsyncpa [#allocation5], 1 }

</bundles_post_ra>
